<compile_context>
chip_gen: v7x
topology: tpu7x:2x2x1
jax: 0.10.0
libtpu: 0.0.40
codegen_flags: <defaults>
</compile_context>

<pallas_src>
import functools

import jax
import jax.numpy as jnp
from jax.experimental import pallas as pl
from jax.experimental.pallas import tpu as pltpu

EPS = 1e-5      # nn.BatchNorm2d default eps
LANE = 128      # TPU lane width
TM = 256        # row tile for 1x1 / residual stages (multiple of 8)


def _round_up(x, m):
    return (x + m - 1) // m * m


def _pad_axis(a, axis, target):
    if a.shape[axis] == target:
        return a
    widths = [(0, 0)] * a.ndim
    widths[axis] = (0, target - a.shape[axis])
    return jnp.pad(a, widths)


def _stats_block(h_f32):
    """(rows, C) -> (1, 2, C) block holding [sum, sum_of_squares]."""
    s = jnp.sum(h_f32, axis=0, keepdims=True)
    ss = jnp.sum(h_f32 * h_f32, axis=0, keepdims=True)
    return jnp.concatenate([s, ss], axis=0)[None]


# --------------------------- stage kernels ----------------------------------
def _conv1x1_stats_kernel(x_ref, w_ref, h_ref, stats_ref):
    """h = x @ w (bf16 MXU, f32 acc); emit per-block BN stats of stored bf16 h."""
    h = jnp.dot(x_ref[...], w_ref[...], preferred_element_type=jnp.float32)
    hb = h.astype(h_ref.dtype)
    h_ref[...] = hb
    stats_ref[...] = _stats_block(hb.astype(jnp.float32))


def _bn_relu_conv1x1_stats_kernel(h_ref, sc_ref, sh_ref, w_ref, o_ref, stats_ref,
                                  *, m_rows):
    """a = relu(h*scale+shift); o = a @ w; emit per-block stats of stored o."""
    a = jnp.maximum(h_ref[...].astype(jnp.float32) * sc_ref[...] + sh_ref[...], 0.0)
    if m_rows is not None:
        # Zero rows that only exist because M was padded to a TM multiple so
        # they do not pollute the BN3 batch statistics.
        tm = a.shape[0]
        row = pl.program_id(0) * tm + jax.lax.broadcasted_iota(jnp.int32, (tm, 1), 0)
        a = jnp.where(row < m_rows, a, 0.0)
    o = jnp.dot(a.astype(jnp.bfloat16), w_ref[...], preferred_element_type=jnp.float32)
    ob = o.astype(o_ref.dtype)
    o_ref[...] = ob
    stats_ref[...] = _stats_block(ob.astype(jnp.float32))


def _bn_relu_conv3x3_stats_kernel(h1_ref, sc_ref, sh_ref, w2_ref,
                                  h2_ref, stats_ref, pad_ref):
    """Per image: a = relu(bn1(h1)); conv3x3(a) as 9 accumulated matmuls."""
    Hp2, Wp2, C = pad_ref.shape
    H, W = Hp2 - 2, Wp2 - 2
    HW = H * W
    bf = pad_ref.dtype

    # Zero the 1-pixel halo unconditionally (safe under "parallel"/megacore;
    # interior is fully overwritten below, so only the border needs clearing).
    pad_ref[0:1, :, :] = jnp.zeros((1, Wp2, C), bf)
    pad_ref[H + 1:H + 2, :, :] = jnp.zeros((1, Wp2, C), bf)
    pad_ref[:, 0:1, :] = jnp.zeros((Hp2, 1, C), bf)
    pad_ref[:, W + 1:W + 2, :] = jnp.zeros((Hp2, 1, C), bf)

    a = jnp.maximum(h1_ref[...].astype(jnp.float32) * sc_ref[...] + sh_ref[...], 0.0)
    pad_ref[1:H + 1, 1:W + 1, :] = a.reshape(H, W, C).astype(bf)

    # 3x3 conv = 9 accumulated (HW, C) x (C, C) MXU matmuls, f32 accumulator.
    acc = jnp.zeros((HW, C), jnp.float32)
    for t in range(9):
        dh, dw = divmod(t, 3)
        win = pad_ref[dh:dh + H, dw:dw + W, :].reshape(HW, C)
        acc = acc + jnp.dot(win, w2_ref[t * C:(t + 1) * C, :],
                            preferred_element_type=jnp.float32)

    hb = acc.astype(h2_ref.dtype)
    h2_ref[...] = hb
    stats_ref[...] = _stats_block(hb.astype(jnp.float32))


def _bn_residual_relu_kernel(h3_ref, sc_ref, sh_ref, x_ref, o_ref):
    o_ref[...] = jnp.maximum(
        h3_ref[...].astype(jnp.float32) * sc_ref[...] + sh_ref[...]
        + x_ref[...].astype(jnp.float32), 0.0)


# ------------------------------ wrapper --------------------------------------
def _bn_scale_shift(stats, count, gamma_p, beta_p):
    """Fold batch stats + gamma/beta into a single per-channel scale/shift."""
    mean = stats[0] / count
    var = jnp.maximum(stats[1] / count - mean * mean, 0.0)
    scale = gamma_p * jax.lax.rsqrt(var + EPS)
    shift = beta_p - mean * scale
    return scale.reshape(1, -1).astype(jnp.float32), shift.reshape(1, -1).astype(jnp.float32)


@jax.jit
def bottleneck(x_nhwc, w1, w2_hwio, w3, g1, b1, g2, b2, g3, b3):
    N, H, W, Cin = x_nhwc.shape
    Cmid = w1.shape[1]
    Cout = w3.shape[1]
    assert Cin == Cout, "identity residual (downsample=None) requires Cin == 4*planes"

    Ci = _round_up(Cin, LANE)
    Cm = _round_up(Cmid, LANE)
    Co = _round_up(Cout, LANE)
    M = N * H * W
    HW = H * W
    Mp = _round_up(M, TM)
    G = Mp // TM
    bf = jnp.bfloat16

    # ---- pad to lane-dense widths / TM-multiple rows; bf16 inter-stage feeds ----
    x2d = _pad_axis(_pad_axis(x_nhwc.reshape(M, Cin).astype(bf), 1, Ci), 0, Mp)  # (Mp, Ci)
    w1p = _pad_axis(_pad_axis(w1, 0, Ci), 1, Cm).astype(bf)                      # (Ci, Cm)
    w2p = (_pad_axis(_pad_axis(w2_hwio, 2, Cm), 3, Cm)
           .reshape(9 * Cm, Cm).astype(bf))                                      # (9*Cm, Cm)
    w3p = _pad_axis(_pad_axis(w3, 0, Cm), 1, Co).astype(bf)                      # (Cm, Co)
    g1p, b1p = _pad_axis(g1.reshape(-1), 0, Cm), _pad_axis(b1.reshape(-1), 0, Cm)
    g2p, b2p = _pad_axis(g2.reshape(-1), 0, Cm), _pad_axis(b2.reshape(-1), 0, Cm)
    g3p, b3p = _pad_axis(g3.reshape(-1), 0, Co), _pad_axis(b3.reshape(-1), 0, Co)

    cp = pltpu.CompilerParams(dimension_semantics=("parallel",),
                              vmem_limit_bytes=64 * 1024 * 1024)

    # ---- stage 1: conv1 (1x1) + per-block BN1 stats ----------------------------
    h1, st1 = pl.pallas_call(
        _conv1x1_stats_kernel,
        grid=(G,),
        in_specs=[pl.BlockSpec((TM, Ci), lambda i: (i, 0)),
                  pl.BlockSpec((Ci, Cm), lambda i: (0, 0))],
        out_specs=(pl.BlockSpec((TM, Cm), lambda i: (i, 0)),
                   pl.BlockSpec((1, 2, Cm), lambda i: (i, 0, 0))),
        out_shape=(jax.ShapeDtypeStruct((Mp, Cm), bf),
                   jax.ShapeDtypeStruct((G, 2, Cm), jnp.float32)),
        compiler_params=cp,
    )(x2d, w1p)
    sc1, sh1 = _bn_scale_shift(st1.sum(axis=0), M, g1p, b1p)

    # ---- stage 2: BN1+ReLU, conv2 (3x3, 9 matmuls) + per-image BN2 stats --------
    h2, st2 = pl.pallas_call(
        _bn_relu_conv3x3_stats_kernel,
        grid=(N,),
        in_specs=[pl.BlockSpec((HW, Cm), lambda n: (n, 0)),
                  pl.BlockSpec((1, Cm), lambda n: (0, 0)),
                  pl.BlockSpec((1, Cm), lambda n: (0, 0)),
                  pl.BlockSpec((9 * Cm, Cm), lambda n: (0, 0))],
        out_specs=(pl.BlockSpec((HW, Cm), lambda n: (n, 0)),
                   pl.BlockSpec((1, 2, Cm), lambda n: (n, 0, 0))),
        out_shape=(jax.ShapeDtypeStruct((Mp, Cm), bf),
                   jax.ShapeDtypeStruct((N, 2, Cm), jnp.float32)),
        scratch_shapes=[pltpu.VMEM((H + 2, W + 2, Cm), bf)],
        compiler_params=cp,
    )(h1, sc1, sh1, w2p)
    sc2, sh2 = _bn_scale_shift(st2.sum(axis=0), M, g2p, b2p)

    # ---- stage 3: BN2+ReLU, conv3 (1x1, expansion) + per-block BN3 stats --------
    h3, st3 = pl.pallas_call(
        functools.partial(_bn_relu_conv1x1_stats_kernel,
                          m_rows=(M if Mp != M else None)),
        grid=(G,),
        in_specs=[pl.BlockSpec((TM, Cm), lambda i: (i, 0)),
                  pl.BlockSpec((1, Cm), lambda i: (0, 0)),
                  pl.BlockSpec((1, Cm), lambda i: (0, 0)),
                  pl.BlockSpec((Cm, Co), lambda i: (0, 0))],
        out_specs=(pl.BlockSpec((TM, Co), lambda i: (i, 0)),
                   pl.BlockSpec((1, 2, Co), lambda i: (i, 0, 0))),
        out_shape=(jax.ShapeDtypeStruct((Mp, Co), bf),
                   jax.ShapeDtypeStruct((G, 2, Co), jnp.float32)),
        compiler_params=cp,
    )(h2, sc2, sh2, w3p)
    sc3, sh3 = _bn_scale_shift(st3.sum(axis=0), M, g3p, b3p)

    # ---- stage 4: BN3 + identity residual + ReLU --------------------------------
    out2d = pl.pallas_call(
        _bn_residual_relu_kernel,
        grid=(G,),
        in_specs=[pl.BlockSpec((TM, Co), lambda i: (i, 0)),
                  pl.BlockSpec((1, Co), lambda i: (0, 0)),
                  pl.BlockSpec((1, Co), lambda i: (0, 0)),
                  pl.BlockSpec((TM, Co), lambda i: (i, 0))],
        out_specs=pl.BlockSpec((TM, Co), lambda i: (i, 0)),
        out_shape=jax.ShapeDtypeStruct((Mp, Co), jnp.float32),
        compiler_params=cp,
    )(h3, sc3, sh3, x2d)

    return out2d[:M].reshape(N, H, W, Co)[..., :Cout]


# --------------------------- pure-JAX reference -------------------------------
def reference(x, w1, w2_hwio, w3, g1, b1, g2, b2, g3, b3):
    """Same math; bf16 MXU operands + bf16 inter-stage storage, f32 accumulate."""
    bf = jnp.bfloat16
    hi = jax.lax.Precision.HIGHEST
    xr = x.astype(bf).astype(jnp.float32)   # kernel feeds/stores x as bf16

    def bn(h, g, b):
        m = jnp.mean(h, axis=(0, 1, 2), keepdims=True)
        v = jnp.mean((h - m) ** 2, axis=(0, 1, 2), keepdims=True)
        return ((h - m) * jax.lax.rsqrt(v + EPS) * g.reshape(1, 1, 1, -1)
                + b.reshape(1, 1, 1, -1))

    h = jnp.einsum('nhwc,cd->nhwd', xr.astype(bf), w1.astype(bf),
                   preferred_element_type=jnp.float32, precision=hi)
    h = h.astype(bf).astype(jnp.float32)                      # bf16 inter-stage storage
    h = jax.nn.relu(bn(h, g1, b1))
    h = jax.lax.conv_general_dilated(h.astype(bf), w2_hwio.astype(bf), (1, 1), 'SAME',
                                     dimension_numbers=('NHWC', 'HWIO', 'NHWC'),
                                     preferred_element_type=jnp.float32, precision=hi)
    h = h.astype(bf).astype(jnp.float32)
    h = jax.nn.relu(bn(h, g2, b2))
    h = jnp.einsum('nhwc,cd->nhwd', h.astype(bf), w3.astype(bf),
                   preferred_element_type=jnp.float32, precision=hi)
    h = h.astype(bf).astype(jnp.float32)
    h = bn(h, g3, b3)
    return jax.nn.relu(h + xr)


if __name__ == "__main__":
    key = jax.random.PRNGKey(0)
    N, H, W = 2, 8, 8
    planes = 32
    inplanes = planes * 4          # identity residual needs Cin == planes * expansion
    Cmid, Cout = planes, planes * 4

    ks = jax.random.split(key, 10)
    x = jax.random.normal(ks[0], (N, H, W, inplanes), jnp.float32)       # NHWC
    w1 = 0.1 * jax.random.normal(ks[1], (inplanes, Cmid), jnp.float32)
    w2_hwio = 0.1 * jax.random.normal(ks[2], (3, 3, Cmid, Cmid), jnp.float32)
    w3 = 0.1 * jax.random.normal(ks[3], (Cmid, Cout), jnp.float32)
    g1 = 1.0 + 0.1 * jax.random.normal(ks[4], (Cmid,), jnp.float32)
    b1 = 0.1 * jax.random.normal(ks[5], (Cmid,), jnp.float32)
    g2 = 1.0 + 0.1 * jax.random.normal(ks[6], (Cmid,), jnp.float32)
    b2 = 0.1 * jax.random.normal(ks[7], (Cmid,), jnp.float32)
    g3 = 1.0 + 0.1 * jax.random.normal(ks[8], (Cout,), jnp.float32)
    b3 = 0.1 * jax.random.normal(ks[9], (Cout,), jnp.float32)

    out = bottleneck(x, w1, w2_hwio, w3, g1, b1, g2, b2, g3, b3)
    out = jax.block_until_ready(out)

    ref = reference(x, w1, w2_hwio, w3, g1, b1, g2, b2, g3, b3)
    max_err = float(jnp.max(jnp.abs(out - ref)))
    # bf16 inter-stage storage bounds per-element error to ~a few bf16 ulps.
    assert jnp.allclose(out, ref, atol=1e-2, rtol=1e-2), f"max err {max_err}"
    print("KERNEL_OK")
</pallas_src>

<mosaic_0001>
module attributes {stable_mosaic.version = 11 : i64} {
  func.func @_conv1x1_stats_kernel(%arg0: i32, %arg1: memref<256x128xbf16, #tpu.memory_space<vmem>>, %arg2: memref<128x128xbf16, #tpu.memory_space<vmem>>, %arg3: memref<256x128xbf16, #tpu.memory_space<vmem>>, %arg4: memref<1x2x128xf32, #tpu.memory_space<vmem>>) attributes {dimension_semantics = [#tpu.dimension_semantics<parallel>], iteration_bounds = array<i64: 1>, scalar_prefetch = 0 : i64, scratch_operands = 0 : i64, tpu.core_type = #tpu.core_type<tc>, window_params = [{transform_indices = @transform_0, window_bounds = array<i64: 256, 128>}, {pipeline_mode = #tpu.pipeline_mode<synchronous>, transform_indices = @transform_1, window_bounds = array<i64: 128, 128>}, {transform_indices = @transform_2, window_bounds = array<i64: 256, 128>}, {transform_indices = @transform_3, window_bounds = array<i64: 1, 2, 128>}]} {
    %c0 = arith.constant 0 : index
    %c0_0 = arith.constant 0 : index
    %0 = vector.load %arg1[%c0, %c0_0] : memref<256x128xbf16, #tpu.memory_space<vmem>>, vector<256x128xbf16>
    %c0_1 = arith.constant 0 : index
    %c0_2 = arith.constant 0 : index
    %1 = vector.load %arg2[%c0_1, %c0_2] : memref<128x128xbf16, #tpu.memory_space<vmem>>, vector<128x128xbf16>
    %cst = arith.constant dense<0.000000e+00> : vector<256x128xf32>
    %2 = tpu.matmul %0, %1, %cst {dimension_numbers = #tpu.dot_dimension_numbers<[1], [0], [0], [1], [0, 0, 1, 1], [], []>} : vector<256x128xbf16>, vector<128x128xbf16>, vector<256x128xf32> -> vector<256x128xf32>
    %3 = arith.truncf %2 : vector<256x128xf32> to vector<256x128xbf16>
    %c0_3 = arith.constant 0 : index
    %c0_4 = arith.constant 0 : index
    %4 = vector.load %arg3[%c0_3, %c0_4] : memref<256x128xbf16, #tpu.memory_space<vmem>>, vector<256x128xbf16>
    tpu.vector_store %arg3[%c0_3, %c0_4], %3 {strides = array<i32>} : memref<256x128xbf16, #tpu.memory_space<vmem>>, vector<256x128xbf16>,
    %5 = arith.extf %3 : vector<256x128xbf16> to vector<256x128xf32>
    %cst_5 = arith.constant dense<0.000000e+00> : vector<128xf32>
    %6 = vector.multi_reduction <add>, %5, %cst_5 [0] : vector<256x128xf32> to vector<128xf32>
    %7 = vector.shape_cast %6 : vector<128xf32> to vector<1x128xf32>
    %8 = arith.mulf %5, %5 : vector<256x128xf32>
    %cst_6 = arith.constant dense<0.000000e+00> : vector<128xf32>
    %9 = vector.multi_reduction <add>, %8, %cst_6 [0] : vector<256x128xf32> to vector<128xf32>
    %10 = vector.shape_cast %9 : vector<128xf32> to vector<1x128xf32>
    %11 = tpu.concatenate %7, %10 in 0 : vector<1x128xf32>, vector<1x128xf32> -> vector<2x128xf32>
    %12 = vector.shape_cast %11 : vector<2x128xf32> to vector<1x2x128xf32>
    %c0_7 = arith.constant 0 : index
    %c0_8 = arith.constant 0 : index
    %c0_9 = arith.constant 0 : index
    %13 = vector.load %arg4[%c0_7, %c0_8, %c0_9] : memref<1x2x128xf32, #tpu.memory_space<vmem>>, vector<1x2x128xf32>
    tpu.vector_store %arg4[%c0_7, %c0_8, %c0_9], %12 {strides = array<i32>} : memref<1x2x128xf32, #tpu.memory_space<vmem>>, vector<1x2x128xf32>,
    return
  }
  func.func @transform_0(%arg0: i32) -> (i32, i32) {
    %c0_i32 = arith.constant 0 : i32
    %c0_i32_0 = arith.constant 0 : i32
    return %arg0, %c0_i32 : i32, i32
  }
  func.func @transform_1(%arg0: i32) -> (i32, i32) {
    %c0_i32 = arith.constant 0 : i32
    %c0_i32_0 = arith.constant 0 : i32
    %c0_i32_1 = arith.constant 0 : i32
    return %c0_i32, %c0_i32_0 : i32, i32
  }
  func.func @transform_2(%arg0: i32) -> (i32, i32) {
    %c0_i32 = arith.constant 0 : i32
    %c0_i32_0 = arith.constant 0 : i32
    return %arg0, %c0_i32 : i32, i32
  }
  func.func @transform_3(%arg0: i32) -> (i32, i32, i32) {
    %c0_i32 = arith.constant 0 : i32
    %c0_i32_0 = arith.constant 0 : i32
    %c0_i32_1 = arith.constant 0 : i32
    return %arg0, %c0_i32, %c0_i32_0 : i32, i32, i32
  }
}

module attributes {stable_mosaic.version = 11 : i64} {
  func.func @_bn_relu_conv3x3_stats_kernel(%arg0: i32, %arg1: memref<64x128xbf16, #tpu.memory_space<vmem>>, %arg2: memref<1x128xf32, #tpu.memory_space<vmem>>, %arg3: memref<1x128xf32, #tpu.memory_space<vmem>>, %arg4: memref<1152x128xbf16, #tpu.memory_space<vmem>>, %arg5: memref<64x128xbf16, #tpu.memory_space<vmem>>, %arg6: memref<1x2x128xf32, #tpu.memory_space<vmem>>, %arg7: memref<10x10x128xbf16, #tpu.memory_space<vmem>>) attributes {dimension_semantics = [#tpu.dimension_semantics<parallel>], iteration_bounds = array<i64: 2>, scalar_prefetch = 0 : i64, scratch_operands = 1 : i64, tpu.core_type = #tpu.core_type<tc>, window_params = [{transform_indices = @transform_0, window_bounds = array<i64: 64, 128>}, {pipeline_mode = #tpu.pipeline_mode<synchronous>, transform_indices = @transform_1, window_bounds = array<i64: 1, 128>}, {pipeline_mode = #tpu.pipeline_mode<synchronous>, transform_indices = @transform_2, window_bounds = array<i64: 1, 128>}, {pipeline_mode = #tpu.pipeline_mode<synchronous>, transform_indices = @transform_3, window_bounds = array<i64: 1152, 128>}, {transform_indices = @transform_4, window_bounds = array<i64: 64, 128>}, {transform_indices = @transform_5, window_bounds = array<i64: 1, 2, 128>}]} {
    %cst = arith.constant 0.000000e+00 : bf16
    %0 = vector.broadcast %cst : bf16 to vector<1x10x128xbf16>
    %c0 = arith.constant 0 : index
    %c0_0 = arith.constant 0 : index
    %c0_1 = arith.constant 0 : index
    %1 = vector.load %arg7[%c0, %c0_0, %c0_1] : memref<10x10x128xbf16, #tpu.memory_space<vmem>>, vector<1x10x128xbf16>
    tpu.vector_store %arg7[%c0, %c0_0, %c0_1], %0 {strides = array<i32>} : memref<10x10x128xbf16, #tpu.memory_space<vmem>>, vector<1x10x128xbf16>,
    %cst_2 = arith.constant 0.000000e+00 : bf16
    %2 = vector.broadcast %cst_2 : bf16 to vector<1x10x128xbf16>
    %c9 = arith.constant 9 : index
    %c0_3 = arith.constant 0 : index
    %c0_4 = arith.constant 0 : index
    %3 = vector.load %arg7[%c9, %c0_3, %c0_4] : memref<10x10x128xbf16, #tpu.memory_space<vmem>>, vector<1x10x128xbf16>
    tpu.vector_store %arg7[%c9, %c0_3, %c0_4], %2 {strides = array<i32>} : memref<10x10x128xbf16, #tpu.memory_space<vmem>>, vector<1x10x128xbf16>,
    %cst_5 = arith.constant 0.000000e+00 : bf16
    %4 = vector.broadcast %cst_5 : bf16 to vector<10x1x128xbf16>
    %c0_6 = arith.constant 0 : index
    %c0_7 = arith.constant 0 : index
    %c0_8 = arith.constant 0 : index
    %5 = vector.load %arg7[%c0_6, %c0_7, %c0_8] : memref<10x10x128xbf16, #tpu.memory_space<vmem>>, vector<10x1x128xbf16>
    tpu.vector_store %arg7[%c0_6, %c0_7, %c0_8], %4 {strides = array<i32>} : memref<10x10x128xbf16, #tpu.memory_space<vmem>>, vector<10x1x128xbf16>,
    %cst_9 = arith.constant 0.000000e+00 : bf16
    %6 = vector.broadcast %cst_9 : bf16 to vector<10x1x128xbf16>
    %c0_10 = arith.constant 0 : index
    %c9_11 = arith.constant 9 : index
    %c0_12 = arith.constant 0 : index
    %7 = vector.load %arg7[%c0_10, %c9_11, %c0_12] : memref<10x10x128xbf16, #tpu.memory_space<vmem>>, vector<10x1x128xbf16>
    tpu.vector_store %arg7[%c0_10, %c9_11, %c0_12], %6 {strides = array<i32>} : memref<10x10x128xbf16, #tpu.memory_space<vmem>>, vector<10x1x128xbf16>,
    %c0_13 = arith.constant 0 : index
    %c0_14 = arith.constant 0 : index
    %8 = vector.load %arg1[%c0_13, %c0_14] : memref<64x128xbf16, #tpu.memory_space<vmem>>, vector<64x128xbf16>
    %9 = arith.extf %8 : vector<64x128xbf16> to vector<64x128xf32>
    %c0_15 = arith.constant 0 : index
    %c0_16 = arith.constant 0 : index
    %10 = vector.load %arg2[%c0_15, %c0_16] : memref<1x128xf32, #tpu.memory_space<vmem>>, vector<1x128xf32>
    %11 = vector.broadcast %10 : vector<1x128xf32> to vector<64x128xf32>
    %12 = arith.mulf %9, %11 : vector<64x128xf32>
    %c0_17 = arith.constant 0 : index
    %c0_18 = arith.constant 0 : index
    %13 = vector.load %arg3[%c0_17, %c0_18] : memref<1x128xf32, #tpu.memory_space<vmem>>, vector<1x128xf32>
    %14 = vector.broadcast %13 : vector<1x128xf32> to vector<64x128xf32>
    %15 = arith.addf %12, %14 : vector<64x128xf32>
    %cst_19 = arith.constant 0.000000e+00 : f32
    %16 = vector.broadcast %cst_19 : f32 to vector<64x128xf32>
    %17 = arith.maximumf %15, %16 : vector<64x128xf32>
    %18 = vector.shape_cast %17 : vector<64x128xf32> to vector<8x8x128xf32>
    %19 = arith.truncf %18 : vector<8x8x128xf32> to vector<8x8x128xbf16>
    %c1 = arith.constant 1 : index
    %c1_20 = arith.constant 1 : index
    %c0_21 = arith.constant 0 : index
    %20 = vector.load %arg7[%c1, %c1_20, %c0_21] : memref<10x10x128xbf16, #tpu.memory_space<vmem>>, vector<8x8x128xbf16>
    tpu.vector_store %arg7[%c1, %c1_20, %c0_21], %19 {strides = array<i32>} : memref<10x10x128xbf16, #tpu.memory_space<vmem>>, vector<8x8x128xbf16>,
    %cst_22 = arith.constant 0.000000e+00 : f32
    %21 = vector.broadcast %cst_22 : f32 to vector<64x128xf32>
    %c0_23 = arith.constant 0 : index
    %c0_24 = arith.constant 0 : index
    %c0_25 = arith.constant 0 : index
    %22 = vector.load %arg7[%c0_23, %c0_24, %c0_25] : memref<10x10x128xbf16, #tpu.memory_space<vmem>>, vector<8x8x128xbf16>
    %23 = vector.shape_cast %22 : vector<8x8x128xbf16> to vector<64x128xbf16>
    %c0_26 = arith.constant 0 : index
    %c0_27 = arith.constant 0 : index
    %24 = vector.load %arg4[%c0_26, %c0_27] : memref<1152x128xbf16, #tpu.memory_space<vmem>>, vector<128x128xbf16>
    %cst_28 = arith.constant dense<0.000000e+00> : vector<64x128xf32>
    %25 = tpu.matmul %23, %24, %cst_28 {dimension_numbers = #tpu.dot_dimension_numbers<[1], [0], [0], [1], [0, 0, 1, 1], [], []>} : vector<64x128xbf16>, vector<128x128xbf16>, vector<64x128xf32> -> vector<64x128xf32>
    %26 = arith.addf %21, %25 : vector<64x128xf32>
    %c0_29 = arith.constant 0 : index
    %c1_30 = arith.constant 1 : index
    %c0_31 = arith.constant 0 : index
    %27 = vector.load %arg7[%c0_29, %c1_30, %c0_31] : memref<10x10x128xbf16, #tpu.memory_space<vmem>>, vector<8x8x128xbf16>
    %28 = vector.shape_cast %27 : vector<8x8x128xbf16> to vector<64x128xbf16>
    %c128 = arith.constant 128 : index
    %c0_32 = arith.constant 0 : index
    %29 = vector.load %arg4[%c128, %c0_32] : memref<1152x128xbf16, #tpu.memory_space<vmem>>, vector<128x128xbf16>
    %cst_33 = arith.constant dense<0.000000e+00> : vector<64x128xf32>
    %30 = tpu.matmul %28, %29, %cst_33 {dimension_numbers = #tpu.dot_dimension_numbers<[1], [0], [0], [1], [0, 0, 1, 1], [], []>} : vector<64x128xbf16>, vector<128x128xbf16>, vector<64x128xf32> -> vector<64x128xf32>
    %31 = arith.addf %26, %30 : vector<64x128xf32>
    %c0_34 = arith.constant 0 : index
    %c2 = arith.constant 2 : index
    %c0_35 = arith.constant 0 : index
    %32 = vector.load %arg7[%c0_34, %c2, %c0_35] : memref<10x10x128xbf16, #tpu.memory_space<vmem>>, vector<8x8x128xbf16>
    %33 = vector.shape_cast %32 : vector<8x8x128xbf16> to vector<64x128xbf16>
    %c256 = arith.constant 256 : index
    %c0_36 = arith.constant 0 : index
    %34 = vector.load %arg4[%c256, %c0_36] : memref<1152x128xbf16, #tpu.memory_space<vmem>>, vector<128x128xbf16>
    %cst_37 = arith.constant dense<0.000000e+00> : vector<64x128xf32>
    %35 = tpu.matmul %33, %34, %cst_37 {dimension_numbers = #tpu.dot_dimension_numbers<[1], [0], [0], [1], [0, 0, 1, 1], [], []>} : vector<64x128xbf16>, vector<128x128xbf16>, vector<64x128xf32> -> vector<64x128xf32>
    %36 = arith.addf %31, %35 : vector<64x128xf32>
    %c1_38 = arith.constant 1 : index
    %c0_39 = arith.constant 0 : index
    %c0_40 = arith.constant 0 : index
    %37 = vector.load %arg7[%c1_38, %c0_39, %c0_40] : memref<10x10x128xbf16, #tpu.memory_space<vmem>>, vector<8x8x128xbf16>
    %38 = vector.shape_cast %37 : vector<8x8x128xbf16> to vector<64x128xbf16>
    %c384 = arith.constant 384 : index
    %c0_41 = arith.constant 0 : index
    %39 = vector.load %arg4[%c384, %c0_41] : memref<1152x128xbf16, #tpu.memory_space<vmem>>, vector<128x128xbf16>
    %cst_42 = arith.constant dense<0.000000e+00> : vector<64x128xf32>
    %40 = tpu.matmul %38, %39, %cst_42 {dimension_numbers = #tpu.dot_dimension_numbers<[1], [0], [0], [1], [0, 0, 1, 1], [], []>} : vector<64x128xbf16>, vector<128x128xbf16>, vector<64x128xf32> -> vector<64x128xf32>
    %41 = arith.addf %36, %40 : vector<64x128xf32>
    %c1_43 = arith.constant 1 : index
    %c1_44 = arith.constant 1 : index
    %c0_45 = arith.constant 0 : index
    %42 = vector.load %arg7[%c1_43, %c1_44, %c0_45] : memref<10x10x128xbf16, #tpu.memory_space<vmem>>, vector<8x8x128xbf16>
    %43 = vector.shape_cast %42 : vector<8x8x128xbf16> to vector<64x128xbf16>
    %c512 = arith.constant 512 : index
    %c0_46 = arith.constant 0 : index
    %44 = vector.load %arg4[%c512, %c0_46] : memref<1152x128xbf16, #tpu.memory_space<vmem>>, vector<128x128xbf16>
    %cst_47 = arith.constant dense<0.000000e+00> : vector<64x128xf32>
    %45 = tpu.matmul %43, %44, %cst_47 {dimension_numbers = #tpu.dot_dimension_numbers<[1], [0], [0], [1], [0, 0, 1, 1], [], []>} : vector<64x128xbf16>, vector<128x128xbf16>, vector<64x128xf32> -> vector<64x128xf32>
    %46 = arith.addf %41, %45 : vector<64x128xf32>
    %c1_48 = arith.constant 1 : index
    %c2_49 = arith.constant 2 : index
    %c0_50 = arith.constant 0 : index
    %47 = vector.load %arg7[%c1_48, %c2_49, %c0_50] : memref<10x10x128xbf16, #tpu.memory_space<vmem>>, vector<8x8x128xbf16>
    %48 = vector.shape_cast %47 : vector<8x8x128xbf16> to vector<64x128xbf16>
    %c640 = arith.constant 640 : index
    %c0_51 = arith.constant 0 : index
    %49 = vector.load %arg4[%c640, %c0_51] : memref<1152x128xbf16, #tpu.memory_space<vmem>>, vector<128x128xbf16>
    %cst_52 = arith.constant dense<0.000000e+00> : vector<64x128xf32>
    %50 = tpu.matmul %48, %49, %cst_52 {dimension_numbers = #tpu.dot_dimension_numbers<[1], [0], [0], [1], [0, 0, 1, 1], [], []>} : vector<64x128xbf16>, vector<128x128xbf16>, vector<64x128xf32> -> vector<64x128xf32>
    %51 = arith.addf %46, %50 : vector<64x128xf32>
    %c2_53 = arith.constant 2 : index
    %c0_54 = arith.constant 0 : index
    %c0_55 = arith.constant 0 : index
    %52 = vector.load %arg7[%c2_53, %c0_54, %c0_55] : memref<10x10x128xbf16, #tpu.memory_space<vmem>>, vector<8x8x128xbf16>
    %53 = vector.shape_cast %52 : vector<8x8x128xbf16> to vector<64x128xbf16>
    %c768 = arith.constant 768 : index
    %c0_56 = arith.constant 0 : index
    %54 = vector.load %arg4[%c768, %c0_56] : memref<1152x128xbf16, #tpu.memory_space<vmem>>, vector<128x128xbf16>
    %cst_57 = arith.constant dense<0.000000e+00> : vector<64x128xf32>
    %55 = tpu.matmul %53, %54, %cst_57 {dimension_numbers = #tpu.dot_dimension_numbers<[1], [0], [0], [1], [0, 0, 1, 1], [], []>} : vector<64x128xbf16>, vector<128x128xbf16>, vector<64x128xf32> -> vector<64x128xf32>
    %56 = arith.addf %51, %55 : vector<64x128xf32>
    %c2_58 = arith.constant 2 : index
    %c1_59 = arith.constant 1 : index
    %c0_60 = arith.constant 0 : index
    %57 = vector.load %arg7[%c2_58, %c1_59, %c0_60] : memref<10x10x128xbf16, #tpu.memory_space<vmem>>, vector<8x8x128xbf16>
    %58 = vector.shape_cast %57 : vector<8x8x128xbf16> to vector<64x128xbf16>
    %c896 = arith.constant 896 : index
    %c0_61 = arith.constant 0 : index
    %59 = vector.load %arg4[%c896, %c0_61] : memref<1152x128xbf16, #tpu.memory_space<vmem>>, vector<128x128xbf16>
    %cst_62 = arith.constant dense<0.000000e+00> : vector<64x128xf32>
    %60 = tpu.matmul %58, %59, %cst_62 {dimension_numbers = #tpu.dot_dimension_numbers<[1], [0], [0], [1], [0, 0, 1, 1], [], []>} : vector<64x128xbf16>, vector<128x128xbf16>, vector<64x128xf32> -> vector<64x128xf32>
    %61 = arith.addf %56, %60 : vector<64x128xf32>
    %c2_63 = arith.constant 2 : index
    %c2_64 = arith.constant 2 : index
    %c0_65 = arith.constant 0 : index
    %62 = vector.load %arg7[%c2_63, %c2_64, %c0_65] : memref<10x10x128xbf16, #tpu.memory_space<vmem>>, vector<8x8x128xbf16>
    %63 = vector.shape_cast %62 : vector<8x8x128xbf16> to vector<64x128xbf16>
    %c1024 = arith.constant 1024 : index
    %c0_66 = arith.constant 0 : index
    %64 = vector.load %arg4[%c1024, %c0_66] : memref<1152x128xbf16, #tpu.memory_space<vmem>>, vector<128x128xbf16>
    %cst_67 = arith.constant dense<0.000000e+00> : vector<64x128xf32>
    %65 = tpu.matmul %63, %64, %cst_67 {dimension_numbers = #tpu.dot_dimension_numbers<[1], [0], [0], [1], [0, 0, 1, 1], [], []>} : vector<64x128xbf16>, vector<128x128xbf16>, vector<64x128xf32> -> vector<64x128xf32>
    %66 = arith.addf %61, %65 : vector<64x128xf32>
    %67 = arith.truncf %66 : vector<64x128xf32> to vector<64x128xbf16>
    %c0_68 = arith.constant 0 : index
    %c0_69 = arith.constant 0 : index
    %68 = vector.load %arg5[%c0_68, %c0_69] : memref<64x128xbf16, #tpu.memory_space<vmem>>, vector<64x128xbf16>
    tpu.vector_store %arg5[%c0_68, %c0_69], %67 {strides = array<i32>} : memref<64x128xbf16, #tpu.memory_space<vmem>>, vector<64x128xbf16>,
    %69 = arith.extf %67 : vector<64x128xbf16> to vector<64x128xf32>
    %cst_70 = arith.constant dense<0.000000e+00> : vector<128xf32>
    %70 = vector.multi_reduction <add>, %69, %cst_70 [0] : vector<64x128xf32> to vector<128xf32>
    %71 = vector.shape_cast %70 : vector<128xf32> to vector<1x128xf32>
    %72 = arith.mulf %69, %69 : vector<64x128xf32>
    %cst_71 = arith.constant dense<0.000000e+00> : vector<128xf32>
    %73 = vector.multi_reduction <add>, %72, %cst_71 [0] : vector<64x128xf32> to vector<128xf32>
    %74 = vector.shape_cast %73 : vector<128xf32> to vector<1x128xf32>
    %75 = tpu.concatenate %71, %74 in 0 : vector<1x128xf32>, vector<1x128xf32> -> vector<2x128xf32>
    %76 = vector.shape_cast %75 : vector<2x128xf32> to vector<1x2x128xf32>
    %c0_72 = arith.constant 0 : index
    %c0_73 = arith.constant 0 : index
    %c0_74 = arith.constant 0 : index
    %77 = vector.load %arg6[%c0_72, %c0_73, %c0_74] : memref<1x2x128xf32, #tpu.memory_space<vmem>>, vector<1x2x128xf32>
    tpu.vector_store %arg6[%c0_72, %c0_73, %c0_74], %76 {strides = array<i32>} : memref<1x2x128xf32, #tpu.memory_space<vmem>>, vector<1x2x128xf32>,
    return
  }
  func.func @transform_0(%arg0: i32) -> (i32, i32) {
    %c0_i32 = arith.constant 0 : i32
    %c0_i32_0 = arith.constant 0 : i32
    return %arg0, %c0_i32 : i32, i32
  }
  func.func @transform_1(%arg0: i32) -> (i32, i32) {
    %c0_i32 = arith.constant 0 : i32
    %c0_i32_0 = arith.constant 0 : i32
    %c0_i32_1 = arith.constant 0 : i32
    return %c0_i32, %c0_i32_0 : i32, i32
  }
  func.func @transform_2(%arg0: i32) -> (i32, i32) {
    %c0_i32 = arith.constant 0 : i32
    %c0_i32_0 = arith.constant 0 : i32
    %c0_i32_1 = arith.constant 0 : i32
    return %c0_i32, %c0_i32_0 : i32, i32
  }
  func.func @transform_3(%arg0: i32) -> (i32, i32) {
    %c0_i32 = arith.constant 0 : i32
    %c0_i32_0 = arith.constant 0 : i32
    %c0_i32_1 = arith.constant 0 : i32
    return %c0_i32, %c0_i32_0 : i32, i32
  }
  func.func @transform_4(%arg0: i32) -> (i32, i32) {
    %c0_i32 = arith.constant 0 : i32
    %c0_i32_0 = arith.constant 0 : i32
    return %arg0, %c0_i32 : i32, i32
  }
  func.func @transform_5(%arg0: i32) -> (i32, i32, i32) {
    %c0_i32 = arith.constant 0 : i32
    %c0_i32_0 = arith.constant 0 : i32
    %c0_i32_1 = arith.constant 0 : i32
    return %arg0, %c0_i32, %c0_i32_0 : i32, i32, i32
  }
}

module attributes {stable_mosaic.version = 11 : i64} {
  func.func @_bn_relu_conv1x1_stats_kernel(%arg0: i32, %arg1: memref<256x128xbf16, #tpu.memory_space<vmem>>, %arg2: memref<1x128xf32, #tpu.memory_space<vmem>>, %arg3: memref<1x128xf32, #tpu.memory_space<vmem>>, %arg4: memref<128x128xbf16, #tpu.memory_space<vmem>>, %arg5: memref<256x128xbf16, #tpu.memory_space<vmem>>, %arg6: memref<1x2x128xf32, #tpu.memory_space<vmem>>) attributes {dimension_semantics = [#tpu.dimension_semantics<parallel>], iteration_bounds = array<i64: 1>, scalar_prefetch = 0 : i64, scratch_operands = 0 : i64, tpu.core_type = #tpu.core_type<tc>, window_params = [{transform_indices = @transform_0, window_bounds = array<i64: 256, 128>}, {pipeline_mode = #tpu.pipeline_mode<synchronous>, transform_indices = @transform_1, window_bounds = array<i64: 1, 128>}, {pipeline_mode = #tpu.pipeline_mode<synchronous>, transform_indices = @transform_2, window_bounds = array<i64: 1, 128>}, {pipeline_mode = #tpu.pipeline_mode<synchronous>, transform_indices = @transform_3, window_bounds = array<i64: 128, 128>}, {transform_indices = @transform_4, window_bounds = array<i64: 256, 128>}, {transform_indices = @transform_5, window_bounds = array<i64: 1, 2, 128>}]} {
    %c0 = arith.constant 0 : index
    %c0_0 = arith.constant 0 : index
    %0 = vector.load %arg1[%c0, %c0_0] : memref<256x128xbf16, #tpu.memory_space<vmem>>, vector<256x128xbf16>
    %1 = arith.extf %0 : vector<256x128xbf16> to vector<256x128xf32>
    %c0_1 = arith.constant 0 : index
    %c0_2 = arith.constant 0 : index
    %2 = vector.load %arg2[%c0_1, %c0_2] : memref<1x128xf32, #tpu.memory_space<vmem>>, vector<1x128xf32>
    %3 = vector.broadcast %2 : vector<1x128xf32> to vector<256x128xf32>
    %4 = arith.mulf %1, %3 : vector<256x128xf32>
    %c0_3 = arith.constant 0 : index
    %c0_4 = arith.constant 0 : index
    %5 = vector.load %arg3[%c0_3, %c0_4] : memref<1x128xf32, #tpu.memory_space<vmem>>, vector<1x128xf32>
    %6 = vector.broadcast %5 : vector<1x128xf32> to vector<256x128xf32>
    %7 = arith.addf %4, %6 : vector<256x128xf32>
    %cst = arith.constant 0.000000e+00 : f32
    %8 = vector.broadcast %cst : f32 to vector<256x128xf32>
    %9 = arith.maximumf %7, %8 : vector<256x128xf32>
    %c256_i32 = arith.constant 256 : i32
    %10 = arith.muli %arg0, %c256_i32 : i32
    %11 = tpu.iota {dimensions = array<i32: 0>} : vector<256x1xi32>
    %12 = vector.broadcast %10 : i32 to vector<256x1xi32>
    %13 = arith.addi %12, %11 : vector<256x1xi32>
    %c128_i32 = arith.constant 128 : i32
    %14 = vector.broadcast %c128_i32 : i32 to vector<256x1xi32>
    %15 = arith.cmpi slt, %13, %14 : vector<256x1xi32>
    %cst_5 = arith.constant 0.000000e+00 : f32
    %16 = vector.shape_cast %15 : vector<256x1xi1> to vector<256x1xi1>
    %17 = vector.broadcast %16 : vector<256x1xi1> to vector<256x128xi1>
    %18 = vector.broadcast %cst_5 : f32 to vector<256x128xf32>
    %19 = arith.select %17, %9, %18 : vector<256x128xi1>, vector<256x128xf32>
    %20 = arith.truncf %19 : vector<256x128xf32> to vector<256x128xbf16>
    %c0_6 = arith.constant 0 : index
    %c0_7 = arith.constant 0 : index
    %21 = vector.load %arg4[%c0_6, %c0_7] : memref<128x128xbf16, #tpu.memory_space<vmem>>, vector<128x128xbf16>
    %cst_8 = arith.constant dense<0.000000e+00> : vector<256x128xf32>
    %22 = tpu.matmul %20, %21, %cst_8 {dimension_numbers = #tpu.dot_dimension_numbers<[1], [0], [0], [1], [0, 0, 1, 1], [], []>} : vector<256x128xbf16>, vector<128x128xbf16>, vector<256x128xf32> -> vector<256x128xf32>
    %23 = arith.truncf %22 : vector<256x128xf32> to vector<256x128xbf16>
    %c0_9 = arith.constant 0 : index
    %c0_10 = arith.constant 0 : index
    %24 = vector.load %arg5[%c0_9, %c0_10] : memref<256x128xbf16, #tpu.memory_space<vmem>>, vector<256x128xbf16>
    tpu.vector_store %arg5[%c0_9, %c0_10], %23 {strides = array<i32>} : memref<256x128xbf16, #tpu.memory_space<vmem>>, vector<256x128xbf16>,
    %25 = arith.extf %23 : vector<256x128xbf16> to vector<256x128xf32>
    %cst_11 = arith.constant dense<0.000000e+00> : vector<128xf32>
    %26 = vector.multi_reduction <add>, %25, %cst_11 [0] : vector<256x128xf32> to vector<128xf32>
    %27 = vector.shape_cast %26 : vector<128xf32> to vector<1x128xf32>
    %28 = arith.mulf %25, %25 : vector<256x128xf32>
    %cst_12 = arith.constant dense<0.000000e+00> : vector<128xf32>
    %29 = vector.multi_reduction <add>, %28, %cst_12 [0] : vector<256x128xf32> to vector<128xf32>
    %30 = vector.shape_cast %29 : vector<128xf32> to vector<1x128xf32>
    %31 = tpu.concatenate %27, %30 in 0 : vector<1x128xf32>, vector<1x128xf32> -> vector<2x128xf32>
    %32 = vector.shape_cast %31 : vector<2x128xf32> to vector<1x2x128xf32>
    %c0_13 = arith.constant 0 : index
    %c0_14 = arith.constant 0 : index
    %c0_15 = arith.constant 0 : index
    %33 = vector.load %arg6[%c0_13, %c0_14, %c0_15] : memref<1x2x128xf32, #tpu.memory_space<vmem>>, vector<1x2x128xf32>
    tpu.vector_store %arg6[%c0_13, %c0_14, %c0_15], %32 {strides = array<i32>} : memref<1x2x128xf32, #tpu.memory_space<vmem>>, vector<1x2x128xf32>,
    return
  }
  func.func @transform_0(%arg0: i32) -> (i32, i32) {
    %c0_i32 = arith.constant 0 : i32
    %c0_i32_0 = arith.constant 0 : i32
    return %arg0, %c0_i32 : i32, i32
  }
  func.func @transform_1(%arg0: i32) -> (i32, i32) {
    %c0_i32 = arith.constant 0 : i32
    %c0_i32_0 = arith.constant 0 : i32
    %c0_i32_1 = arith.constant 0 : i32
    return %c0_i32, %c0_i32_0 : i32, i32
  }
  func.func @transform_2(%arg0: i32) -> (i32, i32) {
    %c0_i32 = arith.constant 0 : i32
    %c0_i32_0 = arith.constant 0 : i32
    %c0_i32_1 = arith.constant 0 : i32
    return %c0_i32, %c0_i32_0 : i32, i32
  }
  func.func @transform_3(%arg0: i32) -> (i32, i32) {
    %c0_i32 = arith.constant 0 : i32
    %c0_i32_0 = arith.constant 0 : i32
    %c0_i32_1 = arith.constant 0 : i32
    return %c0_i32, %c0_i32_0 : i32, i32
  }
  func.func @transform_4(%arg0: i32) -> (i32, i32) {
    %c0_i32 = arith.constant 0 : i32
    %c0_i32_0 = arith.constant 0 : i32
    return %arg0, %c0_i32 : i32, i32
  }
  func.func @transform_5(%arg0: i32) -> (i32, i32, i32) {
    %c0_i32 = arith.constant 0 : i32
    %c0_i32_0 = arith.constant 0 : i32
    %c0_i32_1 = arith.constant 0 : i32
    return %arg0, %c0_i32, %c0_i32_0 : i32, i32, i32
  }
}

module attributes {stable_mosaic.version = 11 : i64} {
  func.func @_bn_residual_relu_kernel(%arg0: i32, %arg1: memref<256x128xbf16, #tpu.memory_space<vmem>>, %arg2: memref<1x128xf32, #tpu.memory_space<vmem>>, %arg3: memref<1x128xf32, #tpu.memory_space<vmem>>, %arg4: memref<256x128xbf16, #tpu.memory_space<vmem>>, %arg5: memref<256x128xf32, #tpu.memory_space<vmem>>) attributes {dimension_semantics = [#tpu.dimension_semantics<parallel>], iteration_bounds = array<i64: 1>, scalar_prefetch = 0 : i64, scratch_operands = 0 : i64, tpu.core_type = #tpu.core_type<tc>, window_params = [{transform_indices = @transform_0, window_bounds = array<i64: 256, 128>}, {pipeline_mode = #tpu.pipeline_mode<synchronous>, transform_indices = @transform_1, window_bounds = array<i64: 1, 128>}, {pipeline_mode = #tpu.pipeline_mode<synchronous>, transform_indices = @transform_2, window_bounds = array<i64: 1, 128>}, {transform_indices = @transform_3, window_bounds = array<i64: 256, 128>}, {transform_indices = @transform_4, window_bounds = array<i64: 256, 128>}]} {
    %c0 = arith.constant 0 : index
    %c0_0 = arith.constant 0 : index
    %0 = vector.load %arg1[%c0, %c0_0] : memref<256x128xbf16, #tpu.memory_space<vmem>>, vector<256x128xbf16>
    %1 = arith.extf %0 : vector<256x128xbf16> to vector<256x128xf32>
    %c0_1 = arith.constant 0 : index
    %c0_2 = arith.constant 0 : index
    %2 = vector.load %arg2[%c0_1, %c0_2] : memref<1x128xf32, #tpu.memory_space<vmem>>, vector<1x128xf32>
    %3 = vector.broadcast %2 : vector<1x128xf32> to vector<256x128xf32>
    %4 = arith.mulf %1, %3 : vector<256x128xf32>
    %c0_3 = arith.constant 0 : index
    %c0_4 = arith.constant 0 : index
    %5 = vector.load %arg3[%c0_3, %c0_4] : memref<1x128xf32, #tpu.memory_space<vmem>>, vector<1x128xf32>
    %6 = vector.broadcast %5 : vector<1x128xf32> to vector<256x128xf32>
    %7 = arith.addf %4, %6 : vector<256x128xf32>
    %c0_5 = arith.constant 0 : index
    %c0_6 = arith.constant 0 : index
    %8 = vector.load %arg4[%c0_5, %c0_6] : memref<256x128xbf16, #tpu.memory_space<vmem>>, vector<256x128xbf16>
    %9 = arith.extf %8 : vector<256x128xbf16> to vector<256x128xf32>
    %10 = arith.addf %7, %9 : vector<256x128xf32>
    %cst = arith.constant 0.000000e+00 : f32
    %11 = vector.broadcast %cst : f32 to vector<256x128xf32>
    %12 = arith.maximumf %10, %11 : vector<256x128xf32>
    %c0_7 = arith.constant 0 : index
    %c0_8 = arith.constant 0 : index
    %13 = vector.load %arg5[%c0_7, %c0_8] : memref<256x128xf32, #tpu.memory_space<vmem>>, vector<256x128xf32>
    tpu.vector_store %arg5[%c0_7, %c0_8], %12 {strides = array<i32>} : memref<256x128xf32, #tpu.memory_space<vmem>>, vector<256x128xf32>,
    return
  }
  func.func @transform_0(%arg0: i32) -> (i32, i32) {
    %c0_i32 = arith.constant 0 : i32
    %c0_i32_0 = arith.constant 0 : i32
    return %arg0, %c0_i32 : i32, i32
  }
  func.func @transform_1(%arg0: i32) -> (i32, i32) {
    %c0_i32 = arith.constant 0 : i32
    %c0_i32_0 = arith.constant 0 : i32
    %c0_i32_1 = arith.constant 0 : i32
    return %c0_i32, %c0_i32_0 : i32, i32
  }
  func.func @transform_2(%arg0: i32) -> (i32, i32) {
    %c0_i32 = arith.constant 0 : i32
    %c0_i32_0 = arith.constant 0 : i32
    %c0_i32_1 = arith.constant 0 : i32
    return %c0_i32, %c0_i32_0 : i32, i32
  }
  func.func @transform_3(%arg0: i32) -> (i32, i32) {
    %c0_i32 = arith.constant 0 : i32
    %c0_i32_0 = arith.constant 0 : i32
    return %arg0, %c0_i32 : i32, i32
  }
  func.func @transform_4(%arg0: i32) -> (i32, i32) {
    %c0_i32 = arith.constant 0 : i32
    %c0_i32_0 = arith.constant 0 : i32
    return %arg0, %c0_i32 : i32, i32
  }
}

</mosaic_0001>

<bundles_post_ra>
// kernel: bottleneck.7
= control target key start
LH: loop header
LB: loop body
LE: loop exit
PB: predicated region body
PF: predicated region fallthrough
CT: control target
= control target key end

     0   :  { %9 = vsyncpa [#allocation3], 0  ;;  %s859_s0 = inlined_call_operand.hbm [shape: bf16[256,128], index: 0, kind: input, shape index: {}]   ;;  %s860_s1 = inlined_call_operand.hbm [shape: f32[1,128], index: 1, kind: input, shape index: {}]   ;;  %s861_s2 = inlined_call_operand.hbm [shape: f32[1,128], index: 2, kind: input, shape index: {}]   ;;  %s862_s3 = inlined_call_operand.hbm [shape: bf16[256,128], index: 3, kind: input, shape index: {}]   ;;  %s863_s4 = inlined_call_operand.hbm [shape: f32[256,128], index: 4, kind: output, shape index: {}]  }
   0x1   :  { %10 = vsyncpa [#allocation6], 0 }
   0x2   :  { %11 = vsyncpa [#allocation9], 0 }
   0x3   :  { %12 = vsyncpa [#allocation4], 0  ;;  %s677_s15 = smov [#allocation5]   ;;  %s678_s17 = smov [#allocation2]  }
   0x4   :  { %s31_s16 = sshll.u32 %s677_s15, 4  ;;  %s18_s18 = sshll.u32 %s678_s17, 4  ;;  %s32_s16 = int_to_ptr.vmem [resolvable:$true] %s31_s16  ;;  %s711_s18 = int_to_ptr.vmem [resolvable:$true] %s18_s18 }
   0x5   :  { %s559_s21 = scalar_lea.hbm %s860_s1, 16 }
   0x6   :  { %p560_p0 = scmp.ne.s32.totalorder %s860_s1, %s559_s21  ;;  %p563_p1 = scmp.lt.u32.totalorder %s559_s21, %s860_s1 }
   0x8   :  { %p565_p2 = pnand %p563_p1, %p560_p0 }
   0xa   :  { %568 = shalt.err (!%p565_p2)
}
   0xb   :  { %s569_s26 = scalar_lea.vmem %s32_s16, 16  ;;  %s573_s27 = scalar_lea.vmem %s32_s16, 32 }
   0xc   :  { %p570_p3 = scmp.ne.s32.totalorder %s32_s16, %s569_s26  ;;  %p574_p4 = scmp.lt.s32.totalorder %s32_s16, %s32_s16 }
   0xd   :  { %p575_p5 = scmp.lt.s32.totalorder %s573_s27, %s569_s26 }
   0xf   :  { %p576_p6 = por %p575_p5, %p574_p4 }
  0x11   :  { %p577_p7 = pnand %p576_p6, %p570_p3 }
  0x13   :  { %580 = shalt.err (!%p577_p7)
}
  0x14   :  { %34 = dma.hbm_to_vmem [thread:$0]  %s860_s1, 16, %s32_s16, [#allocation6]  }
  0x15   :  { %s581_s6 = scalar_lea.hbm %s859_s0, 2048 }
  0x16   :  { %p582_p8 = scmp.ne.s32.totalorder %s859_s0, %s581_s6  ;;  %p585_p9 = scmp.lt.u32.totalorder %s581_s6, %s859_s0 }
  0x18   :  { %p587_p10 = pnand %p585_p9, %p582_p8 }
  0x1a   :  { %590 = shalt.err (!%p587_p10)
}
  0x1b   :  { %s591_s11 = scalar_lea.vmem %s711_s18, 2048  ;;  %p596_p12 = scmp.lt.s32.totalorder %s711_s18, %s711_s18 }
  0x1c   :  { %p592_p11 = scmp.ne.s32.totalorder %s711_s18, %s591_s11  ;;  %p597_p13 = scmp.lt.s32.totalorder %s591_s11, %s591_s11 }
  0x1e   :  { %p598_p0 = por %p597_p13, %p596_p12 }
  0x20   :  { %p599_p1 = pnand %p598_p0, %p592_p11 }
  0x22   :  { %602 = shalt.err (!%p599_p1)
}
  0x23   :  { %s679_s1 = smov 64   ;;  %s680_s12 = smov 4  }
  0x24   :  { %24 = dma.hbm_to_vmem [thread:$0]  %s859_s0, 2048, %s711_s18, [#allocation3], %s679_s1, %s679_s1, %s680_s12  }
  0x25   :  { %s681_s15 = smov [#allocation7]   ;;  %s682_s17 = smov [#allocation8]  }
  0x26   :  { %s41_s16 = sshll.u32 %s681_s15, 4  ;;  %s50_s19 = sshll.u32 %s682_s17, 4  ;;  %s42_s16 = int_to_ptr.vmem [resolvable:$true] %s41_s16  ;;  %s745_s19 = int_to_ptr.vmem [resolvable:$true] %s50_s19 }
  0x27   :  { %s603_s22 = scalar_lea.hbm %s861_s2, 16 }
  0x28   :  { %p604_p2 = scmp.ne.s32.totalorder %s861_s2, %s603_s22  ;;  %p607_p3 = scmp.lt.u32.totalorder %s603_s22, %s861_s2 }
  0x2a   :  { %p609_p4 = pnand %p607_p3, %p604_p2 }
  0x2c   :  { %612 = shalt.err (!%p609_p4)
}
  0x2d   :  { %s613_s0 = scalar_lea.vmem %s42_s16, 16  ;;  %s617_s18 = scalar_lea.vmem %s42_s16, 32 }
  0x2e   :  { %p614_p5 = scmp.ne.s32.totalorder %s42_s16, %s613_s0  ;;  %p618_p6 = scmp.lt.s32.totalorder %s42_s16, %s42_s16 }
  0x2f   :  { %p619_p7 = scmp.lt.s32.totalorder %s617_s18, %s613_s0 }
  0x31   :  { %p620_p8 = por %p619_p7, %p618_p6 }
  0x33   :  { %p621_p9 = pnand %p620_p8, %p614_p5 }
  0x35   :  { %624 = shalt.err (!%p621_p9)
}
  0x36   :  { %44 = dma.hbm_to_vmem [thread:$0]  %s861_s2, 16, %s42_s16, [#allocation6]  }
  0x37   :  { %s625_s5 = scalar_lea.hbm %s862_s3, 2048 }
  0x38   :  { %p626_p10 = scmp.ne.s32.totalorder %s862_s3, %s625_s5  ;;  %p629_p11 = scmp.lt.u32.totalorder %s625_s5, %s862_s3 }
  0x3a   :  { %p631_p12 = pnand %p629_p11, %p626_p10 }
  0x3c   :  { %634 = shalt.err (!%p631_p12)
}
  0x3d   :  { %s635_s10 = scalar_lea.vmem %s745_s19, 2048  ;;  %p640_p0 = scmp.lt.s32.totalorder %s745_s19, %s745_s19 }
  0x3e   :  { %p636_p13 = scmp.ne.s32.totalorder %s745_s19, %s635_s10  ;;  %p641_p1 = scmp.lt.s32.totalorder %s635_s10, %s635_s10 }
  0x40   :  { %p642_p2 = por %p641_p1, %p640_p0 }
  0x42   :  { %p643_p3 = pnand %p642_p2, %p636_p13 }
  0x44   :  { %646 = shalt.err (!%p643_p3)
}
  0x45   :  { %56 = dma.hbm_to_vmem [thread:$0]  %s862_s3, 2048, %s745_s19, [#allocation9], %s679_s1, %s679_s1, %s680_s12  }
  0x46   :  { %669 = dma.done.wait [#allocation3], 2048  }
  0x47   :  { %670 = vsyncadd [#allocation3], 4294965248 }
  0x48   :  { %671 = dma.done.wait [#allocation6], 32  }
  0x49   :  { %672 = vsyncadd [#allocation6], 4294967264 }
  0x4a   :  { %673 = dma.done.wait [#allocation9], 2048  }
  0x4b   :  { %674 = vsyncadd [#allocation9], 4294965248  ;;  %v393_v0 = vld [vmem:[#allocation2] sm:$0xff]   ;;  %v520_v5 = vld [vmem:[#allocation2 + $0x8] sm:$0xff]   ;;  %s683_s3 = smov [#allocation10]  }
  0x4c   :  { %v779_v1 = vld [vmem:[#allocation5] ss:$0 sm:$0xff]  ;;  %v394_v2 = vunpack.c.l.bf16 %v393_v0  ;;  %v457_v3 = vld [vmem:[#allocation8] sm:$0xff]   ;;  %v395_v4 = vunpack.c.h.bf16 %v393_v0  ;;  %v535_v6 = vld [vmem:[#allocation8 + $0x8] sm:$0xff]   ;;  %v398_v10 = vunpack.c.l.bf16 %v520_v5  ;;  %v399_v16 = vunpack.c.h.bf16 %v520_v5  ;;  %s376_s1 = sshll.u32 %s683_s3, 4  ;;  %s377_s1 = int_to_ptr.vmem [resolvable:$true] %s376_s1 }
  0x4d   :  { %v781_v7 = vld [vmem:[#allocation7] ss:$0 sm:$0xff]  ;;  %v458_v8 = vunpack.c.l.bf16 %v457_v3  ;;  %v459_v9 = vunpack.c.h.bf16 %v457_v3  ;;  %v462_v11 = vunpack.c.l.bf16 %v535_v6  ;;  %v521_v12 = vld [vmem:[#allocation2 + $0x10] sm:$0xff]   ;;  %v463_v17 = vunpack.c.h.bf16 %v535_v6  ;;  %v522_v18 = vld [vmem:[#allocation2 + $0x18] sm:$0xff]   ;;  %s647_s12 = scalar_lea.vmem %s377_s1, 4096  ;;  %p652_p5 = scmp.lt.s32.totalorder %s377_s1, %s377_s1 }
  0x4e   :  { %v536_v13 = vld [vmem:[#allocation8 + $0x10] sm:$0xff]   ;;  %v140_v14 = vmul.f32 %v394_v2, %v779_v1  ;;  %v141_v15 = vmul.f32 %v395_v4, %v779_v1  ;;  %v142_v19 = vmul.f32 %v398_v10, %v779_v1  ;;  %v402_v20 = vunpack.c.l.bf16 %v521_v12  ;;  %v537_v23 = vld [vmem:[#allocation8 + $0x18] sm:$0xff]   ;;  %v538_v45 = vld [vmem:[#allocation8 + $0x20] sm:$0xff]   ;;  %p648_p4 = scmp.ne.s32.totalorder %s377_s1, %s647_s12  ;;  %p653_p6 = scmp.lt.s32.totalorder %s647_s12, %s647_s12 }
  0x4f   :  { %v466_v21 = vunpack.c.l.bf16 %v536_v13  ;;  %v403_v22 = vunpack.c.h.bf16 %v521_v12  ;;  %v143_v26 = vmul.f32 %v399_v16, %v779_v1  ;;  %v467_v27 = vunpack.c.h.bf16 %v536_v13  ;;  %v523_v40 = vld [vmem:[#allocation2 + $0x20] sm:$0xff]   ;;  %v524_v54 = vld [vmem:[#allocation2 + $0x28] sm:$0xff]   ;;  %v525_v0 = vld [vmem:[#allocation2 + $0x30] sm:$0xff]  }
  0x50   :  { %v179_v24 = vadd.f32 %v781_v7, %v140_v14  ;;  %v180_v25 = vadd.f32 %v781_v7, %v141_v15  ;;  %v181_v28 = vadd.f32 %v781_v7, %v142_v19  ;;  %v144_v29 = vmul.f32 %v402_v20, %v779_v1  ;;  %v539_v55 = vld [vmem:[#allocation8 + $0x28] sm:$0xff]   ;;  %v540_v2 = vld [vmem:[#allocation8 + $0x30] sm:$0xff]   ;;  %p654_p7 = por %p653_p6, %p652_p5 }
  0x51   :  { %v145_v30 = vmul.f32 %v403_v22, %v779_v1  ;;  %v406_v31 = vunpack.c.l.bf16 %v522_v18  ;;  %v182_v34 = vadd.f32 %v781_v7, %v143_v26  ;;  %v470_v35 = vunpack.c.l.bf16 %v537_v23  ;;  %v526_v16 = vld [vmem:[#allocation2 + $0x38] sm:$0xff]  }
  0x52   :  { %v275_v32 = vadd.f32 %v458_v8, %v179_v24  ;;  %v276_v33 = vadd.f32 %v459_v9, %v180_v25  ;;  %v277_v36 = vadd.f32 %v462_v11, %v181_v28  ;;  %v183_v37 = vadd.f32 %v781_v7, %v144_v29  ;;  %p655_p8 = pnand %p654_p7, %p648_p4 }
  0x53   :  { %v184_v38 = vadd.f32 %v781_v7, %v145_v30  ;;  %v146_v39 = vmul.f32 %v406_v31, %v779_v1  ;;  %v278_v43 = vadd.f32 %v463_v17, %v182_v34  ;;  %v407_v44 = vunpack.c.h.bf16 %v522_v18  ;;  %v527_v34 = vld [vmem:[#allocation2 + $0x40] sm:$0xff]  }
  0x54   :  { %v307_v41 = vmax.f32 %v275_v32, 0.0  ;;  %v308_v42 = vmax.f32 %v276_v33, 0.0  ;;  %v309_v46 = vmax.f32 %v277_v36, 0.0  ;;  %v279_v47 = vadd.f32 %v466_v21, %v183_v37  ;;  %v541_v21 = vld [vmem:[#allocation8 + $0x38] sm:$0xff]  }
  0x55   :  { %v280_v48 = vadd.f32 %v467_v27, %v184_v38  ;;  %v185_v49 = vadd.f32 %v781_v7, %v146_v39  ;;  %v310_v50 = vmax.f32 %v278_v43, 0.0  ;;  %v147_v51 = vmul.f32 %v407_v44, %v779_v1  ;;  %v542_v39 = vld [vmem:[#allocation8 + $0x40] sm:$0xff]  }
  0x56   :  { %339 = vst [vmem:[#allocation10] sm:$0xff] %v307_v41  ;;  %340 = vst [vmem:[#allocation10 + $0x8] sm:$0xff] %v308_v42  ;;  %v471_v52 = vunpack.c.h.bf16 %v537_v23  ;;  %v410_v53 = vunpack.c.l.bf16 %v523_v40  ;;  %v311_v56 = vmax.f32 %v279_v47, 0.0  ;;  %v474_v59 = vunpack.c.l.bf16 %v538_v45 }
  0x57   :  { %341 = vst [vmem:[#allocation10 + $0x10] sm:$0xff] %v309_v46  ;;  %v312_v57 = vmax.f32 %v280_v48, 0.0  ;;  %v281_v58 = vadd.f32 %v470_v35, %v185_v49  ;;  %342 = vst [vmem:[#allocation10 + $0x18] sm:$0xff] %v310_v50  ;;  %v186_v60 = vadd.f32 %v781_v7, %v147_v51  ;;  %v411_v62 = vunpack.c.h.bf16 %v523_v40  ;;  %v528_v48 = vld [vmem:[#allocation2 + $0x48] sm:$0xff]  }
  0x58   :  { %v148_v61 = vmul.f32 %v410_v53, %v779_v1  ;;  %v475_v63 = vunpack.c.h.bf16 %v538_v45  ;;  %343 = vst [vmem:[#allocation10 + $0x20] sm:$0xff] %v311_v56  ;;  %v414_v4 = vunpack.c.l.bf16 %v524_v54  ;;  %v478_v5 = vunpack.c.l.bf16 %v539_v55  ;;  %v543_v49 = vld [vmem:[#allocation8 + $0x48] sm:$0xff]  }
  0x59   :  { %344 = vst [vmem:[#allocation10 + $0x28] sm:$0xff] %v312_v57  ;;  %v313_v3 = vmax.f32 %v281_v58, 0.0  ;;  %v415_v6 = vunpack.c.h.bf16 %v524_v54  ;;  %v282_v8 = vadd.f32 %v471_v52, %v186_v60  ;;  %v149_v10 = vmul.f32 %v411_v62, %v779_v1  ;;  %v529_v58 = vld [vmem:[#allocation2 + $0x50] sm:$0xff]  }
  0x5a   :  { %v187_v9 = vadd.f32 %v781_v7, %v148_v61  ;;  %v479_v11 = vunpack.c.h.bf16 %v539_v55  ;;  %v150_v12 = vmul.f32 %v414_v4, %v779_v1  ;;  %v418_v14 = vunpack.c.l.bf16 %v525_v0 }
  0x5b   :  { %345 = vst [vmem:[#allocation10 + $0x30] sm:$0xff] %v313_v3  ;;  %v151_v13 = vmul.f32 %v415_v6, %v779_v1  ;;  %v482_v15 = vunpack.c.l.bf16 %v540_v2  ;;  %v314_v17 = vmax.f32 %v282_v8, 0.0  ;;  %v188_v19 = vadd.f32 %v781_v7, %v149_v10  ;;  %v530_v10 = vld [vmem:[#allocation2 + $0x58] sm:$0xff]  }
  0x5c   :  { %v283_v18 = vadd.f32 %v474_v59, %v187_v9  ;;  %v419_v20 = vunpack.c.h.bf16 %v525_v0  ;;  %v189_v22 = vadd.f32 %v781_v7, %v150_v12  ;;  %v152_v24 = vmul.f32 %v418_v14, %v779_v1 }
  0x5d   :  { %v190_v23 = vadd.f32 %v781_v7, %v151_v13  ;;  %v483_v25 = vunpack.c.h.bf16 %v540_v2  ;;  %346 = vst [vmem:[#allocation10 + $0x38] sm:$0xff] %v314_v17  ;;  %v284_v27 = vadd.f32 %v475_v63, %v188_v19  ;;  %v422_v29 = vunpack.c.l.bf16 %v526_v16  ;;  %v544_v63 = vld [vmem:[#allocation8 + $0x50] sm:$0xff]   ;;  %v545_v19 = vld [vmem:[#allocation8 + $0x58] sm:$0xff]  }
  0x5e   :  { %v315_v26 = vmax.f32 %v283_v18, 0.0  ;;  %v153_v28 = vmul.f32 %v419_v20, %v779_v1  ;;  %v285_v30 = vadd.f32 %v478_v5, %v189_v22  ;;  %v191_v32 = vadd.f32 %v781_v7, %v152_v24 }
  0x5f   :  { %v286_v31 = vadd.f32 %v479_v11, %v190_v23  ;;  %v486_v33 = vunpack.c.l.bf16 %v541_v21  ;;  %v316_v35 = vmax.f32 %v284_v27, 0.0  ;;  %v154_v37 = vmul.f32 %v422_v29, %v779_v1 }
  0x60   :  { %347 = vst [vmem:[#allocation10 + $0x40] sm:$0xff] %v315_v26  ;;  %v192_v36 = vadd.f32 %v781_v7, %v153_v28  ;;  %v423_v38 = vunpack.c.h.bf16 %v526_v16  ;;  %v317_v40 = vmax.f32 %v285_v30, 0.0  ;;  %v287_v42 = vadd.f32 %v482_v15, %v191_v32  ;;  %v531_v28 = vld [vmem:[#allocation2 + $0x60] sm:$0xff]  }
  0x61   :  { %v318_v41 = vmax.f32 %v286_v31, 0.0  ;;  %v487_v43 = vunpack.c.h.bf16 %v541_v21  ;;  %348 = vst [vmem:[#allocation10 + $0x48] sm:$0xff] %v316_v35  ;;  %v193_v45 = vadd.f32 %v781_v7, %v154_v37  ;;  %v426_v47 = vunpack.c.l.bf16 %v527_v34 }
  0x62   :  { %v288_v44 = vadd.f32 %v483_v25, %v192_v36  ;;  %v155_v46 = vmul.f32 %v423_v38, %v779_v1  ;;  %349 = vst [vmem:[#allocation10 + $0x50] sm:$0xff] %v317_v40  ;;  %v319_v50 = vmax.f32 %v287_v42, 0.0  ;;  %v490_v51 = vunpack.c.l.bf16 %v542_v39  ;;  %v532_v42 = vld [vmem:[#allocation2 + $0x68] sm:$0xff]  }
  0x63   :  { %350 = vst [vmem:[#allocation10 + $0x58] sm:$0xff] %v318_v41  ;;  %v427_v52 = vunpack.c.h.bf16 %v527_v34  ;;  %v491_v53 = vunpack.c.h.bf16 %v542_v39  ;;  %v289_v55 = vadd.f32 %v486_v33, %v193_v45  ;;  %v156_v57 = vmul.f32 %v426_v47, %v779_v1  ;;  %v546_v33 = vld [vmem:[#allocation8 + $0x60] sm:$0xff]  }
  0x64   :  { %v320_v54 = vmax.f32 %v288_v44, 0.0  ;;  %v194_v56 = vadd.f32 %v781_v7, %v155_v46  ;;  %351 = vst [vmem:[#allocation10 + $0x60] sm:$0xff] %v319_v50  ;;  %v430_v60 = vunpack.c.l.bf16 %v528_v48  ;;  %v494_v61 = vunpack.c.l.bf16 %v543_v49 }
  0x65   :  { %v157_v59 = vmul.f32 %v427_v52, %v779_v1  ;;  %v431_v62 = vunpack.c.h.bf16 %v528_v48  ;;  %v321_v0 = vmax.f32 %v289_v55, 0.0  ;;  %v195_v3 = vadd.f32 %v781_v7, %v156_v57  ;;  %v533_v52 = vld [vmem:[#allocation2 + $0x70] sm:$0xff]  }
  0x66   :  { %352 = vst [vmem:[#allocation10 + $0x68] sm:$0xff] %v320_v54  ;;  %v290_v2 = vadd.f32 %v487_v43, %v194_v56  ;;  %v495_v4 = vunpack.c.h.bf16 %v543_v49  ;;  %v158_v6 = vmul.f32 %v430_v60, %v779_v1  ;;  %v434_v9 = vunpack.c.l.bf16 %v529_v58  ;;  %v547_v43 = vld [vmem:[#allocation8 + $0x68] sm:$0xff]   ;;  %v548_v57 = vld [vmem:[#allocation8 + $0x70] sm:$0xff]  }
  0x67   :  { %v196_v5 = vadd.f32 %v781_v7, %v157_v59  ;;  %v159_v8 = vmul.f32 %v431_v62, %v779_v1  ;;  %353 = vst [vmem:[#allocation10 + $0x70] sm:$0xff] %v321_v0  ;;  %v291_v12 = vadd.f32 %v490_v51, %v195_v3  ;;  %v498_v13 = vunpack.c.l.bf16 %v544_v63  ;;  %v534_v3 = vld [vmem:[#allocation2 + $0x78] sm:$0xff]  }
  0x68   :  { %v322_v11 = vmax.f32 %v290_v2, 0.0  ;;  %v435_v14 = vunpack.c.h.bf16 %v529_v58  ;;  %v197_v16 = vadd.f32 %v781_v7, %v158_v6  ;;  %v160_v18 = vmul.f32 %v434_v9, %v779_v1 }
  0x69   :  { %v292_v15 = vadd.f32 %v491_v53, %v196_v5  ;;  %v198_v17 = vadd.f32 %v781_v7, %v159_v8  ;;  %v323_v20 = vmax.f32 %v291_v12, 0.0  ;;  %v499_v22 = vunpack.c.h.bf16 %v544_v63 }
  0x6a   :  { %354 = vst [vmem:[#allocation10 + $0x78] sm:$0xff] %v322_v11  ;;  %v161_v21 = vmul.f32 %v435_v14, %v779_v1  ;;  %v438_v23 = vunpack.c.l.bf16 %v530_v10  ;;  %v293_v25 = vadd.f32 %v494_v61, %v197_v16  ;;  %v199_v27 = vadd.f32 %v781_v7, %v160_v18 }
  0x6b   :  { %v324_v24 = vmax.f32 %v292_v15, 0.0  ;;  %v294_v26 = vadd.f32 %v495_v4, %v198_v17  ;;  %355 = vst [vmem:[#allocation10 + $0x80] sm:$0xff] %v323_v20  ;;  %v502_v31 = vunpack.c.l.bf16 %v545_v19  ;;  %v439_v32 = vunpack.c.h.bf16 %v530_v10 }
  0x6c   :  { %v200_v29 = vadd.f32 %v781_v7, %v161_v21  ;;  %v162_v30 = vmul.f32 %v438_v23, %v779_v1  ;;  %v325_v34 = vmax.f32 %v293_v25, 0.0  ;;  %v295_v36 = vadd.f32 %v498_v13, %v199_v27  ;;  %v549_v13 = vld [vmem:[#allocation8 + $0x78] sm:$0xff]  }
  0x6d   :  { %356 = vst [vmem:[#allocation10 + $0x88] sm:$0xff] %v324_v24  ;;  %v326_v35 = vmax.f32 %v294_v26, 0.0  ;;  %v503_v37 = vunpack.c.h.bf16 %v545_v19  ;;  %v163_v40 = vmul.f32 %v439_v32, %v779_v1  ;;  %v442_v41 = vunpack.c.l.bf16 %v531_v28 }
  0x6e   :  { %v296_v38 = vadd.f32 %v499_v22, %v200_v29  ;;  %v201_v39 = vadd.f32 %v781_v7, %v162_v30  ;;  %357 = vst [vmem:[#allocation10 + $0x90] sm:$0xff] %v325_v34  ;;  %v327_v44 = vmax.f32 %v295_v36, 0.0  ;;  %v506_v45 = vunpack.c.l.bf16 %v546_v33 }
  0x6f   :  { %358 = vst [vmem:[#allocation10 + $0x98] sm:$0xff] %v326_v35  ;;  %v443_v46 = vunpack.c.h.bf16 %v531_v28  ;;  %v507_v47 = vunpack.c.h.bf16 %v546_v33  ;;  %v202_v50 = vadd.f32 %v781_v7, %v163_v40  ;;  %v164_v51 = vmul.f32 %v442_v41, %v779_v1 }
  0x70   :  { %v328_v48 = vmax.f32 %v296_v38, 0.0  ;;  %v297_v49 = vadd.f32 %v502_v31, %v201_v39  ;;  %359 = vst [vmem:[#allocation10 + $0xa0] sm:$0xff] %v327_v44  ;;  %v446_v54 = vunpack.c.l.bf16 %v532_v42  ;;  %v510_v55 = vunpack.c.l.bf16 %v547_v43 }
  0x71   :  { %v165_v53 = vmul.f32 %v443_v46, %v779_v1  ;;  %v447_v56 = vunpack.c.h.bf16 %v532_v42  ;;  %v298_v59 = vadd.f32 %v503_v37, %v202_v50  ;;  %v203_v60 = vadd.f32 %v781_v7, %v164_v51 }
  0x72   :  { %360 = vst [vmem:[#allocation10 + $0xa8] sm:$0xff] %v328_v48  ;;  %v329_v58 = vmax.f32 %v297_v49, 0.0  ;;  %v511_v61 = vunpack.c.h.bf16 %v547_v43  ;;  %v166_v63 = vmul.f32 %v446_v54, %v779_v1  ;;  %v450_v2 = vunpack.c.l.bf16 %v533_v52 }
  0x73   :  { %v204_v62 = vadd.f32 %v781_v7, %v165_v53  ;;  %v167_v0 = vmul.f32 %v447_v56, %v779_v1  ;;  %v330_v4 = vmax.f32 %v298_v59, 0.0  ;;  %v299_v5 = vadd.f32 %v506_v45, %v203_v60 }
  0x74   :  { %361 = vst [vmem:[#allocation10 + $0xb0] sm:$0xff] %v329_v58  ;;  %v514_v6 = vunpack.c.l.bf16 %v548_v57  ;;  %v451_v8 = vunpack.c.h.bf16 %v533_v52  ;;  %v205_v10 = vadd.f32 %v781_v7, %v166_v63  ;;  %v168_v12 = vmul.f32 %v450_v2, %v779_v1 }
  0x75   :  { %v300_v9 = vadd.f32 %v507_v47, %v204_v62  ;;  %v206_v11 = vadd.f32 %v781_v7, %v167_v0  ;;  %362 = vst [vmem:[#allocation10 + $0xb8] sm:$0xff] %v330_v4  ;;  %v331_v14 = vmax.f32 %v299_v5, 0.0  ;;  %v515_v16 = vunpack.c.h.bf16 %v548_v57 }
  0x76   :  { %v169_v15 = vmul.f32 %v451_v8, %v779_v1  ;;  %v454_v17 = vunpack.c.l.bf16 %v534_v3  ;;  %v301_v19 = vadd.f32 %v510_v55, %v205_v10  ;;  %v207_v21 = vadd.f32 %v781_v7, %v168_v12 }
  0x77   :  { %v332_v18 = vmax.f32 %v300_v9, 0.0  ;;  %v302_v20 = vadd.f32 %v511_v61, %v206_v11  ;;  %363 = vst [vmem:[#allocation10 + $0xc0] sm:$0xff] %v331_v14  ;;  %v518_v24 = vunpack.c.l.bf16 %v549_v13  ;;  %v455_v25 = vunpack.c.h.bf16 %v534_v3 }
  0x78   :  { %v208_v22 = vadd.f32 %v781_v7, %v169_v15  ;;  %v170_v23 = vmul.f32 %v454_v17, %v779_v1  ;;  %v333_v26 = vmax.f32 %v301_v19, 0.0  ;;  %v303_v28 = vadd.f32 %v514_v6, %v207_v21 }
  0x79   :  { %364 = vst [vmem:[#allocation10 + $0xc8] sm:$0xff] %v332_v18  ;;  %v334_v27 = vmax.f32 %v302_v20, 0.0  ;;  %v171_v31 = vmul.f32 %v455_v25, %v779_v1  ;;  %v519_v32 = vunpack.c.h.bf16 %v549_v13 }
  0x7a   :  { %v304_v29 = vadd.f32 %v515_v16, %v208_v22  ;;  %v209_v30 = vadd.f32 %v781_v7, %v170_v23  ;;  %365 = vst [vmem:[#allocation10 + $0xd0] sm:$0xff] %v333_v26  ;;  %v335_v33 = vmax.f32 %v303_v28, 0.0 }
  0x7b   :  { %366 = vst [vmem:[#allocation10 + $0xd8] sm:$0xff] %v334_v27  ;;  %v210_v36 = vadd.f32 %v781_v7, %v171_v31 }
  0x7c   :  { %v336_v34 = vmax.f32 %v304_v29, 0.0  ;;  %v305_v35 = vadd.f32 %v518_v24, %v209_v30  ;;  %367 = vst [vmem:[#allocation10 + $0xe0] sm:$0xff] %v335_v33 }
  0x7d   :  { %v306_v38 = vadd.f32 %v519_v32, %v210_v36 }
  0x7e   :  { %368 = vst [vmem:[#allocation10 + $0xe8] sm:$0xff] %v336_v34  ;;  %v337_v37 = vmax.f32 %v305_v35, 0.0 }
  0x7f   :  { %v338_v39 = vmax.f32 %v306_v38, 0.0 }
  0x80   :  { %369 = vst [vmem:[#allocation10 + $0xf0] sm:$0xff] %v337_v37 }
  0x81   :  { %370 = vst [vmem:[#allocation10 + $0xf8] sm:$0xff] %v338_v39 }
  0x82   :  { %658 = shalt.err (!%p655_p8)
}
  0x83   :  { %s659_s15 = scalar_lea.hbm %s863_s4, 4096 }
  0x84   :  { %p660_p9 = scmp.ne.s32.totalorder %s863_s4, %s659_s15  ;;  %p663_p10 = scmp.lt.u32.totalorder %s659_s15, %s863_s4 }
  0x86   :  { %p665_p11 = pnand %p663_p10, %p660_p9 }
  0x88   :  { %668 = shalt.err (!%p665_p11)
}
  0x89   :  { %s684_s21 = smov 128   ;;  %s685_s22 = smov 8  }
  0x8a   :  { %382 = dma.vmem_to_hbm [thread:$0]  %s377_s1, 4096, %s863_s4, [#allocation4], %s684_s21, %s684_s21, %s685_s22  }
  0x8b   :  { %675 = dma.done.wait [#allocation4], 4096  }
  0x8c   :  { %676 = vsyncadd [#allocation4], 4294963200 }
  0x8d   :  { %386 = vsyncpa [#allocation3], 1 }
  0x8e   :  { %387 = vsyncpa [#allocation6], 1 }
  0x8f   :  { %388 = vsyncpa [#allocation9], 1 }
  0x90   :  { %389 = vsyncpa [#allocation4], 1 }

// kernel: bottleneck.6
= control target key start
LH: loop header
LB: loop body
LE: loop exit
PB: predicated region body
PF: predicated region fallthrough
CT: control target
= control target key end

     0   :  { %11 = vsyncpa [#allocation3], 0  ;;  %s1690_s0 = inlined_call_operand.hbm [shape: bf16[256,128], index: 0, kind: input, shape index: {}]   ;;  %s1691_s1 = inlined_call_operand.hbm [shape: f32[1,128], index: 1, kind: input, shape index: {}]   ;;  %s1692_s2 = inlined_call_operand.hbm [shape: f32[1,128], index: 2, kind: input, shape index: {}]   ;;  %s1693_s3 = inlined_call_operand.hbm [shape: bf16[128,128], index: 3, kind: input, shape index: {}]   ;;  %s1694_s4 = inlined_call_operand.hbm [shape: bf16[256,128], index: 4, kind: output, shape index: {0}]   ;;  %s1695_s5 = inlined_call_operand.hbm [shape: f32[1,2,128], index: 5, kind: output, shape index: {1}]  }
   0x1   :  { %12 = vsyncpa [#allocation6], 0 }
   0x2   :  { %13 = vsyncpa [#allocation9], 0 }
   0x3   :  { %14 = vsyncpa [#allocation4], 0 }
   0x4   :  { %15 = vsyncpa [#allocation12], 0  ;;  %s1472_s18 = smov [#allocation5]   ;;  %s1473_s20 = smov [#allocation2]  }
   0x5   :  { %s34_s19 = sshll.u32 %s1472_s18, 4  ;;  %s21_s21 = sshll.u32 %s1473_s20, 4  ;;  %s35_s19 = int_to_ptr.vmem [resolvable:$true] %s34_s19  ;;  %s1511_s21 = int_to_ptr.vmem [resolvable:$true] %s21_s21 }
   0x6   :  { %s1330_s24 = scalar_lea.hbm %s1691_s1, 16 }
   0x7   :  { %p1331_p0 = scmp.ne.s32.totalorder %s1691_s1, %s1330_s24  ;;  %p1334_p1 = scmp.lt.u32.totalorder %s1330_s24, %s1691_s1 }
   0x9   :  { %p1336_p2 = pnand %p1334_p1, %p1331_p0 }
   0xb   :  { %1339 = shalt.err (!%p1336_p2)
}
   0xc   :  { %s1340_s29 = scalar_lea.vmem %s35_s19, 16  ;;  %s1344_s30 = scalar_lea.vmem %s35_s19, 32 }
   0xd   :  { %p1341_p3 = scmp.ne.s32.totalorder %s35_s19, %s1340_s29  ;;  %p1345_p4 = scmp.lt.s32.totalorder %s35_s19, %s35_s19 }
   0xe   :  { %p1346_p5 = scmp.lt.s32.totalorder %s1344_s30, %s1340_s29 }
  0x10   :  { %p1347_p6 = por %p1346_p5, %p1345_p4 }
  0x12   :  { %p1348_p7 = pnand %p1347_p6, %p1341_p3 }
  0x14   :  { %1351 = shalt.err (!%p1348_p7)
}
  0x15   :  { %37 = dma.hbm_to_vmem [thread:$0]  %s1691_s1, 16, %s35_s19, [#allocation6]  }
  0x16   :  { %s1352_s10 = scalar_lea.hbm %s1690_s0, 2048 }
  0x17   :  { %p1353_p8 = scmp.ne.s32.totalorder %s1690_s0, %s1352_s10  ;;  %p1356_p9 = scmp.lt.u32.totalorder %s1352_s10, %s1690_s0 }
  0x19   :  { %p1358_p10 = pnand %p1356_p9, %p1353_p8 }
  0x1b   :  { %1361 = shalt.err (!%p1358_p10)
}
  0x1c   :  { %s1362_s15 = scalar_lea.vmem %s1511_s21, 2048  ;;  %p1367_p12 = scmp.lt.s32.totalorder %s1511_s21, %s1511_s21 }
  0x1d   :  { %p1363_p11 = scmp.ne.s32.totalorder %s1511_s21, %s1362_s15  ;;  %p1368_p13 = scmp.lt.s32.totalorder %s1362_s15, %s1362_s15 }
  0x1f   :  { %p1369_p0 = por %p1368_p13, %p1367_p12 }
  0x21   :  { %p1370_p1 = pnand %p1369_p0, %p1363_p11 }
  0x23   :  { %1373 = shalt.err (!%p1370_p1)
}
  0x24   :  { %s1474_s1 = smov 64   ;;  %s1475_s16 = smov 4  }
  0x25   :  { %27 = dma.hbm_to_vmem [thread:$0]  %s1690_s0, 2048, %s1511_s21, [#allocation3], %s1474_s1, %s1474_s1, %s1475_s16  }
  0x26   :  { %s1476_s19 = smov [#allocation7]   ;;  %s1477_s22 = smov [#allocation8]  }
  0x27   :  { %s44_s20 = sshll.u32 %s1476_s19, 4  ;;  %s53_s23 = sshll.u32 %s1477_s22, 4  ;;  %s45_s20 = int_to_ptr.vmem [resolvable:$true] %s44_s20  ;;  %s1545_s23 = int_to_ptr.vmem [resolvable:$true] %s53_s23 }
  0x28   :  { %s1374_s26 = scalar_lea.hbm %s1692_s2, 16 }
  0x29   :  { %p1375_p2 = scmp.ne.s32.totalorder %s1692_s2, %s1374_s26  ;;  %p1378_p3 = scmp.lt.u32.totalorder %s1374_s26, %s1692_s2 }
  0x2b   :  { %p1380_p4 = pnand %p1378_p3, %p1375_p2 }
  0x2d   :  { %1383 = shalt.err (!%p1380_p4)
}
  0x2e   :  { %s1384_s0 = scalar_lea.vmem %s45_s20, 16  ;;  %s1388_s21 = scalar_lea.vmem %s45_s20, 32 }
  0x2f   :  { %p1385_p5 = scmp.ne.s32.totalorder %s45_s20, %s1384_s0  ;;  %p1389_p6 = scmp.lt.s32.totalorder %s45_s20, %s45_s20 }
  0x30   :  { %p1390_p7 = scmp.lt.s32.totalorder %s1388_s21, %s1384_s0 }
  0x32   :  { %p1391_p8 = por %p1390_p7, %p1389_p6 }
  0x34   :  { %p1392_p9 = pnand %p1391_p8, %p1385_p5 }
  0x36   :  { %1395 = shalt.err (!%p1392_p9)
}
  0x37   :  { %47 = dma.hbm_to_vmem [thread:$0]  %s1692_s2, 16, %s45_s20, [#allocation6]  }
  0x38   :  { %s1396_s10 = scalar_lea.hbm %s1693_s3, 1024 }
  0x39   :  { %p1397_p10 = scmp.ne.s32.totalorder %s1693_s3, %s1396_s10  ;;  %p1400_p11 = scmp.lt.u32.totalorder %s1396_s10, %s1693_s3 }
  0x3b   :  { %p1402_p12 = pnand %p1400_p11, %p1397_p10 }
  0x3d   :  { %1405 = shalt.err (!%p1402_p12)
}
  0x3e   :  { %s1406_s15 = scalar_lea.vmem %s1545_s23, 1024  ;;  %p1411_p0 = scmp.lt.s32.totalorder %s1545_s23, %s1545_s23 }
  0x3f   :  { %p1407_p13 = scmp.ne.s32.totalorder %s1545_s23, %s1406_s15  ;;  %p1412_p1 = scmp.lt.s32.totalorder %s1406_s15, %s1406_s15 }
  0x41   :  { %p1413_p2 = por %p1412_p1, %p1411_p0 }
  0x43   :  { %p1414_p3 = pnand %p1413_p2, %p1407_p13 }
  0x45   :  { %1417 = shalt.err (!%p1414_p3)
}
  0x46   :  { %59 = dma.hbm_to_vmem [thread:$0]  %s1693_s3, 1024, %s1545_s23, [#allocation9], %s1474_s1, %s1474_s1, %s1475_s16  }
  0x47   :  { %1462 = dma.done.wait [#allocation3], 2048  }
  0x48   :  { %1463 = vsyncadd [#allocation3], 4294965248 }
  0x49   :  { %1464 = dma.done.wait [#allocation6], 32  }
  0x4a   :  { %1465 = vsyncadd [#allocation6], 4294967264 }
  0x4b   :  { %1466 = dma.done.wait [#allocation9], 1024  }
  0x4c   :  { %1467 = vsyncadd [#allocation9], 4294966272  ;;  %v1478_v0 = vmov 0.0|0.0   ;;  %v1322_v1 = vld [vmem:[#allocation8] sm:$0xff]   ;;  %v1323_v2 = vld [vmem:[#allocation8 + $0x8] sm:$0xff]   ;;  %s1479_s3 = smov [#allocation10]  }
  0x4d   :  { %1281 = vmatprep.mubr.bf16.mxu1 %v1478_v0  ;;  %1249 = vmatprep.subr.bf16.mxu0 %v1322_v1  ;;  %v1324_v3 = vld [vmem:[#allocation8 + $0x10] sm:$0xff]   ;;  %v1325_v4 = vld [vmem:[#allocation8 + $0x18] sm:$0xff]   ;;  %v1203_v12 = vld [vmem:[#allocation2 + $0x8] sm:$0xff]   ;;  %s989_s18 = sshll.u32 %s1479_s3, 4  ;;  %s990_s18 = int_to_ptr.vmem [resolvable:$true] %s989_s18 }
  0x4e   :  { %1297 = vmatprep.subr.bf16.mxu1 %v1322_v1  ;;  %1250 = vmatpush3.bf16.msra.mxu0 %v1322_v1  ;;  %v1092_v5 = vld [vmem:[#allocation2] sm:$0xff]   ;;  %v1204_v13 = vld [vmem:[#allocation2 + $0x10] sm:$0xff]   ;;  %v1097_v17 = vunpack.c.l.bf16 %v1203_v12  ;;  %v1098_v18 = vunpack.c.h.bf16 %v1203_v12  ;;  %v1205_v29 = vld [vmem:[#allocation2 + $0x18] sm:$0xff]   ;;  %s1418_s19 = scalar_lea.vmem %s990_s18, 2048  ;;  %p1423_p5 = scmp.lt.s32.totalorder %s990_s18, %s990_s18 }
  0x4f   :  { %1305 = vmatpush3.bf16.msra.mxu1 %v1322_v1  ;;  %1251 = vmatprep.subr.bf16.mxu0 %v1323_v2  ;;  %v1580_v6 = vld [vmem:[#allocation5] ss:$0 sm:$0xff]  ;;  %v1093_v7 = vunpack.c.l.bf16 %v1092_v5  ;;  %v1094_v8 = vunpack.c.h.bf16 %v1092_v5  ;;  %v1582_v9 = vld [vmem:[#allocation7] ss:$0 sm:$0xff]  ;;  %v1326_v14 = vld [vmem:[#allocation8 + $0x20] sm:$0xff]   ;;  %v1101_v19 = vunpack.c.l.bf16 %v1204_v13  ;;  %v1102_v20 = vunpack.c.h.bf16 %v1204_v13  ;;  %p1419_p4 = scmp.ne.s32.totalorder %s990_s18, %s1418_s19  ;;  %p1424_p6 = scmp.lt.s32.totalorder %s1418_s19, %s1418_s19 }
  0x50   :  { %1298 = vmatprep.subr.bf16.mxu1 %v1323_v2  ;;  %v1327_v23 = vld [vmem:[#allocation8 + $0x28] sm:$0xff]   ;;  %v146_v25 = vmul.f32 %v1097_v17, %v1580_v6  ;;  %v147_v26 = vmul.f32 %v1098_v18, %v1580_v6  ;;  %v1328_v30 = vld [vmem:[#allocation8 + $0x30] sm:$0xff]   ;;  %v1206_v31 = vld [vmem:[#allocation2 + $0x20] sm:$0xff]   ;;  %v1105_v32 = vunpack.c.l.bf16 %v1205_v29  ;;  %v1106_v33 = vunpack.c.h.bf16 %v1205_v29 }
  0x51   :  { %v144_v10 = vmul.f32 %v1093_v7, %v1580_v6  ;;  %v145_v11 = vmul.f32 %v1094_v8, %v1580_v6  ;;  %v148_v27 = vmul.f32 %v1101_v19, %v1580_v6  ;;  %v149_v28 = vmul.f32 %v1102_v20, %v1580_v6  ;;  %v1329_v40 = vld [vmem:[#allocation8 + $0x38] sm:$0xff]   ;;  %v1207_v49 = vld [vmem:[#allocation2 + $0x28] sm:$0xff]   ;;  %v1208_v50 = vld [vmem:[#allocation2 + $0x30] sm:$0xff]   ;;  %p1425_p7 = por %p1424_p6, %p1423_p5 }
  0x52   :  { %1252 = vmatpush3.bf16.msra.mxu0 %v1323_v2  ;;  %v185_v34 = vadd.f32 %v1582_v9, %v146_v25  ;;  %v186_v35 = vadd.f32 %v1582_v9, %v147_v26  ;;  %v1109_v38 = vunpack.c.l.bf16 %v1206_v31  ;;  %v1110_v39 = vunpack.c.h.bf16 %v1206_v31  ;;  %v1209_v7 = vld [vmem:[#allocation2 + $0x38] sm:$0xff]  }
  0x53   :  { %1306 = vmatpush3.bf16.msra.mxu1 %v1323_v2  ;;  %1253 = vmatprep.subr.bf16.mxu0 %v1324_v3  ;;  %v183_v15 = vadd.f32 %v1582_v9, %v144_v10  ;;  %v184_v16 = vadd.f32 %v1582_v9, %v145_v11  ;;  %v187_v36 = vadd.f32 %v1582_v9, %v148_v27  ;;  %v1113_v55 = vunpack.c.l.bf16 %v1207_v49  ;;  %p1426_p8 = pnand %p1425_p7, %p1419_p4 }
  0x54   :  { %1299 = vmatprep.subr.bf16.mxu1 %v1324_v3  ;;  %v188_v37 = vadd.f32 %v1582_v9, %v149_v28  ;;  %v150_v41 = vmul.f32 %v1105_v32, %v1580_v6  ;;  %v151_v42 = vmul.f32 %v1106_v33, %v1580_v6  ;;  %v217_v43 = vmax.f32 %v185_v34, 0.0 }
  0x55   :  { %v215_v21 = vmax.f32 %v183_v15, 0.0  ;;  %v216_v22 = vmax.f32 %v184_v16, 0.0  ;;  %v218_v44 = vmax.f32 %v186_v35, 0.0  ;;  %v219_v45 = vmax.f32 %v187_v36, 0.0 }
  0x56   :  { %1254 = vmatpush3.bf16.msra.mxu0 %v1324_v3  ;;  %v220_v46 = vmax.f32 %v188_v37, 0.0  ;;  %v152_v47 = vmul.f32 %v1109_v38, %v1580_v6  ;;  %v153_v48 = vmul.f32 %v1110_v39, %v1580_v6  ;;  %v189_v51 = vadd.f32 %v1582_v9, %v150_v41 }
  0x57   :  { %1307 = vmatpush3.bf16.msra.mxu1 %v1324_v3  ;;  %1255 = vmatprep.subr.bf16.mxu0 %v1325_v4  ;;  %v442_v24 = vpack.c.bf16 %v216_v22, %v215_v21  ;;  %v190_v52 = vadd.f32 %v1582_v9, %v151_v42  ;;  %v443_v53 = vpack.c.bf16 %v218_v44, %v217_v43  ;;  %v1114_v56 = vunpack.c.h.bf16 %v1207_v49 }
  0x58   :  { %1300 = vmatprep.subr.bf16.mxu1 %v1325_v4  ;;  %v444_v54 = vpack.c.bf16 %v220_v46, %v219_v45  ;;  %v191_v57 = vadd.f32 %v1582_v9, %v152_v47  ;;  %v192_v58 = vadd.f32 %v1582_v9, %v153_v48  ;;  %v1117_v59 = vunpack.c.l.bf16 %v1208_v50 }
  0x59   :  { %1265 = vmatprep.mubr.bf16.mxu0 %v442_v24  ;;  %v1118_v60 = vunpack.c.h.bf16 %v1208_v50  ;;  %v221_v61 = vmax.f32 %v189_v51, 0.0  ;;  %v222_v62 = vmax.f32 %v190_v52, 0.0  ;;  %v154_v63 = vmul.f32 %v1113_v55, %v1580_v6 }
  0x5a   :  { %1256 = vmatpush3.bf16.msra.mxu0 %v1325_v4  ;;  %v155_v1 = vmul.f32 %v1114_v56, %v1580_v6  ;;  %v223_v2 = vmax.f32 %v191_v57, 0.0  ;;  %v224_v3 = vmax.f32 %v192_v58, 0.0  ;;  %v1121_v12 = vunpack.c.l.bf16 %v1209_v7 }
  0x5b   :  { %1308 = vmatpush3.bf16.msra.mxu1 %v1325_v4  ;;  %1257 = vmatprep.subr.bf16.mxu0 %v1326_v14  ;;  %v156_v4 = vmul.f32 %v1117_v59, %v1580_v6  ;;  %v157_v5 = vmul.f32 %v1118_v60, %v1580_v6  ;;  %v445_v8 = vpack.c.bf16 %v222_v62, %v221_v61  ;;  %v1122_v13 = vunpack.c.h.bf16 %v1209_v7 }
  0x5c   :  { %1301 = vmatprep.subr.bf16.mxu1 %v1326_v14  ;;  %v193_v10 = vadd.f32 %v1582_v9, %v154_v63  ;;  %v194_v11 = vadd.f32 %v1582_v9, %v155_v1  ;;  %v158_v19 = vmul.f32 %v1121_v12, %v1580_v6 }
  0x5d   :  { %v195_v15 = vadd.f32 %v1582_v9, %v156_v4  ;;  %v196_v16 = vadd.f32 %v1582_v9, %v157_v5  ;;  %v159_v20 = vmul.f32 %v1122_v13, %v1580_v6 }
  0x5e   :  { %1258 = vmatpush3.bf16.msra.mxu0 %v1326_v14  ;;  %v225_v17 = vmax.f32 %v193_v10, 0.0  ;;  %v226_v18 = vmax.f32 %v194_v11, 0.0  ;;  %v197_v24 = vadd.f32 %v1582_v9, %v158_v19 }
  0x5f   :  { %1259 = vmatprep.subr.bf16.mxu0 %v1327_v23  ;;  %1309 = vmatpush3.bf16.msra.mxu1 %v1326_v14  ;;  %v446_v14 = vpack.c.bf16 %v224_v3, %v223_v2  ;;  %v227_v21 = vmax.f32 %v195_v15, 0.0  ;;  %v228_v22 = vmax.f32 %v196_v16, 0.0  ;;  %v198_v25 = vadd.f32 %v1582_v9, %v159_v20 }
  0x60   :  { %1302 = vmatprep.subr.bf16.mxu1 %v1327_v23  ;;  %v229_v27 = vmax.f32 %v197_v24, 0.0 }
  0x61   :  { %v448_v26 = vpack.c.bf16 %v228_v22, %v227_v21  ;;  %v230_v28 = vmax.f32 %v198_v25, 0.0 }
  0x62   :  { %1260 = vmatpush3.bf16.msra.mxu0 %v1327_v23 }
  0x63   :  { %1261 = vmatprep.subr.bf16.mxu0 %v1328_v30  ;;  %1310 = vmatpush3.bf16.msra.mxu1 %v1327_v23  ;;  %v447_v23 = vpack.c.bf16 %v226_v18, %v225_v17  ;;  %v449_v6 = vpack.c.bf16 %v230_v28, %v229_v27 }
  0x64   :  { %1303 = vmatprep.subr.bf16.mxu1 %v1328_v30 }
  0x66   :  { %1262 = vmatpush3.bf16.msra.mxu0 %v1328_v30 }
  0x67   :  { %1263 = vmatprep.subr.bf16.mxu0 %v1329_v40  ;;  %1311 = vmatpush3.bf16.msra.mxu1 %v1328_v30 }
  0x68   :  { %1304 = vmatprep.subr.bf16.mxu1 %v1329_v40 }
  0x6a   :  { %1264 = vmatpush3.bf16.msra.mxu0 %v1329_v40 }
  0x6b   :  { %1312 = vmatpush3.bf16.msra.mxu1 %v1329_v40 }
  0x6d   :  { %1266 = vmatmul.mubr.bf16.vlgmr.msra.gmra.mrb[0].mxu0 %v443_v53 }
  0x6e   :  { %1269 = vmatprep.mubr.bf16.mxu0 %v444_v54  ;;  %1282 = vmatmul.mubr.bf16.vlgmr.msra.gmra.mrb[0].mxu1 %v1478_v0 }
  0x6f   :  { %1285 = vmatprep.mubr.bf16.mxu1 %v1478_v0 }
  0x75   :  { %1270 = vmatmul.mubr.bf16.gmra.mrb[4].mxu0 %v445_v8 }
  0x76   :  { %1273 = vmatprep.mubr.bf16.mxu0 %v446_v14  ;;  %1286 = vmatmul.mubr.bf16.gmra.mrb[4].mxu1 %v1478_v0 }
  0x77   :  { %1289 = vmatprep.mubr.bf16.mxu1 %v1478_v0 }
  0x7d   :  { %1274 = vmatmul.mubr.bf16.gmra.mrb[8].mxu0 %v447_v23 }
  0x7e   :  { %1277 = vmatprep.mubr.bf16.mxu0 %v448_v26  ;;  %1290 = vmatmul.mubr.bf16.gmra.mrb[8].mxu1 %v1478_v0 }
  0x7f   :  { %1293 = vmatprep.mubr.bf16.mxu1 %v1478_v0 }
  0x85   :  { %1278 = vmatmul.mubr.bf16.gmra.mrb[12].mxu0 %v449_v6 }
  0x86   :  { %1294 = vmatmul.mubr.bf16.gmra.mrb[12].mxu1 %v1478_v0 }
 0x140   :  { %v1267_v29 = vpop.f32.mrb[0].mxu0 }
 0x141   :  { %v556_v30 = vpop.f32.mrb[1].mxu0  ;;  %v1283_v31 = vpop.f32.mrb[0].mxu1 }
 0x142   :  { %v1268_v32 = vpop.f32.mrb[2].mxu0  ;;  %v620_v33 = vpop.f32.mrb[1].mxu1 }
 0x143   :  { %v684_v34 = vpack.c.bf16 %v1268_v32, %v1267_v29  ;;  %v559_v9 = vpop.f32.mrb[3].mxu0  ;;  %v1284_v35 = vpop.f32.mrb[2].mxu1 }
 0x144   :  { %v683_v36 = vpack.c.bf16 %v559_v9, %v556_v30  ;;  %v1623_v37 = vpack.c.bf16 %v1284_v35, %v1283_v31  ;;  %v623_v38 = vpop.f32.mrb[3].mxu1 }
 0x145   :  { %1210 = vst [vmem:[#allocation10 + $0x8] sm:$0xff] %v684_v34   ;;  %v1625_v39 = vpack.c.bf16 %v623_v38, %v620_v33  ;;  %v845_v40 = vunpack.c.l.bf16 %v684_v34  ;;  %v846_v0 = vunpack.c.h.bf16 %v684_v34 }
 0x146   :  { %1127 = vst [vmem:[#allocation10] sm:$0xff] %v683_v36   ;;  %v843_v41 = vunpack.c.l.bf16 %v683_v36  ;;  %v844_v42 = vunpack.c.h.bf16 %v683_v36  ;;  %1218 = vst [vmem:[#allocation10 + $0x48] sm:$0xff] %v1623_v37  }
 0x147   :  { %1217 = vst [vmem:[#allocation10 + $0x40] sm:$0xff] %v1625_v39   ;;  %v914_v49 = vmul.f32 %v845_v40, %v845_v40  ;;  %v915_v54 = vmul.f32 %v846_v0, %v846_v0 }
 0x148   :  { %v875_v43 = vadd.f32 %v844_v42, %v843_v41  ;;  %v912_v44 = vmul.f32 %v843_v41, %v843_v41  ;;  %v913_v45 = vmul.f32 %v844_v42, %v844_v42  ;;  %v1271_v46 = vpop.f32.mrb[4].mxu0 }
 0x149   :  { %v572_v47 = vpop.f32.mrb[5].mxu0  ;;  %v1287_v48 = vpop.f32.mrb[4].mxu1 }
 0x14a   :  { %v876_v50 = vadd.f32 %v875_v43, %v845_v40  ;;  %v944_v51 = vadd.f32 %v913_v45, %v912_v44  ;;  %v1272_v52 = vpop.f32.mrb[6].mxu0  ;;  %v636_v53 = vpop.f32.mrb[5].mxu1 }
 0x14b   :  { %v686_v55 = vpack.c.bf16 %v1272_v52, %v1271_v46  ;;  %v575_v56 = vpop.f32.mrb[7].mxu0  ;;  %v1288_v57 = vpop.f32.mrb[6].mxu1 }
 0x14c   :  { %v945_v58 = vadd.f32 %v944_v51, %v914_v49  ;;  %v685_v59 = vpack.c.bf16 %v575_v56, %v572_v47  ;;  %v877_v60 = vadd.f32 %v876_v50, %v846_v0  ;;  %v1629_v61 = vpack.c.bf16 %v1288_v57, %v1287_v48  ;;  %v639_v62 = vpop.f32.mrb[7].mxu1 }
 0x14d   :  { %1212 = vst [vmem:[#allocation10 + $0x18] sm:$0xff] %v686_v55   ;;  %v1631_v63 = vpack.c.bf16 %v639_v62, %v636_v53  ;;  %v849_v4 = vunpack.c.l.bf16 %v686_v55  ;;  %v850_v10 = vunpack.c.h.bf16 %v686_v55 }
 0x14e   :  { %1211 = vst [vmem:[#allocation10 + $0x10] sm:$0xff] %v685_v59   ;;  %v847_v1 = vunpack.c.l.bf16 %v685_v59  ;;  %v848_v2 = vunpack.c.h.bf16 %v685_v59  ;;  %v946_v3 = vadd.f32 %v945_v58, %v915_v54  ;;  %1220 = vst [vmem:[#allocation10 + $0x58] sm:$0xff] %v1629_v61  }
 0x14f   :  { %1219 = vst [vmem:[#allocation10 + $0x50] sm:$0xff] %v1631_v63   ;;  %v918_v18 = vmul.f32 %v849_v4, %v849_v4  ;;  %v919_v27 = vmul.f32 %v850_v10, %v850_v10 }
 0x150   :  { %v878_v5 = vadd.f32 %v877_v60, %v847_v1  ;;  %v916_v7 = vmul.f32 %v847_v1, %v847_v1  ;;  %v1275_v8 = vpop.f32.mrb[8].mxu0  ;;  %v917_v14 = vmul.f32 %v848_v2, %v848_v2 }
 0x151   :  { %v588_v11 = vpop.f32.mrb[9].mxu0  ;;  %v1291_v12 = vpop.f32.mrb[8].mxu1 }
 0x152   :  { %v879_v13 = vadd.f32 %v878_v5, %v848_v2  ;;  %v947_v15 = vadd.f32 %v946_v3, %v916_v7  ;;  %v1276_v16 = vpop.f32.mrb[10].mxu0  ;;  %v652_v17 = vpop.f32.mrb[9].mxu1 }
 0x153   :  { %v688_v19 = vpack.c.bf16 %v1276_v16, %v1275_v8  ;;  %v591_v20 = vpop.f32.mrb[11].mxu0  ;;  %v1292_v21 = vpop.f32.mrb[10].mxu1 }
 0x154   :  { %v880_v22 = vadd.f32 %v879_v13, %v849_v4  ;;  %v948_v23 = vadd.f32 %v947_v15, %v917_v14  ;;  %v687_v24 = vpack.c.bf16 %v591_v20, %v588_v11  ;;  %v1635_v25 = vpack.c.bf16 %v1292_v21, %v1291_v12  ;;  %v655_v26 = vpop.f32.mrb[11].mxu1 }
 0x155   :  { %1214 = vst [vmem:[#allocation10 + $0x28] sm:$0xff] %v688_v19   ;;  %v1637_v28 = vpack.c.bf16 %v655_v26, %v652_v17  ;;  %v853_v32 = vunpack.c.l.bf16 %v688_v19  ;;  %v854_v36 = vunpack.c.h.bf16 %v688_v19 }
 0x156   :  { %v949_v6 = vadd.f32 %v948_v23, %v918_v18  ;;  %1213 = vst [vmem:[#allocation10 + $0x20] sm:$0xff] %v687_v24   ;;  %v851_v29 = vunpack.c.l.bf16 %v687_v24  ;;  %v852_v30 = vunpack.c.h.bf16 %v687_v24  ;;  %v881_v31 = vadd.f32 %v880_v22, %v850_v10  ;;  %1222 = vst [vmem:[#allocation10 + $0x68] sm:$0xff] %v1635_v25  }
 0x157   :  { %1221 = vst [vmem:[#allocation10 + $0x60] sm:$0xff] %v1637_v28   ;;  %v922_v45 = vmul.f32 %v853_v32, %v853_v32  ;;  %v923_v54 = vmul.f32 %v854_v36, %v854_v36 }
 0x158   :  { %v882_v33 = vadd.f32 %v881_v31, %v851_v29  ;;  %v920_v34 = vmul.f32 %v851_v29, %v851_v29  ;;  %v950_v9 = vadd.f32 %v949_v6, %v919_v27  ;;  %v1279_v35 = vpop.f32.mrb[12].mxu0  ;;  %v921_v42 = vmul.f32 %v852_v30, %v852_v30 }
 0x159   :  { %v604_v38 = vpop.f32.mrb[13].mxu0  ;;  %v1295_v40 = vpop.f32.mrb[12].mxu1 }
 0x15a   :  { %v883_v41 = vadd.f32 %v882_v33, %v852_v30  ;;  %v951_v0 = vadd.f32 %v950_v9, %v920_v34  ;;  %v1280_v43 = vpop.f32.mrb[14].mxu0  ;;  %v668_v44 = vpop.f32.mrb[13].mxu1 }
 0x15b   :  { %v690_v46 = vpack.c.bf16 %v1280_v43, %v1279_v35  ;;  %v607_v47 = vpop.f32.mrb[15].mxu0  ;;  %v1296_v48 = vpop.f32.mrb[14].mxu1 }
 0x15c   :  { %v884_v49 = vadd.f32 %v883_v41, %v853_v32  ;;  %v952_v50 = vadd.f32 %v951_v0, %v921_v42  ;;  %v689_v51 = vpack.c.bf16 %v607_v47, %v604_v38  ;;  %v1641_v52 = vpack.c.bf16 %v1296_v48, %v1295_v40  ;;  %v671_v53 = vpop.f32.mrb[15].mxu1 }
 0x15d   :  { %1216 = vst [vmem:[#allocation10 + $0x38] sm:$0xff] %v690_v46   ;;  %v1643_v55 = vpack.c.bf16 %v671_v53, %v668_v44  ;;  %v857_v60 = vunpack.c.l.bf16 %v690_v46 }
 0x15e   :  { %v953_v56 = vadd.f32 %v952_v50, %v922_v45  ;;  %1215 = vst [vmem:[#allocation10 + $0x30] sm:$0xff] %v689_v51   ;;  %v855_v57 = vunpack.c.l.bf16 %v689_v51  ;;  %v856_v58 = vunpack.c.h.bf16 %v689_v51  ;;  %v885_v59 = vadd.f32 %v884_v49, %v854_v36  ;;  %1224 = vst [vmem:[#allocation10 + $0x78] sm:$0xff] %v1641_v52  }
 0x15f   :  { %1223 = vst [vmem:[#allocation10 + $0x70] sm:$0xff] %v1643_v55  }
 0x160   :  { %v886_v62 = vadd.f32 %v885_v59, %v855_v57  ;;  %v924_v1 = vmul.f32 %v855_v57, %v855_v57  ;;  %v954_v2 = vadd.f32 %v953_v56, %v923_v54 }
 0x161   :  { %1429 = shalt.err (!%p1426_p8)
}
 0x162   :  { %s1430_s23 = scalar_lea.hbm %s1694_s4, 2048 }
 0x163   :  { %p1431_p9 = scmp.ne.s32.totalorder %s1694_s4, %s1430_s23  ;;  %p1434_p10 = scmp.lt.u32.totalorder %s1430_s23, %s1694_s4 }
 0x165   :  { %p1436_p11 = pnand %p1434_p10, %p1431_p9 }
 0x167   :  { %1439 = shalt.err (!%p1436_p11)
}
 0x168   :  { %995 = dma.vmem_to_hbm [thread:$0]  %s990_s18, 2048, %s1694_s4, [#allocation4], %s1474_s1, %s1474_s1, %s1475_s16   ;;  %v858_v3 = vunpack.c.h.bf16 %v690_v46  ;;  %v887_v4 = vadd.f32 %v886_v62, %v856_v58  ;;  %v925_v5 = vmul.f32 %v856_v58, %v856_v58  ;;  %v955_v7 = vadd.f32 %v954_v2, %v924_v1 }
 0x169   :  { %v926_v8 = vmul.f32 %v857_v60, %v857_v60  ;;  %v859_v12 = vunpack.c.l.bf16 %v1625_v39  ;;  %v860_v15 = vunpack.c.h.bf16 %v1625_v39  ;;  %v861_v17 = vunpack.c.l.bf16 %v1623_v37  ;;  %s1480_s4 = smov [#allocation11]  }
 0x16a   :  { %v888_v10 = vadd.f32 %v887_v4, %v857_v60  ;;  %v956_v11 = vadd.f32 %v955_v7, %v925_v5  ;;  %v927_v13 = vmul.f32 %v858_v3, %v858_v3  ;;  %v862_v21 = vunpack.c.h.bf16 %v1623_v37  ;;  %s1002_s1 = sshll.u32 %s1480_s4, 4  ;;  %s1003_s1 = int_to_ptr.vmem [resolvable:$true] %s1002_s1 }
 0x16b   :  { %v928_v19 = vmul.f32 %v859_v12, %v859_v12  ;;  %v929_v23 = vmul.f32 %v860_v15, %v860_v15  ;;  %v930_v26 = vmul.f32 %v861_v17, %v861_v17  ;;  %v863_v29 = vunpack.c.l.bf16 %v1631_v63  ;;  %s1440_s16 = scalar_lea.vmem %s1003_s1, 32  ;;  %p1445_p13 = scmp.lt.s32.totalorder %s1003_s1, %s1003_s1 }
 0x16c   :  { %v957_v14 = vadd.f32 %v956_v11, %v926_v8  ;;  %v889_v16 = vadd.f32 %v888_v10, %v858_v3  ;;  %v931_v30 = vmul.f32 %v862_v21, %v862_v21  ;;  %v864_v39 = vunpack.c.h.bf16 %v1631_v63  ;;  %p1441_p12 = scmp.ne.s32.totalorder %s1003_s1, %s1440_s16  ;;  %p1446_p0 = scmp.lt.s32.totalorder %s1440_s16, %s1440_s16 }
 0x16d   :  { %v865_v33 = vunpack.c.l.bf16 %v1629_v61  ;;  %v932_v9 = vmul.f32 %v863_v29, %v863_v29  ;;  %v866_v37 = vunpack.c.h.bf16 %v1629_v61  ;;  %v867_v43 = vunpack.c.l.bf16 %v1637_v28 }
 0x16e   :  { %v890_v18 = vadd.f32 %v889_v16, %v859_v12  ;;  %v958_v20 = vadd.f32 %v957_v14, %v927_v13  ;;  %v933_v38 = vmul.f32 %v864_v39, %v864_v39  ;;  %v868_v63 = vunpack.c.h.bf16 %v1637_v28  ;;  %p1447_p1 = por %p1446_p0, %p1445_p13 }
 0x16f   :  { %v934_v41 = vmul.f32 %v865_v33, %v865_v33  ;;  %v935_v44 = vmul.f32 %v866_v37, %v866_v37  ;;  %v869_v47 = vunpack.c.l.bf16 %v1635_v25  ;;  %v936_v49 = vmul.f32 %v867_v43, %v867_v43 }
 0x170   :  { %v891_v22 = vadd.f32 %v890_v18, %v860_v15  ;;  %v959_v24 = vadd.f32 %v958_v20, %v928_v19  ;;  %v870_v61 = vunpack.c.h.bf16 %v1635_v25  ;;  %v937_v53 = vmul.f32 %v868_v63, %v868_v63  ;;  %p1448_p2 = pnand %p1447_p1, %p1441_p12 }
 0x171   :  { %v938_v56 = vmul.f32 %v869_v47, %v869_v47  ;;  %v871_v59 = vunpack.c.l.bf16 %v1643_v55  ;;  %v872_v28 = vunpack.c.h.bf16 %v1643_v55  ;;  %v873_v2 = vunpack.c.l.bf16 %v1641_v52 }
 0x172   :  { %v892_v27 = vadd.f32 %v891_v22, %v861_v17  ;;  %v960_v6 = vadd.f32 %v959_v24, %v929_v23  ;;  %v939_v60 = vmul.f32 %v870_v61, %v870_v61  ;;  %v874_v25 = vunpack.c.h.bf16 %v1641_v52 }
 0x173   :  { %v940_v4 = vmul.f32 %v871_v59, %v871_v59  ;;  %v941_v8 = vmul.f32 %v872_v28, %v872_v28  ;;  %v942_v11 = vmul.f32 %v873_v2, %v873_v2  ;;  %vm981_vm0 = vcmask 1040384  }
 0x174   :  { %v961_v31 = vadd.f32 %v960_v6, %v930_v26  ;;  %v893_v32 = vadd.f32 %v892_v27, %v862_v21  ;;  %v943_v14 = vmul.f32 %v874_v25, %v874_v25 }
 0x176   :  { %v894_v34 = vadd.f32 %v893_v32, %v863_v29  ;;  %v962_v35 = vadd.f32 %v961_v31, %v931_v30 }
 0x178   :  { %v895_v36 = vadd.f32 %v894_v34, %v864_v39  ;;  %v963_v40 = vadd.f32 %v962_v35, %v932_v9 }
 0x17a   :  { %v896_v42 = vadd.f32 %v895_v36, %v865_v33  ;;  %v964_v0 = vadd.f32 %v963_v40, %v933_v38 }
 0x17c   :  { %v965_v45 = vadd.f32 %v964_v0, %v934_v41  ;;  %v897_v46 = vadd.f32 %v896_v42, %v866_v37 }
 0x17e   :  { %v898_v48 = vadd.f32 %v897_v46, %v867_v43  ;;  %v966_v50 = vadd.f32 %v965_v45, %v935_v44 }
 0x180   :  { %v899_v51 = vadd.f32 %v898_v48, %v868_v63  ;;  %v967_v54 = vadd.f32 %v966_v50, %v936_v49 }
 0x182   :  { %v900_v57 = vadd.f32 %v899_v51, %v869_v47  ;;  %v968_v58 = vadd.f32 %v967_v54, %v937_v53 }
 0x184   :  { %v969_v62 = vadd.f32 %v968_v58, %v938_v56  ;;  %v901_v1 = vadd.f32 %v900_v57, %v870_v61 }
 0x186   :  { %v902_v3 = vadd.f32 %v901_v1, %v871_v59  ;;  %v970_v5 = vadd.f32 %v969_v62, %v939_v60 }
 0x188   :  { %v903_v7 = vadd.f32 %v902_v3, %v872_v28  ;;  %v971_v10 = vadd.f32 %v970_v5, %v940_v4 }
 0x18a   :  { %v904_v12 = vadd.f32 %v903_v7, %v873_v2  ;;  %v972_v13 = vadd.f32 %v971_v10, %v941_v8 }
 0x18c   :  { %v905_v15 = vadd.f32 %v904_v12, %v874_v25  ;;  %v973_v16 = vadd.f32 %v972_v13, %v942_v11 }
 0x18e   :  { %v906_v17 = vrot.slane %v905_v15, 4  ;;  %v974_v18 = vadd.f32 %v973_v16, %v943_v14 }
 0x190   :  { %v907_v55 = vadd.f32 %v906_v17, %v905_v15  ;;  %v975_v19 = vrot.slane %v974_v18, 4 }
 0x192   :  { %v908_v20 = vrot.slane %v907_v55, 2  ;;  %v976_v21 = vadd.f32 %v975_v19, %v974_v18 }
 0x194   :  { %v909_v22 = vadd.f32 %v908_v20, %v907_v55  ;;  %v977_v23 = vrot.slane %v976_v21, 2 }
 0x196   :  { %v910_v24 = vrot.slane %v909_v22, 1  ;;  %v978_v26 = vadd.f32 %v977_v23, %v976_v21 }
 0x198   :  { %v979_v52 = vrot.slane %v978_v26, 1  ;;  %v911_v27 = vadd.f32 %v910_v24, %v909_v22 }
 0x19a   :  { %v980_v6 = vadd.f32 %v979_v52, %v978_v26 }
 0x19c   :  { %v982_v29 = vsel %vm981_vm0, %v911_v27, %v980_v6 }
 0x19d   :  { %983 = vst [vmem:[#allocation11] sm:$0x3] %v982_v29 }
 0x19e   :  { %1451 = shalt.err (!%p1448_p2)
}
 0x19f   :  { %s1452_s21 = scalar_lea.hbm %s1695_s5, 32 }
 0x1a0   :  { %p1453_p3 = scmp.ne.s32.totalorder %s1695_s5, %s1452_s21  ;;  %p1456_p4 = scmp.lt.u32.totalorder %s1452_s21, %s1695_s5 }
 0x1a2   :  { %p1458_p5 = pnand %p1456_p4, %p1453_p3 }
 0x1a4   :  { %1461 = shalt.err (!%p1458_p5)
}
 0x1a5   :  { %1005 = dma.vmem_to_hbm [thread:$0]  %s1003_s1, 32, %s1695_s5, [#allocation12]  }
 0x1a6   :  { %1468 = dma.done.wait [#allocation4], 2048  }
 0x1a7   :  { %1469 = vsyncadd [#allocation4], 4294965248 }
 0x1a8   :  { %1470 = dma.done.wait [#allocation12], 32  }
 0x1a9   :  { %1471 = vsyncadd [#allocation12], 4294967264 }
 0x1aa   :  { %1012 = vsyncpa [#allocation3], 1 }
 0x1ab   :  { %1013 = vsyncpa [#allocation6], 1 }
 0x1ac   :  { %1014 = vsyncpa [#allocation9], 1 }
 0x1ad   :  { %1015 = vsyncpa [#allocation4], 1 }
 0x1ae   :  { %1016 = vsyncpa [#allocation12], 1 }

// kernel: bottleneck.4
= control target key start
LH: loop header
LB: loop body
LE: loop exit
PB: predicated region body
PF: predicated region fallthrough
CT: control target
= control target key end

     0   :  { %9 = vsyncpa [#allocation3], 0  ;;  %s1250_s0 = inlined_call_operand.hbm [shape: bf16[256,128], index: 0, kind: input, shape index: {}]   ;;  %s1251_s1 = inlined_call_operand.hbm [shape: bf16[128,128], index: 1, kind: input, shape index: {}]   ;;  %s1252_s2 = inlined_call_operand.hbm [shape: bf16[256,128], index: 2, kind: output, shape index: {0}]   ;;  %s1253_s3 = inlined_call_operand.hbm [shape: f32[1,2,128], index: 3, kind: output, shape index: {1}]  }
   0x1   :  { %10 = vsyncpa [#allocation6], 0 }
   0x2   :  { %11 = vsyncpa [#allocation4], 0 }
   0x3   :  { %12 = vsyncpa [#allocation9], 0  ;;  %s1127_s12 = smov [#allocation2]   ;;  %s1031_s16 = scalar_lea.hbm %s1250_s0, 2048 }
   0x4   :  { %s18_s13 = sshll.u32 %s1127_s12, 4  ;;  %p1032_p0 = scmp.ne.s32.totalorder %s1250_s0, %s1031_s16  ;;  %s19_s13 = int_to_ptr.vmem [resolvable:$true] %s18_s13 }
   0x5   :  { %p1035_p1 = scmp.lt.u32.totalorder %s1031_s16, %s1250_s0 }
   0x7   :  { %p1037_p2 = pnand %p1035_p1, %p1032_p0 }
   0x9   :  { %1040 = shalt.err (!%p1037_p2)
}
   0xa   :  { %s1041_s21 = scalar_lea.vmem %s19_s13, 2048  ;;  %p1046_p4 = scmp.lt.s32.totalorder %s19_s13, %s19_s13 }
   0xb   :  { %p1042_p3 = scmp.ne.s32.totalorder %s19_s13, %s1041_s21  ;;  %p1047_p5 = scmp.lt.s32.totalorder %s1041_s21, %s1041_s21 }
   0xd   :  { %p1048_p6 = por %p1047_p5, %p1046_p4 }
   0xf   :  { %p1049_p7 = pnand %p1048_p6, %p1042_p3 }
  0x11   :  { %1052 = shalt.err (!%p1049_p7)
}
  0x12   :  { %s1128_s22 = smov 64   ;;  %s1129_s23 = smov 4  }
  0x13   :  { %24 = dma.hbm_to_vmem [thread:$0]  %s1250_s0, 2048, %s19_s13, [#allocation3], %s1128_s22, %s1128_s22, %s1129_s23  }
  0x14   :  { %s1130_s26 = smov [#allocation5]   ;;  %s1053_s30 = scalar_lea.hbm %s1251_s1, 1024 }
  0x15   :  { %s30_s27 = sshll.u32 %s1130_s26, 4  ;;  %p1054_p8 = scmp.ne.s32.totalorder %s1251_s1, %s1053_s30  ;;  %s31_s27 = int_to_ptr.vmem [resolvable:$true] %s30_s27 }
  0x16   :  { %p1057_p9 = scmp.lt.u32.totalorder %s1053_s30, %s1251_s1 }
  0x18   :  { %p1059_p10 = pnand %p1057_p9, %p1054_p8 }
  0x1a   :  { %1062 = shalt.err (!%p1059_p10)
}
  0x1b   :  { %s1063_s8 = scalar_lea.vmem %s31_s27, 1024  ;;  %p1068_p12 = scmp.lt.s32.totalorder %s31_s27, %s31_s27 }
  0x1c   :  { %p1064_p11 = scmp.ne.s32.totalorder %s31_s27, %s1063_s8  ;;  %p1069_p13 = scmp.lt.s32.totalorder %s1063_s8, %s1063_s8 }
  0x1e   :  { %p1070_p0 = por %p1069_p13, %p1068_p12 }
  0x20   :  { %p1071_p1 = pnand %p1070_p0, %p1064_p11 }
  0x22   :  { %1074 = shalt.err (!%p1071_p1)
}
  0x23   :  { %36 = dma.hbm_to_vmem [thread:$0]  %s1251_s1, 1024, %s31_s27, [#allocation6], %s1128_s22, %s1128_s22, %s1129_s23  }
  0x24   :  { %1119 = dma.done.wait [#allocation3], 2048  }
  0x25   :  { %1120 = vsyncadd [#allocation3], 4294965248 }
  0x26   :  { %1121 = dma.done.wait [#allocation6], 1024  }
  0x27   :  { %1122 = vsyncadd [#allocation6], 4294966272  ;;  %v1007_v0 = vld [vmem:[#allocation5] sm:$0xff]   ;;  %v1008_v1 = vld [vmem:[#allocation5 + $0x8] sm:$0xff]   ;;  %s1131_s1 = smov [#allocation7]  }
  0x28   :  { %937 = vmatprep.subr.bf16.mxu0 %v1007_v0  ;;  %985 = vmatprep.subr.bf16.mxu1 %v1007_v0  ;;  %v1009_v2 = vld [vmem:[#allocation5 + $0x10] sm:$0xff]   ;;  %v1010_v3 = vld [vmem:[#allocation5 + $0x18] sm:$0xff]   ;;  %v1015_v4 = vld [vmem:[#allocation2] sm:$0xff]   ;;  %s703_s10 = sshll.u32 %s1131_s1, 4  ;;  %s704_s10 = int_to_ptr.vmem [resolvable:$true] %s703_s10 }
  0x29   :  { %938 = vmatpush3.bf16.msra.mxu0 %v1007_v0  ;;  %993 = vmatpush3.bf16.msra.mxu1 %v1007_v0  ;;  %v1011_v5 = vld [vmem:[#allocation5 + $0x20] sm:$0xff]   ;;  %v1012_v6 = vld [vmem:[#allocation5 + $0x28] sm:$0xff]   ;;  %v1013_v8 = vld [vmem:[#allocation5 + $0x30] sm:$0xff]   ;;  %s1075_s11 = scalar_lea.vmem %s704_s10, 2048  ;;  %p1080_p3 = scmp.lt.s32.totalorder %s704_s10, %s704_s10 }
  0x2a   :  { %939 = vmatprep.subr.bf16.mxu0 %v1008_v1  ;;  %986 = vmatprep.subr.bf16.mxu1 %v1008_v1  ;;  %v1023_v7 = vld [vmem:[#allocation2 + $0x40] sm:$0xff]   ;;  %v1014_v9 = vld [vmem:[#allocation5 + $0x38] sm:$0xff]   ;;  %v1016_v10 = vld [vmem:[#allocation2 + $0x8] sm:$0xff]   ;;  %p1076_p2 = scmp.ne.s32.totalorder %s704_s10, %s1075_s11  ;;  %p1081_p4 = scmp.lt.s32.totalorder %s1075_s11, %s1075_s11 }
  0x2b   :  { %953 = vmatprep.mubr.bf16.mxu0 %v1015_v4  ;;  %969 = vmatprep.mubr.bf16.mxu1 %v1023_v7  ;;  %v1024_v11 = vld [vmem:[#allocation2 + $0x48] sm:$0xff]   ;;  %v1017_v12 = vld [vmem:[#allocation2 + $0x10] sm:$0xff]   ;;  %v1018_v14 = vld [vmem:[#allocation2 + $0x18] sm:$0xff]  }
  0x2c   :  { %v1025_v13 = vld [vmem:[#allocation2 + $0x50] sm:$0xff]   ;;  %v1026_v15 = vld [vmem:[#allocation2 + $0x58] sm:$0xff]   ;;  %v1019_v16 = vld [vmem:[#allocation2 + $0x20] sm:$0xff]   ;;  %p1082_p5 = por %p1081_p4, %p1080_p3 }
  0x2d   :  { %940 = vmatpush3.bf16.msra.mxu0 %v1008_v1  ;;  %994 = vmatpush3.bf16.msra.mxu1 %v1008_v1  ;;  %v1027_v17 = vld [vmem:[#allocation2 + $0x60] sm:$0xff]   ;;  %v1020_v18 = vld [vmem:[#allocation2 + $0x28] sm:$0xff]   ;;  %v1021_v20 = vld [vmem:[#allocation2 + $0x30] sm:$0xff]  }
  0x2e   :  { %941 = vmatprep.subr.bf16.mxu0 %v1009_v2  ;;  %987 = vmatprep.subr.bf16.mxu1 %v1009_v2  ;;  %v1028_v19 = vld [vmem:[#allocation2 + $0x68] sm:$0xff]   ;;  %v1029_v21 = vld [vmem:[#allocation2 + $0x70] sm:$0xff]   ;;  %v1022_v22 = vld [vmem:[#allocation2 + $0x38] sm:$0xff]   ;;  %p1083_p6 = pnand %p1082_p5, %p1076_p2 }
  0x2f   :  { %v1030_v23 = vld [vmem:[#allocation2 + $0x78] sm:$0xff]  }
  0x31   :  { %942 = vmatpush3.bf16.msra.mxu0 %v1009_v2  ;;  %995 = vmatpush3.bf16.msra.mxu1 %v1009_v2 }
  0x32   :  { %943 = vmatprep.subr.bf16.mxu0 %v1010_v3  ;;  %988 = vmatprep.subr.bf16.mxu1 %v1010_v3 }
  0x35   :  { %944 = vmatpush3.bf16.msra.mxu0 %v1010_v3  ;;  %996 = vmatpush3.bf16.msra.mxu1 %v1010_v3 }
  0x36   :  { %945 = vmatprep.subr.bf16.mxu0 %v1011_v5  ;;  %989 = vmatprep.subr.bf16.mxu1 %v1011_v5 }
  0x39   :  { %946 = vmatpush3.bf16.msra.mxu0 %v1011_v5  ;;  %997 = vmatpush3.bf16.msra.mxu1 %v1011_v5 }
  0x3a   :  { %947 = vmatprep.subr.bf16.mxu0 %v1012_v6  ;;  %990 = vmatprep.subr.bf16.mxu1 %v1012_v6 }
  0x3d   :  { %948 = vmatpush3.bf16.msra.mxu0 %v1012_v6  ;;  %998 = vmatpush3.bf16.msra.mxu1 %v1012_v6 }
  0x3e   :  { %949 = vmatprep.subr.bf16.mxu0 %v1013_v8  ;;  %991 = vmatprep.subr.bf16.mxu1 %v1013_v8 }
  0x41   :  { %950 = vmatpush3.bf16.msra.mxu0 %v1013_v8  ;;  %999 = vmatpush3.bf16.msra.mxu1 %v1013_v8 }
  0x42   :  { %951 = vmatprep.subr.bf16.mxu0 %v1014_v9  ;;  %992 = vmatprep.subr.bf16.mxu1 %v1014_v9 }
  0x45   :  { %952 = vmatpush3.bf16.msra.mxu0 %v1014_v9  ;;  %1000 = vmatpush3.bf16.msra.mxu1 %v1014_v9 }
  0x48   :  { %954 = vmatmul.mubr.bf16.vlgmr.msra.gmra.mrb[0].mxu0 %v1016_v10  ;;  %970 = vmatmul.mubr.bf16.vlgmr.msra.gmra.mrb[0].mxu1 %v1024_v11 }
  0x49   :  { %957 = vmatprep.mubr.bf16.mxu0 %v1017_v12  ;;  %973 = vmatprep.mubr.bf16.mxu1 %v1025_v13 }
  0x50   :  { %958 = vmatmul.mubr.bf16.gmra.mrb[4].mxu0 %v1018_v14  ;;  %974 = vmatmul.mubr.bf16.gmra.mrb[4].mxu1 %v1026_v15 }
  0x51   :  { %961 = vmatprep.mubr.bf16.mxu0 %v1019_v16  ;;  %977 = vmatprep.mubr.bf16.mxu1 %v1027_v17 }
  0x58   :  { %962 = vmatmul.mubr.bf16.gmra.mrb[8].mxu0 %v1020_v18  ;;  %978 = vmatmul.mubr.bf16.gmra.mrb[8].mxu1 %v1028_v19 }
  0x59   :  { %965 = vmatprep.mubr.bf16.mxu0 %v1021_v20  ;;  %981 = vmatprep.mubr.bf16.mxu1 %v1029_v21 }
  0x60   :  { %966 = vmatmul.mubr.bf16.gmra.mrb[12].mxu0 %v1022_v22  ;;  %982 = vmatmul.mubr.bf16.gmra.mrb[12].mxu1 %v1030_v23 }
 0x11b   :  { %v955_v24 = vpop.f32.mrb[0].mxu0  ;;  %v971_v25 = vpop.f32.mrb[0].mxu1 }
 0x11c   :  { %v270_v26 = vpop.f32.mrb[1].mxu0  ;;  %v334_v27 = vpop.f32.mrb[1].mxu1 }
 0x11d   :  { %v956_v28 = vpop.f32.mrb[2].mxu0  ;;  %v972_v29 = vpop.f32.mrb[2].mxu1 }
 0x11e   :  { %v398_v30 = vpack.c.bf16 %v956_v28, %v955_v24  ;;  %v273_v31 = vpop.f32.mrb[3].mxu0  ;;  %v1183_v32 = vpack.c.bf16 %v972_v29, %v971_v25  ;;  %v337_v33 = vpop.f32.mrb[3].mxu1 }
 0x11f   :  { %v397_v34 = vpack.c.bf16 %v273_v31, %v270_v26  ;;  %v1185_v35 = vpack.c.bf16 %v337_v33, %v334_v27 }
 0x120   :  { %898 = vst [vmem:[#allocation7 + $0x8] sm:$0xff] %v398_v30   ;;  %906 = vst [vmem:[#allocation7 + $0x48] sm:$0xff] %v1183_v32   ;;  %v559_v36 = vunpack.c.l.bf16 %v398_v30  ;;  %v560_v39 = vunpack.c.h.bf16 %v398_v30 }
 0x121   :  { %822 = vst [vmem:[#allocation7] sm:$0xff] %v397_v34   ;;  %v557_v37 = vunpack.c.l.bf16 %v397_v34  ;;  %v558_v38 = vunpack.c.h.bf16 %v397_v34  ;;  %905 = vst [vmem:[#allocation7 + $0x40] sm:$0xff] %v1185_v35  }
 0x122   :  { %v628_v47 = vmul.f32 %v559_v36, %v559_v36  ;;  %v629_v52 = vmul.f32 %v560_v39, %v560_v39 }
 0x123   :  { %v589_v40 = vadd.f32 %v558_v38, %v557_v37  ;;  %v626_v41 = vmul.f32 %v557_v37, %v557_v37  ;;  %v627_v42 = vmul.f32 %v558_v38, %v558_v38  ;;  %v959_v43 = vpop.f32.mrb[4].mxu0  ;;  %v975_v44 = vpop.f32.mrb[4].mxu1 }
 0x124   :  { %v286_v45 = vpop.f32.mrb[5].mxu0  ;;  %v350_v46 = vpop.f32.mrb[5].mxu1 }
 0x125   :  { %v590_v48 = vadd.f32 %v589_v40, %v559_v36  ;;  %v658_v49 = vadd.f32 %v627_v42, %v626_v41  ;;  %v960_v50 = vpop.f32.mrb[6].mxu0  ;;  %v976_v51 = vpop.f32.mrb[6].mxu1 }
 0x126   :  { %v400_v53 = vpack.c.bf16 %v960_v50, %v959_v43  ;;  %v289_v54 = vpop.f32.mrb[7].mxu0  ;;  %v1189_v55 = vpack.c.bf16 %v976_v51, %v975_v44  ;;  %v353_v56 = vpop.f32.mrb[7].mxu1 }
 0x127   :  { %v659_v57 = vadd.f32 %v658_v49, %v628_v47  ;;  %v399_v58 = vpack.c.bf16 %v289_v54, %v286_v45  ;;  %v591_v59 = vadd.f32 %v590_v48, %v560_v39  ;;  %v1191_v60 = vpack.c.bf16 %v353_v56, %v350_v46 }
 0x128   :  { %900 = vst [vmem:[#allocation7 + $0x18] sm:$0xff] %v400_v53   ;;  %908 = vst [vmem:[#allocation7 + $0x58] sm:$0xff] %v1189_v55   ;;  %v563_v0 = vunpack.c.l.bf16 %v400_v53  ;;  %v564_v5 = vunpack.c.h.bf16 %v400_v53 }
 0x129   :  { %899 = vst [vmem:[#allocation7 + $0x10] sm:$0xff] %v399_v58   ;;  %v561_v61 = vunpack.c.l.bf16 %v399_v58  ;;  %v562_v62 = vunpack.c.h.bf16 %v399_v58  ;;  %v660_v63 = vadd.f32 %v659_v57, %v629_v52  ;;  %907 = vst [vmem:[#allocation7 + $0x50] sm:$0xff] %v1191_v60  }
 0x12a   :  { %v632_v13 = vmul.f32 %v563_v0, %v563_v0  ;;  %v633_v22 = vmul.f32 %v564_v5, %v564_v5 }
 0x12b   :  { %v592_v1 = vadd.f32 %v591_v59, %v561_v61  ;;  %v630_v2 = vmul.f32 %v561_v61, %v561_v61  ;;  %v963_v3 = vpop.f32.mrb[8].mxu0  ;;  %v979_v4 = vpop.f32.mrb[8].mxu1  ;;  %v631_v9 = vmul.f32 %v562_v62, %v562_v62 }
 0x12c   :  { %v302_v6 = vpop.f32.mrb[9].mxu0  ;;  %v366_v7 = vpop.f32.mrb[9].mxu1 }
 0x12d   :  { %v593_v8 = vadd.f32 %v592_v1, %v562_v62  ;;  %v661_v10 = vadd.f32 %v660_v63, %v630_v2  ;;  %v964_v11 = vpop.f32.mrb[10].mxu0  ;;  %v980_v12 = vpop.f32.mrb[10].mxu1 }
 0x12e   :  { %v402_v14 = vpack.c.bf16 %v964_v11, %v963_v3  ;;  %v305_v15 = vpop.f32.mrb[11].mxu0  ;;  %v1195_v16 = vpack.c.bf16 %v980_v12, %v979_v4  ;;  %v369_v17 = vpop.f32.mrb[11].mxu1 }
 0x12f   :  { %v594_v18 = vadd.f32 %v593_v8, %v563_v0  ;;  %v662_v19 = vadd.f32 %v661_v10, %v631_v9  ;;  %v401_v20 = vpack.c.bf16 %v305_v15, %v302_v6  ;;  %v1197_v21 = vpack.c.bf16 %v369_v17, %v366_v7 }
 0x130   :  { %902 = vst [vmem:[#allocation7 + $0x28] sm:$0xff] %v402_v14   ;;  %910 = vst [vmem:[#allocation7 + $0x68] sm:$0xff] %v1195_v16   ;;  %v567_v27 = vunpack.c.l.bf16 %v402_v14  ;;  %v568_v34 = vunpack.c.h.bf16 %v402_v14 }
 0x131   :  { %v663_v23 = vadd.f32 %v662_v19, %v632_v13  ;;  %901 = vst [vmem:[#allocation7 + $0x20] sm:$0xff] %v401_v20   ;;  %v565_v24 = vunpack.c.l.bf16 %v401_v20  ;;  %v566_v25 = vunpack.c.h.bf16 %v401_v20  ;;  %v595_v26 = vadd.f32 %v594_v18, %v564_v5  ;;  %909 = vst [vmem:[#allocation7 + $0x60] sm:$0xff] %v1197_v21  }
 0x132   :  { %v636_v43 = vmul.f32 %v567_v27, %v567_v27  ;;  %v637_v52 = vmul.f32 %v568_v34, %v568_v34 }
 0x133   :  { %v596_v28 = vadd.f32 %v595_v26, %v565_v24  ;;  %v634_v29 = vmul.f32 %v565_v24, %v565_v24  ;;  %v664_v30 = vadd.f32 %v663_v23, %v633_v22  ;;  %v967_v31 = vpop.f32.mrb[12].mxu0  ;;  %v983_v33 = vpop.f32.mrb[12].mxu1  ;;  %v635_v39 = vmul.f32 %v566_v25, %v566_v25 }
 0x134   :  { %v318_v36 = vpop.f32.mrb[13].mxu0  ;;  %v382_v37 = vpop.f32.mrb[13].mxu1 }
 0x135   :  { %v597_v38 = vadd.f32 %v596_v28, %v566_v25  ;;  %v665_v40 = vadd.f32 %v664_v30, %v634_v29  ;;  %v968_v41 = vpop.f32.mrb[14].mxu0  ;;  %v984_v42 = vpop.f32.mrb[14].mxu1 }
 0x136   :  { %v404_v44 = vpack.c.bf16 %v968_v41, %v967_v31  ;;  %v321_v45 = vpop.f32.mrb[15].mxu0  ;;  %v1201_v46 = vpack.c.bf16 %v984_v42, %v983_v33  ;;  %v385_v47 = vpop.f32.mrb[15].mxu1 }
 0x137   :  { %v598_v48 = vadd.f32 %v597_v38, %v567_v27  ;;  %v666_v49 = vadd.f32 %v665_v40, %v635_v39  ;;  %v403_v50 = vpack.c.bf16 %v321_v45, %v318_v36  ;;  %v1203_v51 = vpack.c.bf16 %v385_v47, %v382_v37 }
 0x138   :  { %904 = vst [vmem:[#allocation7 + $0x38] sm:$0xff] %v404_v44   ;;  %912 = vst [vmem:[#allocation7 + $0x78] sm:$0xff] %v1201_v46  }
 0x139   :  { %v667_v53 = vadd.f32 %v666_v49, %v636_v43  ;;  %903 = vst [vmem:[#allocation7 + $0x30] sm:$0xff] %v403_v50   ;;  %v569_v54 = vunpack.c.l.bf16 %v403_v50  ;;  %v570_v56 = vunpack.c.h.bf16 %v403_v50  ;;  %v599_v57 = vadd.f32 %v598_v48, %v568_v34  ;;  %911 = vst [vmem:[#allocation7 + $0x70] sm:$0xff] %v1203_v51  }
 0x13a   :  { %1086 = shalt.err (!%p1083_p6)
}
 0x13b   :  { %s1087_s14 = scalar_lea.hbm %s1252_s2, 2048 }
 0x13c   :  { %p1088_p7 = scmp.ne.s32.totalorder %s1252_s2, %s1087_s14  ;;  %p1091_p8 = scmp.lt.u32.totalorder %s1087_s14, %s1252_s2 }
 0x13e   :  { %p1093_p9 = pnand %p1091_p8, %p1088_p7 }
 0x140   :  { %1096 = shalt.err (!%p1093_p9)
}
 0x141   :  { %709 = dma.vmem_to_hbm [thread:$0]  %s704_s10, 2048, %s1252_s2, [#allocation4], %s1128_s22, %s1128_s22, %s1129_s23   ;;  %v571_v58 = vunpack.c.l.bf16 %v404_v44  ;;  %v600_v59 = vadd.f32 %v599_v57, %v569_v54  ;;  %v638_v61 = vmul.f32 %v569_v54, %v569_v54  ;;  %v668_v62 = vadd.f32 %v667_v53, %v637_v52 }
 0x142   :  { %v572_v63 = vunpack.c.h.bf16 %v404_v44  ;;  %v639_v1 = vmul.f32 %v570_v56, %v570_v56  ;;  %v573_v6 = vunpack.c.l.bf16 %v1185_v35  ;;  %v574_v9 = vunpack.c.h.bf16 %v1185_v35  ;;  %s1132_s2 = smov [#allocation8]  }
 0x143   :  { %v601_v0 = vadd.f32 %v600_v59, %v570_v56  ;;  %v669_v2 = vadd.f32 %v668_v62, %v638_v61  ;;  %v640_v3 = vmul.f32 %v571_v58, %v571_v58  ;;  %v575_v11 = vunpack.c.l.bf16 %v1183_v32  ;;  %s716_s21 = sshll.u32 %s1132_s2, 4  ;;  %s717_s21 = int_to_ptr.vmem [resolvable:$true] %s716_s21 }
 0x144   :  { %v641_v7 = vmul.f32 %v572_v63, %v572_v63  ;;  %v642_v13 = vmul.f32 %v573_v6, %v573_v6  ;;  %v576_v15 = vunpack.c.h.bf16 %v1183_v32  ;;  %v643_v18 = vmul.f32 %v574_v9, %v574_v9  ;;  %s1097_s22 = scalar_lea.vmem %s717_s21, 32  ;;  %p1102_p11 = scmp.lt.s32.totalorder %s717_s21, %s717_s21 }
 0x145   :  { %v602_v4 = vadd.f32 %v601_v0, %v571_v58  ;;  %v670_v5 = vadd.f32 %v669_v2, %v639_v1  ;;  %v644_v20 = vmul.f32 %v575_v11, %v575_v11  ;;  %v577_v24 = vunpack.c.l.bf16 %v1191_v60  ;;  %p1098_p10 = scmp.ne.s32.totalorder %s717_s21, %s1097_s22  ;;  %p1103_p12 = scmp.lt.s32.totalorder %s1097_s22, %s1097_s22 }
 0x146   :  { %v645_v25 = vmul.f32 %v576_v15, %v576_v15  ;;  %v578_v35 = vunpack.c.h.bf16 %v1191_v60  ;;  %v579_v28 = vunpack.c.l.bf16 %v1189_v55  ;;  %v580_v32 = vunpack.c.h.bf16 %v1189_v55 }
 0x147   :  { %v671_v8 = vadd.f32 %v670_v5, %v640_v3  ;;  %v603_v10 = vadd.f32 %v602_v4, %v572_v63  ;;  %v646_v30 = vmul.f32 %v577_v24, %v577_v24  ;;  %v581_v40 = vunpack.c.l.bf16 %v1197_v21  ;;  %p1104_p13 = por %p1103_p12, %p1102_p11 }
 0x148   :  { %v647_v34 = vmul.f32 %v578_v35, %v578_v35  ;;  %v648_v37 = vmul.f32 %v579_v28, %v579_v28  ;;  %v649_v41 = vmul.f32 %v580_v32, %v580_v32  ;;  %v582_v60 = vunpack.c.h.bf16 %v1197_v21 }
 0x149   :  { %v604_v12 = vadd.f32 %v603_v10, %v573_v6  ;;  %v672_v14 = vadd.f32 %v671_v8, %v641_v7  ;;  %v583_v44 = vunpack.c.l.bf16 %v1195_v16  ;;  %v650_v47 = vmul.f32 %v581_v40, %v581_v40  ;;  %p1105_p0 = pnand %p1104_p13, %p1098_p10 }
 0x14a   :  { %v584_v55 = vunpack.c.h.bf16 %v1195_v16  ;;  %v651_v50 = vmul.f32 %v582_v60, %v582_v60  ;;  %v585_v57 = vunpack.c.l.bf16 %v1203_v51  ;;  %v586_v21 = vunpack.c.h.bf16 %v1203_v51 }
 0x14b   :  { %v605_v17 = vadd.f32 %v604_v12, %v574_v9  ;;  %v673_v19 = vadd.f32 %v672_v14, %v642_v13  ;;  %v652_v53 = vmul.f32 %v583_v44, %v583_v44  ;;  %v587_v62 = vunpack.c.l.bf16 %v1201_v46 }
 0x14c   :  { %v653_v58 = vmul.f32 %v584_v55, %v584_v55  ;;  %v654_v0 = vmul.f32 %v585_v57, %v585_v57  ;;  %v588_v16 = vunpack.c.h.bf16 %v1201_v46  ;;  %v655_v3 = vmul.f32 %v586_v21, %v586_v21 }
 0x14d   :  { %v606_v22 = vadd.f32 %v605_v17, %v575_v11  ;;  %v674_v23 = vadd.f32 %v673_v19, %v643_v18  ;;  %v656_v5 = vmul.f32 %v587_v62, %v587_v62  ;;  %vm695_vm0 = vcmask 1040384  }
 0x14e   :  { %v657_v8 = vmul.f32 %v588_v16, %v588_v16 }
 0x14f   :  { %v675_v26 = vadd.f32 %v674_v23, %v644_v20  ;;  %v607_v27 = vadd.f32 %v606_v22, %v576_v15 }
 0x151   :  { %v608_v29 = vadd.f32 %v607_v27, %v577_v24  ;;  %v676_v31 = vadd.f32 %v675_v26, %v645_v25 }
 0x153   :  { %v609_v33 = vadd.f32 %v608_v29, %v578_v35  ;;  %v677_v36 = vadd.f32 %v676_v31, %v646_v30 }
 0x155   :  { %v610_v38 = vadd.f32 %v609_v33, %v579_v28  ;;  %v678_v39 = vadd.f32 %v677_v36, %v647_v34 }
 0x157   :  { %v679_v42 = vadd.f32 %v678_v39, %v648_v37  ;;  %v611_v43 = vadd.f32 %v610_v38, %v580_v32 }
 0x159   :  { %v612_v45 = vadd.f32 %v611_v43, %v581_v40  ;;  %v680_v48 = vadd.f32 %v679_v42, %v649_v41 }
 0x15b   :  { %v613_v49 = vadd.f32 %v612_v45, %v582_v60  ;;  %v681_v52 = vadd.f32 %v680_v48, %v650_v47 }
 0x15d   :  { %v614_v54 = vadd.f32 %v613_v49, %v583_v44  ;;  %v682_v56 = vadd.f32 %v681_v52, %v651_v50 }
 0x15f   :  { %v683_v59 = vadd.f32 %v682_v56, %v652_v53  ;;  %v615_v61 = vadd.f32 %v614_v54, %v584_v55 }
 0x161   :  { %v616_v63 = vadd.f32 %v615_v61, %v585_v57  ;;  %v684_v1 = vadd.f32 %v683_v59, %v653_v58 }
 0x163   :  { %v617_v2 = vadd.f32 %v616_v63, %v586_v21  ;;  %v685_v4 = vadd.f32 %v684_v1, %v654_v0 }
 0x165   :  { %v618_v6 = vadd.f32 %v617_v2, %v587_v62  ;;  %v686_v7 = vadd.f32 %v685_v4, %v655_v3 }
 0x167   :  { %v619_v9 = vadd.f32 %v618_v6, %v588_v16  ;;  %v687_v10 = vadd.f32 %v686_v7, %v656_v5 }
 0x169   :  { %v620_v11 = vrot.slane %v619_v9, 4  ;;  %v688_v12 = vadd.f32 %v687_v10, %v657_v8 }
 0x16b   :  { %v621_v51 = vadd.f32 %v620_v11, %v619_v9  ;;  %v689_v13 = vrot.slane %v688_v12, 4 }
 0x16d   :  { %v622_v14 = vrot.slane %v621_v51, 2  ;;  %v690_v15 = vadd.f32 %v689_v13, %v688_v12 }
 0x16f   :  { %v623_v17 = vadd.f32 %v622_v14, %v621_v51  ;;  %v691_v18 = vrot.slane %v690_v15, 2 }
 0x171   :  { %v624_v19 = vrot.slane %v623_v17, 1  ;;  %v692_v20 = vadd.f32 %v691_v18, %v690_v15 }
 0x173   :  { %v693_v46 = vrot.slane %v692_v20, 1  ;;  %v625_v22 = vadd.f32 %v624_v19, %v623_v17 }
 0x175   :  { %v694_v23 = vadd.f32 %v693_v46, %v692_v20 }
 0x177   :  { %v696_v24 = vsel %vm695_vm0, %v625_v22, %v694_v23 }
 0x178   :  { %697 = vst [vmem:[#allocation8] sm:$0x3] %v696_v24 }
 0x179   :  { %1108 = shalt.err (!%p1105_p0)
}
 0x17a   :  { %s1109_s25 = scalar_lea.hbm %s1253_s3, 32 }
 0x17b   :  { %p1110_p1 = scmp.ne.s32.totalorder %s1253_s3, %s1109_s25  ;;  %p1113_p2 = scmp.lt.u32.totalorder %s1109_s25, %s1253_s3 }
 0x17d   :  { %p1115_p3 = pnand %p1113_p2, %p1110_p1 }
 0x17f   :  { %1118 = shalt.err (!%p1115_p3)
}
 0x180   :  { %719 = dma.vmem_to_hbm [thread:$0]  %s717_s21, 32, %s1253_s3, [#allocation9]  }
 0x181   :  { %1123 = dma.done.wait [#allocation4], 2048  }
 0x182   :  { %1124 = vsyncadd [#allocation4], 4294965248 }
 0x183   :  { %1125 = dma.done.wait [#allocation9], 32  }
 0x184   :  { %1126 = vsyncadd [#allocation9], 4294967264 }
 0x185   :  { %726 = vsyncpa [#allocation3], 1 }
 0x186   :  { %727 = vsyncpa [#allocation6], 1 }
 0x187   :  { %728 = vsyncpa [#allocation4], 1 }
 0x188   :  { %729 = vsyncpa [#allocation9], 1 }

// kernel: bottleneck.5
= control target key start
LH: loop header
LB: loop body
LE: loop exit
PB: predicated region body
PF: predicated region fallthrough
CT: control target
= control target key end

     0   :  { %11 = vsyncpa [#allocation4], 0  ;;  %s4601_s0 = inlined_call_operand.hbm [shape: bf16[256,128], index: 0, kind: input, shape index: {}]   ;;  %s4602_s1 = inlined_call_operand.hbm [shape: f32[1,128], index: 1, kind: input, shape index: {}]   ;;  %s4603_s2 = inlined_call_operand.hbm [shape: f32[1,128], index: 2, kind: input, shape index: {}]   ;;  %s4604_s3 = inlined_call_operand.hbm [shape: bf16[1152,128], index: 3, kind: input, shape index: {}]   ;;  %s4605_s4 = inlined_call_operand.hbm [shape: bf16[256,128], index: 4, kind: output, shape index: {0}]   ;;  %s4606_s5 = inlined_call_operand.hbm [shape: f32[2,2,128], index: 5, kind: output, shape index: {1}]  }
   0x1   :  { %13 = vsyncpa [#allocation4 + $0x1], 0 }
   0x2   :  { %14 = vsyncpa [#allocation7], 0 }
   0x3   :  { %15 = vsyncpa [#allocation10], 0 }
   0x4   :  { %16 = vsyncpa [#allocation5], 0 }
   0x5   :  { %18 = vsyncpa [#allocation5 + $0x1], 0 }
   0x6   :  { %19 = vsyncpa [#allocation13], 0 }
   0x7   :  { %21 = vsyncpa [#allocation13 + $0x1], 0  ;;  %s3866_s18 = smov 0   ;;  %s3868_s19 = smov 0  }
   0x8   :  { %s3870_s20 = smov 0   ;;  %s3872_s21 = smov 0  }
   0x9 LB: > { %s3887_s22 = sadd.s32 4294967295, %s3823_s21   ;;  %s2795_s23 = sadd.s32 4294967294, %s3823_s21   ;;  %s3823_s21 = sphi %s3872_s21, %s4639_s21   ;;  %s3819_s20 = sphi %s3870_s20, %s4638_s20   ;;  %s3815_s19 = sphi %s3868_s19, %s4637_s19   ;;  %s3811_s18 = sphi %s3866_s18, %s4636_s18  }
   0xa   : > { %p47_p0 = scmp.ne.s32.totalorder %s3815_s19, %s3811_s18  ;;  %p4607_p1 = scmp.eq.s32.totalorder %s3887_s22, 0 }
   0xb   : > { %p140_p3 = scmp.eq.s32.totalorder %s2795_s23, 1  ;;  %p2796_p5 = scmp.ge.s32.totalorder %s3823_s21, 1 }
   0xc   : > { %p3896_p4 = por %p4607_p1, %p47_p0  ;;  %p173_p7 = scmp.lt.s32.totalorder %s3823_s21, 3 }
   0xd   : > { %p3901_p6 = por %p140_p3, %p47_p0  ;;  %s3825_s27 = smov [#allocation6]  }
   0xe   : > { %s4610_s24 = scalar_select %p3896_p4, 1, 0 }
   0xf   : > { %s4611_s25 = scalar_select %p3901_p6, 1, 0 }
  0x10   : > { %p3906_p8 = pnand %p2796_p5, %p173_p7  ;;  %s186_s28 = sshll.u32 %s3825_s27, 4  ;;  %s187_s28 = int_to_ptr.vmem [resolvable:$true] %s186_s28 }
  0x11   : > { %s3826_s29 = smov [#allocation8]   ;;  %s3827_s7 = smov [#allocation9]  }
  0x12   : > { %s4612_s26 = scalar_select %p3906_p8, 1, 0 }
  0x13   : > { %p3450_p10 = pneg %p3906_p8  ;;  %s197_s30 = sshll.u32 %s3826_s29, 4  ;;  %s3919_s30 = int_to_ptr.vmem [resolvable:$true] %s197_s30 }
  0x14   : > { %s207_s8 = sshll.u32 %s3827_s7, 4  ;;  %s3603_s11 = scalar_lea.hbm %s4602_s1, 16  ;;  %s3921_s8 = int_to_ptr.vmem [resolvable:$true] %s207_s8 }
  0x15   : > { %p3915_p11 = pnand %p3450_p10, %p4607_p1  ;;  %p3604_p12 = scmp.ne.s32.totalorder %s4602_s1, %s3603_s11 }
  0x16   : > { %p3610_p5 = scmp.lt.u32.totalorder %s3603_s11, %s4602_s1 }
  0x17   : > { %p3931_p13 = pneg %p3915_p11 }
  0x19   : > { %p3606_p0 = pnand %p3931_p13, %p3604_p12 }
  0x1b   : > { %p3607_p3 = pneg %p3606_p0 }
  0x1d   : > { %p3612_p7 = pnand %p3610_p5, %p3607_p3 }
  0x1f   : > { %3615 = shalt.err (!%p3612_p7)
}
  0x20   : > { %s3616_s17 = scalar_lea.vmem %s187_s28, 16  ;;  %s3623_s23 = scalar_lea.vmem %s187_s28, 32 }
  0x21   : > { %p3617_p10 = scmp.ne.s32.totalorder %s187_s28, %s3616_s17  ;;  %p3624_p2 = scmp.lt.s32.totalorder %s187_s28, %s187_s28 }
  0x22   : > { %p3625_p6 = scmp.lt.s32.totalorder %s3623_s23, %s3616_s17 }
  0x23   : > { %p3619_p9 = pnand %p3617_p10, %p3931_p13 }
  0x24   : > { %p3626_p4 = por %p3625_p6, %p3624_p2 }
  0x25   : > { %p3620_p1 = pneg %p3619_p9 }
  0x27   : > { %p3627_p8 = pnand %p3626_p4, %p3620_p1 }
  0x29   : > { %3630 = shalt.err (!%p3627_p8)
}
  0x2a   : > { %3453 = dma.hbm_to_vmem [thread:$0]  (!%p3915_p11), %s4602_s1, 16, %s187_s28, [#allocation7]  }
  0x2b   : > { %s3631_s10 = scalar_lea.hbm %s4603_s2, 16 }
  0x2c   : > { %p3632_p9 = scmp.ne.s32.totalorder %s4603_s2, %s3631_s10  ;;  %p3638_p1 = scmp.lt.u32.totalorder %s3631_s10, %s4603_s2 }
  0x2e   : > { %p3634_p12 = pnand %p3632_p9, %p3931_p13 }
  0x30   : > { %p3635_p2 = pneg %p3634_p12 }
  0x32   : > { %p3640_p4 = pnand %p3638_p1, %p3635_p2 }
  0x34   : > { %3643 = shalt.err (!%p3640_p4)
}
  0x35   : > { %s3644_s28 = scalar_lea.vmem %s3919_s30, 16  ;;  %s3651_s16 = scalar_lea.vmem %s3919_s30, 32 }
  0x36   : > { %p3645_p6 = scmp.ne.s32.totalorder %s3919_s30, %s3644_s28  ;;  %p3652_p3 = scmp.lt.s32.totalorder %s3919_s30, %s3919_s30 }
  0x37   : > { %p3653_p5 = scmp.lt.s32.totalorder %s3651_s16, %s3644_s28 }
  0x38   : > { %p3647_p8 = pnand %p3645_p6, %p3931_p13 }
  0x39   : > { %p3654_p7 = por %p3653_p5, %p3652_p3 }
  0x3a   : > { %p3648_p0 = pneg %p3647_p8 }
  0x3c   : > { %p3655_p10 = pnand %p3654_p7, %p3648_p0 }
  0x3e   : > { %3658 = shalt.err (!%p3655_p10)
}
  0x3f   : > { %3456 = dma.hbm_to_vmem [thread:$0]  (!%p3915_p11), %s4603_s2, 16, %s3919_s30, [#allocation7]  }
  0x40   : > { %s3659_s7 = scalar_lea.hbm %s4604_s3, 9216 }
  0x41   : > { %p3660_p9 = scmp.ne.s32.totalorder %s4604_s3, %s3659_s7  ;;  %p3666_p1 = scmp.lt.u32.totalorder %s3659_s7, %s4604_s3 }
  0x43   : > { %p3662_p12 = pnand %p3660_p9, %p3931_p13 }
  0x45   : > { %p3663_p2 = pneg %p3662_p12 }
  0x47   : > { %p3668_p4 = pnand %p3666_p1, %p3663_p2 }
  0x49   : > { %3671 = shalt.err (!%p3668_p4)
}
  0x4a   : > { %s3672_s30 = scalar_lea.vmem %s3921_s8, 9216  ;;  %p3680_p3 = scmp.lt.s32.totalorder %s3921_s8, %s3921_s8 }
  0x4b   : > { %p3673_p6 = scmp.ne.s32.totalorder %s3921_s8, %s3672_s30  ;;  %p3681_p5 = scmp.lt.s32.totalorder %s3672_s30, %s3672_s30 }
  0x4d   : > { %p3675_p8 = pnand %p3673_p6, %p3931_p13  ;;  %p3682_p7 = por %p3681_p5, %p3680_p3 }
  0x4f   : > { %p3676_p0 = pneg %p3675_p8 }
  0x51   : > { %p3683_p10 = pnand %p3682_p7, %p3676_p0 }
  0x53   : > { %3686 = shalt.err (!%p3683_p10)
}
  0x54   : > { %s3828_s13 = smov 64   ;;  %s3829_s14 = smov 4  }
  0x55   : > { %3459 = dma.hbm_to_vmem [thread:$0]  (!%p3915_p11), %s4604_s3, 9216, %s3921_s8, [#allocation10], %s3828_s13, %s3828_s13, %s3829_s14  }
  0x56   : > { %s3998_s16 = sadd.s32 1, %s3823_s21   ;;  %s34_s23 = sadd.s32 1, %s3819_s20 }
  0x57   : > { %s31_s17 = ssub.s32 %s3823_s21, %s3998_s16  ;;  %p41_p9 = scmp.ne.s32.totalorder %s3819_s20, %s3815_s19 }
  0x58   : > { %p32_p13 = scmp.eq.s32.totalorder %s31_s17, 0  ;;  %p42_p12 = scmp.eq.s32.totalorder %s3823_s21, 0 }
  0x59   : > { %p3474_p2 = scmp.lt.s32.totalorder %s3823_s21, 2  ;;  %p4615_p4 = scmp.eq.s32.totalorder %s3887_s22, 1 }
  0x5a   : > { %s4008_s27 = scalar_select %p32_p13, %s3819_s20, %s34_s23  }
  0x5b   : > { %p43_p1 = por %p42_p12, %p41_p9  ;;  %p4012_p6 = por %p4615_p4, %p41_p9 }
  0x5c   : > { %s221_s29 = sand.u32 1, %s3819_s20   ;;  %s2968_s7 = sshll.u32 %s3823_s21, 9 }
  0x5d   : > { %s2801_s8 = sshll.u32 %s221_s29, 5  ;;  %s4021_s11 = scalar_lea.hbm %s4601_s0, %s2968_s7 }
  0x5e   : > { %s225_s12 = scalar_lea.vmem [#allocation3], %s2801_s8  ;;  %p4023_p11 = pnand %p3474_p2, %p43_p1 }
  0x5f   : > { %s232_s30 = sshll.u32 %s225_s12, 4  ;;  %s4029_s28 = scalar_lea.sflag [#allocation4], %s221_s29  ;;  %s4027_s30 = int_to_ptr.vmem [resolvable:$true] %s232_s30 }
  0x60   : > { %s3687_s17 = scalar_lea.hbm %s4021_s11, 512  ;;  %p3689_p0 = pneg %p4023_p11 }
  0x61   : > { %p3688_p8 = scmp.ne.s32.totalorder %s4021_s11, %s3687_s17  ;;  %s3692_s8 = scalar_lea.hbm %s4601_s0, 2048 }
  0x62   : > { %p3693_p7 = scmp.lt.u32.totalorder %s4021_s11, %s4601_s0  ;;  %p3694_p10 = scmp.lt.u32.totalorder %s3692_s8, %s3687_s17 }
  0x63   : > { %p3690_p3 = pnand %p3689_p0, %p3688_p8  ;;  %p3696_p9 = scmp.lt.u32.totalorder %s3687_s17, %s4021_s11 }
  0x64   : > { %p3695_p13 = por %p3694_p10, %p3693_p7 }
  0x65   : > { %p3691_p5 = pneg %p3690_p3 }
  0x66   : > { %p3697_p12 = por %p3696_p9, %p3695_p13 }
  0x68   : > { %p3698_p2 = pnand %p3697_p12, %p3691_p5 }
  0x6a   : > { %3701 = shalt.err (!%p3698_p2)
}
  0x6b   : > { %s3702_s29 = scalar_lea.vmem %s4027_s30, 512  ;;  %s3830_s12 = smov [#allocation3]  }
  0x6c   : > { %p3703_p1 = scmp.ne.s32.totalorder %s4027_s30, %s3702_s29  ;;  %s3707_s23 = sshll.u32 %s3830_s12, 4  ;;  %s3708_s23 = int_to_ptr.vmem [resolvable:$false] %s3707_s23 }
  0x6d   : > { %s3709_s7 = scalar_lea.vmem %s3708_s23, 1024  ;;  %p3710_p3 = scmp.lt.s32.totalorder %s4027_s30, %s3708_s23 }
  0x6e   : > { %p3705_p4 = pnand %p3703_p1, %p3689_p0  ;;  %p3711_p7 = scmp.lt.s32.totalorder %s3709_s7, %s3702_s29 }
  0x70   : > { %p3706_p8 = pneg %p3705_p4  ;;  %p3712_p10 = por %p3711_p7, %p3710_p3 }
  0x72   : > { %p3713_p13 = pnand %p3712_p10, %p3706_p8 }
  0x74   : > { %3716 = shalt.err (!%p3713_p13)
}
  0x75   : > { %3463 = dma.hbm_to_vmem [thread:$0]  (!%p4023_p11), %s4021_s11, 512, %s4027_s30, %s4029_s28, %s3828_s13, %s3828_s13, %s3829_s14  }
  0x76   : > { %p4618_p0 = scmp.ne.s32.totalorder %s4612_s26, 0 }
  0x77   : > { %s4063_s17 = sand.u32 (!%p4618_p0), 1, %s3815_s19   ;;  %p4619_p5 = scmp.ne.s32.totalorder (!%p4618_p0), %s4610_s24, 0 }
  0x78   : > { %244 = sbr.rel (%p4618_p0) target bundleno = 614 (0x266), region = 36  ;;  %s2805_s8 = sshll.u32 (!%p4618_p0), %s4063_s17, 5 }
  0x79   : > { %s247_s9 = scalar_lea.sflag (!%p4618_p0), [#allocation4], %s4063_s17  ;;  %s4069_s15 = scalar_lea.vmem (!%p4618_p0), [#allocation3], %s2805_s8 }
  0x7f   : > { %3790 = dma.done.wait (%p4619_p5), %s247_s9, 512  }
  0x80   : > { %3792 = vsyncadd (%p4619_p5), %s247_s9, 4294966784  ;;  %p4620_p11 = scmp.eq.s32.totalorder %s3887_s22, 0 }
  0x82   : > { %3794 = dma.done.wait (%p4620_p11), [#allocation7], 32   ;;  %p4621_p9 = pmov %p4620_p11 }
  0x84   : > { %3796 = vsyncadd (%p4621_p9), [#allocation7], 4294967264  ;;  %p4622_p12 = pmov %p4621_p9 }
  0x85   : > { %p4623_p2 = pmov %p4621_p9 }
  0x86   : > { %3798 = dma.done.wait (%p4622_p12), [#allocation10], 9216  }
  0x87   : > { %3800 = vsyncadd (%p4623_p2), [#allocation10], 4294958080  ;;  %v3831_v0 = vmov 0   ;;  %v3519_v1 = vld [vmem:[#allocation9 + $0x40] sm:$0xff]   ;;  %v3521_v3 = vld [vmem:[#allocation9 + $0x48] sm:$0xff]   ;;  %vm302_vm0 = vcmask 1040384  }
  0x88   : > { %297 = vst [vmem:[#allocation2] sm:$0xf] %v3831_v0  ;;  %298 = vst [vmem:[#allocation2 + $0x4] sm:$0x1] %v3831_v0  ;;  %v3520_v2 = vld [vmem:[#allocation9 + $0x100] sm:$0xff]   ;;  %3136 = vmatprep.subr.bf16.mxu1 %v3519_v1  ;;  %v3522_v4 = vld [vmem:[#allocation9 + $0x108] sm:$0xff]  }
  0x89   : > { %300 = vst [vmem:[#allocation2 + $0x48] sm:$0xf] %v3831_v0  ;;  %301 = vst [vmem:[#allocation2 + $0x4c] sm:$0x1] %v3831_v0  ;;  %3232 = vmatprep.subr.bf16.mxu0 %v3520_v2  ;;  %3137 = vmatpush3.bf16.msra.mxu1 %v3519_v1  ;;  %v3523_v5 = vld [vmem:[#allocation9 + $0x50] sm:$0xff]   ;;  %v3525_v7 = vld [vmem:[#allocation9 + $0x58] sm:$0xff]  }
  0x8a   : > { %3233 = vmatpush3.bf16.msra.mxu0 %v3520_v2  ;;  %3138 = vmatprep.subr.bf16.mxu1 %v3521_v3  ;;  %v3524_v6 = vld [vmem:[#allocation9 + $0x110] sm:$0xff]   ;;  %vm303_vm1 = vsmask.f32 256  ;;  %vm335_vm2 = vsmask.f32 7938  ;;  %v3526_v8 = vld [vmem:[#allocation9 + $0x118] sm:$0xff]  }
  0x8b   : > { %3234 = vmatprep.subr.bf16.mxu0 %v3522_v4  ;;  %vm4084_vm3 = vmand %vm302_vm0, %vm303_vm1  ;;  %v3527_v11 = vld [vmem:[#allocation9 + $0x60] sm:$0xff]   ;;  %v3529_v13 = vld [vmem:[#allocation9 + $0x68] sm:$0xff]   ;;  %vm534_vm5 = vcmask 1043456   ;;  %vm616_vm6 = vsmask.f32 3328  ;;  %vm1037_vm10 = vcmask 1042432  }
  0x8c   : > { %vm4090_vm4 = vmand %vm302_vm0, %vm335_vm2  ;;  %v3528_v12 = vld [vmem:[#allocation9 + $0x120] sm:$0xff]   ;;  %v3530_v14 = vld [vmem:[#allocation9 + $0x128] sm:$0xff]   ;;  %vm617_vm7 = vsmask.f32 7440  ;;  %vm1038_vm11 = vcmask 1046532   ;;  %s286_s24 = scalar_lea.vmem [#allocation11], %s2805_s8 }
  0x8d   : > { %3139 = vmatpush3.bf16.msra.mxu1 %v3521_v3  ;;  %v308_v16 = vld [vmem:[#allocation2 + $0x8] sm:$0x1]  ;;  %v340_v21 = vld [vmem:[#allocation2 + $0xc] sm:$0x1]  ;;  %v2987_v22 = vld [vmem:[%s4069_s15] sm:$0xff]   ;;  %s2648_s26 = sshll.u32 %s286_s24, 4  ;;  %s4518_s26 = int_to_ptr.vmem [resolvable:$true] %s2648_s26 }
  0x8e   : > { %3235 = vmatpush3.bf16.msra.mxu0 %v3522_v4  ;;  %3140 = vmatprep.subr.bf16.mxu1 %v3523_v5  ;;  %v309_v19 = vsel %vm4084_vm3, 0, %v308_v16  ;;  %v3531_v23 = vld [vmem:[#allocation9 + $0x70] sm:$0xff]   ;;  %v341_v24 = vsel %vm4090_vm4, 0, %v340_v21  ;;  %v2988_v25 = vunpack.c.l.bf16 %v2987_v22  ;;  %v4103_v26 = vld [vmem:[#allocation6] ss:$0 sm:$0xff]  ;;  %v2989_v28 = vunpack.c.h.bf16 %v2987_v22  ;;  %v3022_v37 = vld [vmem:[%s4069_s15 + $0x8] sm:$0xff]  }
  0x8f   : > { %3236 = vmatprep.subr.bf16.mxu0 %v3524_v6  ;;  %v305_v15 = vld [vmem:[#allocation2] sm:$0x1]  ;;  %v337_v17 = vld [vmem:[#allocation2 + $0x4] sm:$0x1]  ;;  %310 = vst [vmem:[#allocation2 + $0x8] sm:$0x1] %v309_v19  ;;  %v2992_v42 = vunpack.c.l.bf16 %v3022_v37  ;;  %v2993_v47 = vunpack.c.h.bf16 %v3022_v37  ;;  %vm4137_vm8 = vmand %vm534_vm5, %vm335_vm2 }
  0x90   : > { %v306_v18 = vsel %vm4084_vm3, 0, %v305_v15  ;;  %v338_v20 = vsel %vm4090_vm4, 0, %v337_v17  ;;  %v4105_v27 = vld [vmem:[#allocation8] ss:$0 sm:$0xff]  ;;  %342 = vst [vmem:[#allocation2 + $0xc] sm:$0x1] %v341_v24  ;;  %v390_v31 = vmul.f32 %v2988_v25, %v4103_v26  ;;  %v391_v34 = vmul.f32 %v2989_v28, %v4103_v26  ;;  %vm4164_vm9 = vmor %vm616_vm6, %vm617_vm7 }
  0x91   : > { %3141 = vmatpush3.bf16.msra.mxu1 %v3523_v5  ;;  %307 = vst [vmem:[#allocation2] sm:$0x1] %v306_v18  ;;  %339 = vst [vmem:[#allocation2 + $0x4] sm:$0x1] %v338_v20  ;;  %v311_v29 = vld [vmem:[#allocation2 + $0x10] sm:$0x1]  ;;  %v392_v51 = vmul.f32 %v2992_v42, %v4103_v26  ;;  %v393_v55 = vmul.f32 %v2993_v47, %v4103_v26 }
  0x92   : > { %3237 = vmatpush3.bf16.msra.mxu0 %v3524_v6  ;;  %3142 = vmatprep.subr.bf16.mxu1 %v3525_v7  ;;  %v3532_v30 = vld [vmem:[#allocation9 + $0x130] sm:$0xff]   ;;  %v312_v32 = vsel %vm4084_vm3, 0, %v311_v29  ;;  %v343_v33 = vld [vmem:[#allocation2 + $0x14] sm:$0x1]  ;;  %v314_v36 = vld [vmem:[#allocation2 + $0x18] sm:$0x1]  ;;  %v405_v38 = vadd.f32 %v4105_v27, %v390_v31  ;;  %v406_v39 = vadd.f32 %v4105_v27, %v391_v34 }
  0x93   : > { %3238 = vmatprep.subr.bf16.mxu0 %v3526_v8  ;;  %313 = vst [vmem:[#allocation2 + $0x10] sm:$0x1] %v312_v32  ;;  %v344_v35 = vsel %vm4090_vm4, 0, %v343_v33  ;;  %v315_v40 = vsel %vm4084_vm3, 0, %v314_v36  ;;  %v346_v41 = vld [vmem:[#allocation2 + $0x1c] sm:$0x1]  ;;  %v407_v59 = vadd.f32 %v4105_v27, %v392_v51  ;;  %v408_v60 = vadd.f32 %v4105_v27, %v393_v55  ;;  %vm4349_vm12 = vmor %vm1037_vm10, %vm1038_vm11 }
  0x94   : > { %345 = vst [vmem:[#allocation2 + $0x14] sm:$0x1] %v344_v35  ;;  %v317_v43 = vld [vmem:[#allocation2 + $0x20] sm:$0x1]  ;;  %316 = vst [vmem:[#allocation2 + $0x18] sm:$0x1] %v315_v40 }
  0x95   : > { %3143 = vmatpush3.bf16.msra.mxu1 %v3525_v7  ;;  %v347_v44 = vsel %vm4090_vm4, 0, %v346_v41  ;;  %v318_v45 = vsel %vm4084_vm3, 0, %v317_v43  ;;  %v349_v46 = vld [vmem:[#allocation2 + $0x24] sm:$0x1]  ;;  %v3533_v48 = vld [vmem:[#allocation9 + $0x78] sm:$0xff]   ;;  %v413_v49 = vmax.f32 %v405_v38, 0.0 }
  0x96   : > { %3239 = vmatpush3.bf16.msra.mxu0 %v3526_v8  ;;  %3144 = vmatprep.subr.bf16.mxu1 %v3527_v11  ;;  %v414_v50 = vmax.f32 %v406_v39, 0.0  ;;  %348 = vst [vmem:[#allocation2 + $0x1c] sm:$0x1] %v347_v44  ;;  %319 = vst [vmem:[#allocation2 + $0x20] sm:$0x1] %v318_v45  ;;  %v350_v52 = vsel %vm4090_vm4, 0, %v349_v46 }
  0x97   : > { %3240 = vmatprep.subr.bf16.mxu0 %v3528_v12  ;;  %v3534_v53 = vld [vmem:[#allocation9 + $0x138] sm:$0xff]   ;;  %351 = vst [vmem:[#allocation2 + $0x24] sm:$0x1] %v350_v52  ;;  %v2969_v56 = vpack.c.bf16 %v413_v49, %v413_v49  ;;  %v4132_v0 = vld [vmem:[#allocation9] sm:$0xff]   ;;  %v415_v4 = vmax.f32 %v407_v59, 0.0  ;;  %v416_v7 = vmax.f32 %v408_v60, 0.0 }
  0x98   : > { %v4125_v54 = vld [vmem:[#allocation2] sm:$0xf]  ;;  %v2970_v58 = vpack.c.bf16 %v414_v50, %v414_v50  ;;  %v4134_v3 = vld [vmem:[#allocation9 + $0x140] sm:$0xff]   ;;  %v536_v6 = vld [vmem:[#allocation2 + $0x8] sm:$0xf]  ;;  %s2985_s13 = sshll.u32 %s3887_s22, 9 }
  0x99   : > { %3145 = vmatpush3.bf16.msra.mxu1 %v3527_v11  ;;  %v620_v57 = vshrl.u32 %v4125_v54, 16  ;;  %v454_v61 = vshrl.u32 %v2969_v56, 16  ;;  %v457_v62 = vshll.u32 %v2969_v56, 16  ;;  %v623_v63 = vshll.u32 %v4125_v54, 16  ;;  %v539_v11 = vld [vmem:[#allocation2 + $0xc] sm:$0x1]  ;;  %s4523_s30 = scalar_lea.hbm %s4605_s4, %s2985_s13 }
  0x9a   : > { %3241 = vmatpush3.bf16.msra.mxu0 %v3528_v12  ;;  %3146 = vmatprep.subr.bf16.mxu1 %v3529_v13  ;;  %v462_v1 = vshrl.u32 %v2970_v58, 16  ;;  %v465_v2 = vshll.u32 %v2970_v58, 16  ;;  %v4141_v12 = vld [vmem:[#allocation2 + $0x4] sm:$0x1]  ;;  %v542_v15 = vld [vmem:[#allocation2 + $0x10] sm:$0xf]  ;;  %v2971_v16 = vpack.c.bf16 %v415_v4, %v415_v4  ;;  %v2972_v21 = vpack.c.bf16 %v416_v7, %v416_v7 }
  0x9b   : > { %3242 = vmatprep.subr.bf16.mxu0 %v3530_v14  ;;  %v456_v5 = vrot.slane %v454_v61, 7  ;;  %v625_v19 = vrot.slane %v623_v63, 5  ;;  %v545_v20 = vld [vmem:[#allocation2 + $0x14] sm:$0x1]  ;;  %v629_v40 = vshll.u32 %v4141_v12, 16  ;;  %v3600_v55 = vld [vmem:[#allocation9 + $0x228] sm:$0xff]  }
  0x9c   : > { %v470_v24 = vshrl.u32 %v2971_v16, 16  ;;  %v473_v25 = vshll.u32 %v2971_v16, 16  ;;  %v478_v32 = vshrl.u32 %v2972_v21, 16  ;;  %v481_v36 = vshll.u32 %v2972_v21, 16  ;;  %v320_v52 = vld [vmem:[#allocation2 + $0x28] sm:$0x1] }
  0x9d   : > { %3147 = vmatpush3.bf16.msra.mxu1 %v3529_v13  ;;  %v622_v13 = vrot.slane %v620_v57, 4  ;;  %v459_v17 = vor.u32 %v457_v62, %v456_v5  ;;  %v460_v18 = vrot.slane %v456_v5, 4  ;;  %v551_v31 = vld [vmem:[#allocation2 + $0x1c] sm:$0x1]  ;;  %v554_v37 = vld [vmem:[#allocation2 + $0x20] sm:$0xf] }
  0x9e   : > { %3243 = vmatpush3.bf16.msra.mxu0 %v3530_v14  ;;  %3148 = vmatprep.subr.bf16.mxu1 %v3531_v23  ;;  %v464_v14 = vrot.slane %v462_v1, 7  ;;  %v472_v35 = vrot.slane %v470_v24, 7  ;;  %v557_v38 = vld [vmem:[#allocation2 + $0x24] sm:$0x1]  ;;  %v480_v41 = vrot.slane %v478_v32, 7  ;;  %v631_v49 = vrot.slane %v629_v40, 5 }
  0x9f   : > { %3244 = vmatprep.subr.bf16.mxu0 %v3532_v30  ;;  %v537_v28 = vsel %vm4137_vm8, %v459_v17, %v536_v6  ;;  %v540_v29 = vsel %vm4084_vm3, %v460_v18, %v539_v11  ;;  %v626_v39 = vor.u32 %v625_v19, %v622_v13  ;;  %v321_v56 = vsel %vm4084_vm3, 0, %v320_v52  ;;  %s2630_s28 = scalar_lea.sflag [#allocation5], %s4063_s17  ;;  %s3717_s10 = scalar_lea.vmem %s4518_s26, 512 }
  0xa0   : > { %v467_v22 = vor.u32 %v465_v2, %v464_v14  ;;  %538 = vst [vmem:[#allocation2 + $0x8] sm:$0xf] %v537_v28  ;;  %541 = vst [vmem:[#allocation2 + $0xc] sm:$0x1] %v540_v29  ;;  %v475_v42 = vor.u32 %v473_v25, %v472_v35  ;;  %v476_v43 = vrot.slane %v472_v35, 4  ;;  %v483_v44 = vor.u32 %v481_v36, %v480_v41  ;;  %v4182_v2 = vld [vmem:[%s4069_s15 + $0x10] sm:$0xff]   ;;  %p3718_p1 = scmp.ne.s32.totalorder %s4518_s26, %s3717_s10 }
  0xa1   : > { %3149 = vmatpush3.bf16.msra.mxu1 %v3531_v23  ;;  %v468_v23 = vrot.slane %v464_v14, 4  ;;  %v484_v45 = vrot.slane %v480_v41, 4  ;;  %322 = vst [vmem:[#allocation2 + $0x28] sm:$0x1] %v321_v56  ;;  %v2996_v28 = vunpack.c.l.bf16 %v4182_v2  ;;  %s3832_s29 = smov [#allocation11]  }
  0xa2   : > { %3245 = vmatpush3.bf16.msra.mxu0 %v3532_v30  ;;  %3150 = vmatprep.subr.bf16.mxu1 %v3533_v48  ;;  %v548_v30 = vld [vmem:[#allocation2 + $0x18] sm:$0xf]  ;;  %v543_v33 = vsel %vm4137_vm8, %v467_v22, %v542_v15  ;;  %v552_v47 = vsel %vm4084_vm3, %v476_v43, %v551_v31  ;;  %v555_v50 = vsel %vm4137_vm8, %v483_v44, %v554_v37  ;;  %p3719_p4 = pnand %p3718_p1, %p4012_p6  ;;  %s3721_s12 = sshll.u32 %s3832_s29, 4  ;;  %s3722_s12 = int_to_ptr.vmem [resolvable:$false] %s3721_s12 }
  0xa3   : > { %3246 = vmatprep.subr.bf16.mxu0 %v3534_v53  ;;  %v546_v34 = vsel %vm4084_vm3, %v468_v23, %v545_v20  ;;  %544 = vst [vmem:[#allocation2 + $0x10] sm:$0xf] %v543_v33  ;;  %v549_v46 = vsel %vm4137_vm8, %v475_v42, %v548_v30  ;;  %553 = vst [vmem:[#allocation2 + $0x1c] sm:$0x1] %v552_v47  ;;  %v558_v51 = vsel %vm4084_vm3, %v484_v45, %v557_v38  ;;  %s3723_s23 = scalar_lea.vmem %s3722_s12, 1024  ;;  %p3724_p3 = scmp.lt.s32.totalorder %s4518_s26, %s3722_s12 }
  0xa4   : > { %547 = vst [vmem:[#allocation2 + $0x14] sm:$0x1] %v546_v34  ;;  %550 = vst [vmem:[#allocation2 + $0x18] sm:$0xf] %v549_v46  ;;  %p3720_p8 = pneg %p3719_p4  ;;  %p3725_p7 = scmp.lt.s32.totalorder %s3723_s23, %s3717_s10 }
  0xa5   : > { %3151 = vmatpush3.bf16.msra.mxu1 %v3533_v48  ;;  %v627_v48 = vrot.slane %v626_v39, 4  ;;  %556 = vst [vmem:[#allocation2 + $0x20] sm:$0xf] %v555_v50  ;;  %559 = vst [vmem:[#allocation2 + $0x24] sm:$0x1] %v558_v51 }
  0xa6   : > { %3247 = vmatpush3.bf16.msra.mxu0 %v3534_v53  ;;  %3160 = vmatprep.subr.bf16.mxu1 %v4132_v0  ;;  %v352_v53 = vld [vmem:[#allocation2 + $0x2c] sm:$0x1]  ;;  %p3726_p10 = por %p3725_p7, %p3724_p3 }
  0xa7   : > { %3256 = vmatprep.subr.bf16.mxu0 %v4134_v3  ;;  %v353_v57 = vsel %vm4090_vm4, 0, %v352_v53  ;;  %v4172_v58 = vld [vmem:[#allocation2 + $0x8] sm:$0xf]  ;;  %v4174_v59 = vld [vmem:[#allocation2 + $0xc] sm:$0x1]  ;;  %v632_v11 = vsel %vm4164_vm9, %v627_v48, %v631_v49 }
  0xa8   : > { %v1394_v60 = vld [vmem:[#allocation2 + $0x8] sm:$0xf]  ;;  %354 = vst [vmem:[#allocation2 + $0x2c] sm:$0x1] %v353_v57  ;;  %v634_v61 = vshrl.u32 %v4172_v58, 16  ;;  %v637_v62 = vshll.u32 %v4172_v58, 16  ;;  %p3727_p13 = pnand %p3726_p10, %p3720_p8 }
  0xa9   : > { %v643_v63 = vshll.u32 %v4174_v59, 16  ;;  %v4179_v1 = vld [vmem:[#allocation2 + $0xc] sm:$0x1]  ;;  %v1411_v6 = vshrl.u32 %v1394_v60, 16  ;;  %v1414_v7 = vshll.u32 %v1394_v60, 16 }
  0xaa   : > { %v1396_v4 = vld [vmem:[#allocation2 + $0x10] sm:$0xf]  ;;  %v636_v13 = vrot.slane %v634_v61, 4  ;;  %v639_v14 = vrot.slane %v637_v62, 5  ;;  %v1420_v15 = vshll.u32 %v4179_v1, 16 }
  0xab   : > { %v4184_v5 = vld [vmem:[#allocation2 + $0x14] sm:$0x1]  ;;  %v1413_v16 = vrot.slane %v1411_v6, 4  ;;  %v1416_v17 = vrot.slane %v1414_v7, 5  ;;  %v1425_v18 = vshrl.u32 %v1396_v4, 16  ;;  %v1428_v19 = vshll.u32 %v1396_v4, 16 }
  0xac   : > { %v4189_v20 = vld [vmem:[#allocation2 + $0x10] sm:$0xf]  ;;  %v640_v21 = vor.u32 %v639_v14, %v636_v13  ;;  %v645_v22 = vrot.slane %v643_v63, 5  ;;  %v1434_v23 = vshll.u32 %v4184_v5, 16  ;;  %v4192_v24 = vld [vmem:[#allocation2 + $0x18] sm:$0xf]  ;;  %v394_v4 = vmul.f32 %v2996_v28, %v4103_v26 }
  0xad   : > { %v4194_v25 = vld [vmem:[#allocation2 + $0x14] sm:$0x1]  ;;  %v1417_v29 = vor.u32 %v1416_v17, %v1413_v16  ;;  %v1422_v30 = vrot.slane %v1420_v15, 5  ;;  %v1427_v31 = vrot.slane %v1425_v18, 4  ;;  %v1430_v32 = vrot.slane %v1428_v19, 5 }
  0xae   : > { %v641_v33 = vrot.slane %v640_v21, 4  ;;  %v1436_v34 = vrot.slane %v1434_v23, 5  ;;  %v648_v35 = vshrl.u32 %v4189_v20, 16  ;;  %v651_v36 = vshll.u32 %v4189_v20, 16  ;;  %v4199_v39 = vld [vmem:[#allocation2 + $0x1c] sm:$0x1] }
  0xaf   : > { %v1418_v37 = vrot.slane %v1417_v29, 4  ;;  %v1431_v38 = vor.u32 %v1430_v32, %v1427_v31  ;;  %v657_v40 = vshll.u32 %v4194_v25, 16  ;;  %v662_v41 = vshrl.u32 %v4192_v24, 16  ;;  %v1398_v46 = vld [vmem:[#allocation2 + $0x18] sm:$0xf] }
  0xb0   : > { %v646_v42 = vsel %vm4164_vm9, %v641_v33, %v645_v22  ;;  %v650_v43 = vrot.slane %v648_v35, 4  ;;  %v653_v44 = vrot.slane %v651_v36, 5  ;;  %v665_v45 = vshll.u32 %v4192_v24, 16  ;;  %v4208_v51 = vld [vmem:[#allocation2 + $0x1c] sm:$0x1] }
  0xb1   : > { %v2821_v47 = vcombine.low %v632_v11, %v646_v42  ;;  %v1423_v48 = vsel %vm4164_vm9, %v1418_v37, %v1422_v30  ;;  %v1432_v49 = vrot.slane %v1431_v38, 4  ;;  %v659_v50 = vrot.slane %v657_v40, 5  ;;  %v1400_v60 = vld [vmem:[#allocation2 + $0x20] sm:$0xf]  ;;  %v4213_v62 = vld [vmem:[#allocation2 + $0x24] sm:$0x1] }
  0xb2   : > { %v654_v52 = vor.u32 %v653_v44, %v650_v43  ;;  %v664_v53 = vrot.slane %v662_v41, 4  ;;  %v667_v56 = vrot.slane %v665_v45, 5  ;;  %v671_v57 = vshll.u32 %v4199_v39, 16  ;;  %v355_v32 = vld [vmem:[#allocation2 + $0x34] sm:$0x1]  ;;  %v3537_v37 = vld [vmem:[#allocation9 + $0x8] sm:$0xff]  }
  0xb3   : > { %3152 = vmatprep.mubr.bf16.mxu1 %v2821_v47  ;;  %v1437_v61 = vsel %vm4164_vm9, %v1432_v49, %v1436_v34  ;;  %v1439_v63 = vshrl.u32 %v1398_v46, 16  ;;  %v2997_v6 = vunpack.c.h.bf16 %v4182_v2  ;;  %v1442_v16 = vshll.u32 %v1398_v46, 16  ;;  %v323_v2 = vld [vmem:[#allocation2 + $0x30] sm:$0x1]  ;;  %v4225_v40 = vld [vmem:[#allocation2 + $0x20] sm:$0xf] }
  0xb4   : > { %v2877_v7 = vcombine.low %v1423_v48, %v1437_v61  ;;  %v655_v11 = vrot.slane %v654_v52, 4  ;;  %v668_v13 = vor.u32 %v667_v56, %v664_v53  ;;  %v673_v14 = vrot.slane %v671_v57, 5  ;;  %v326_v41 = vld [vmem:[#allocation2 + $0x38] sm:$0x1]  ;;  %v358_v45 = vld [vmem:[#allocation2 + $0x3c] sm:$0x1] }
  0xb5   : > { %v1441_v15 = vrot.slane %v1439_v63, 4  ;;  %v1448_v17 = vshll.u32 %v4208_v51, 16  ;;  %v1453_v18 = vshrl.u32 %v1400_v60, 16  ;;  %v1456_v22 = vshll.u32 %v1400_v60, 16  ;;  %v329_v46 = vld [vmem:[#allocation2 + $0x40] sm:$0x1] }
  0xb6   : > { %3248 = vmatprep.mubr.bf16.mxu0 %v2877_v7  ;;  %v660_v19 = vsel %vm4164_vm9, %v655_v11, %v659_v50  ;;  %v669_v21 = vrot.slane %v668_v13, 4  ;;  %v1462_v23 = vshll.u32 %v4213_v62, 16  ;;  %v1444_v28 = vrot.slane %v1442_v16, 5  ;;  %v3539_v48 = vld [vmem:[#allocation9 + $0x10] sm:$0xff]   ;;  %v1017_v9 = vld [vmem:[#allocation2 + $0x20] sm:$0xe] }
  0xb7   : > { %v1455_v29 = vrot.slane %v1453_v18, 4  ;;  %v1458_v31 = vrot.slane %v1456_v22, 5  ;;  %v395_v33 = vmul.f32 %v2997_v6, %v4103_v26  ;;  %v1450_v36 = vrot.slane %v1448_v17, 5  ;;  %v3024_v52 = vld [vmem:[%s4069_s15 + $0x18] sm:$0xff]   ;;  %v361_v60 = vld [vmem:[#allocation2 + $0x44] sm:$0x1] }
  0xb8   : > { %v674_v30 = vsel %vm4164_vm9, %v669_v21, %v673_v14  ;;  %v1445_v35 = vor.u32 %v1444_v28, %v1441_v15  ;;  %v409_v38 = vadd.f32 %v4105_v27, %v394_v4  ;;  %v1464_v43 = vrot.slane %v1462_v23, 5  ;;  %v3538_v15 = vld [vmem:[#allocation9 + $0x148] sm:$0xff]   ;;  %v3541_v28 = vld [vmem:[#allocation9 + $0x18] sm:$0xff]  }
  0xb9   : > { %v2822_v34 = vcombine.low %v660_v19, %v674_v30  ;;  %v1459_v42 = vor.u32 %v1458_v31, %v1455_v29  ;;  %v324_v44 = vsel %vm4084_vm3, 0, %v323_v2  ;;  %v356_v50 = vsel %vm4090_vm4, 0, %v355_v32  ;;  %v560_v2 = vld [vmem:[#allocation2 + $0x28] sm:$0xf]  ;;  %v563_v32 = vld [vmem:[#allocation2 + $0x2c] sm:$0x1] }
  0xba   : > { %v1446_v47 = vrot.slane %v1445_v35, 4  ;;  %v417_v49 = vmax.f32 %v409_v38, 0.0  ;;  %325 = vst [vmem:[#allocation2 + $0x30] sm:$0x1] %v324_v44  ;;  %v676_v56 = vshrl.u32 %v4225_v40, 16  ;;  %v410_v57 = vadd.f32 %v4105_v27, %v395_v33  ;;  %v3540_v31 = vld [vmem:[#allocation9 + $0x150] sm:$0xff]  }
  0xbb   : > { %3153 = vmatmul.mubr.bf16.vlgmr.msra.gmra.mrb[0].mxu1 %v2822_v34  ;;  %v1460_v53 = vrot.slane %v1459_v42, 4  ;;  %357 = vst [vmem:[#allocation2 + $0x34] sm:$0x1] %v356_v50  ;;  %v327_v4 = vsel %vm4084_vm3, 0, %v326_v41  ;;  %v359_v6 = vsel %vm4090_vm4, 0, %v358_v45  ;;  %v679_v7 = vshll.u32 %v4225_v40, 16 }
  0xbc   : > { %3161 = vmatpush3.bf16.msra.mxu1 %v4132_v0  ;;  %v1451_v61 = vsel %vm4164_vm9, %v1446_v47, %v1450_v36  ;;  %v2973_v63 = vpack.c.bf16 %v417_v49, %v417_v49  ;;  %v418_v11 = vmax.f32 %v410_v57, 0.0  ;;  %328 = vst [vmem:[#allocation2 + $0x38] sm:$0x1] %v327_v4  ;;  %360 = vst [vmem:[#allocation2 + $0x3c] sm:$0x1] %v359_v6  ;;  %v3000_v13 = vunpack.c.l.bf16 %v3024_v52  ;;  %v3543_v49 = vld [vmem:[#allocation9 + $0x20] sm:$0xff]  }
  0xbd   : > { %3162 = vmatprep.subr.bf16.mxu1 %v3537_v37  ;;  %v1465_v0 = vsel %vm4164_vm9, %v1460_v53, %v1464_v43  ;;  %v330_v18 = vsel %vm4084_vm3, 0, %v329_v46  ;;  %v1042_v19 = vrot.slane %v4141_v12, 5  ;;  %v362_v23 = vsel %vm4090_vm4, 0, %v361_v60  ;;  %v4252_v41 = vld [vmem:[#allocation2 + $0x24] sm:$0x1]  ;;  %v3542_v6 = vld [vmem:[#allocation9 + $0x158] sm:$0xff]  }
  0xbe   : > { %v2878_v14 = vcombine.low %v1451_v61, %v1465_v0  ;;  %v486_v16 = vshrl.u32 %v2973_v63, 16  ;;  %v489_v17 = vshll.u32 %v2973_v63, 16  ;;  %v2974_v21 = vpack.c.bf16 %v418_v11, %v418_v11  ;;  %331 = vst [vmem:[#allocation2 + $0x40] sm:$0x1] %v330_v18  ;;  %363 = vst [vmem:[#allocation2 + $0x44] sm:$0x1] %v362_v23 }
  0xbf   : > { %v396_v22 = vmul.f32 %v3000_v13, %v4103_v26  ;;  %v3001_v30 = vunpack.c.h.bf16 %v3024_v52  ;;  %v678_v33 = vrot.slane %v676_v56, 4  ;;  %v681_v42 = vrot.slane %v679_v7, 5  ;;  %v3545_v11 = vld [vmem:[#allocation9 + $0x28] sm:$0xff]  }
  0xc0   : > { %3163 = vmatpush3.bf16.msra.mxu1 %v3537_v37  ;;  %3249 = vmatmul.mubr.bf16.vlgmr.msra.gmra.mrb[0].mxu0 %v2878_v14  ;;  %v488_v29 = vrot.slane %v486_v16, 7  ;;  %v494_v34 = vshrl.u32 %v2974_v21, 16  ;;  %v497_v35 = vshll.u32 %v2974_v21, 16  ;;  %v1046_v44 = vrot.slane %v4174_v59, 5  ;;  %v3544_v16 = vld [vmem:[#allocation9 + $0x160] sm:$0xff]  }
  0xc1   : > { %3164 = vmatprep.subr.bf16.mxu1 %v3539_v48  ;;  %3257 = vmatpush3.bf16.msra.mxu0 %v4134_v3  ;;  %v411_v36 = vadd.f32 %v4105_v27, %v396_v22  ;;  %v397_v43 = vmul.f32 %v3001_v30, %v4103_v26  ;;  %v1701_v45 = vrot.slane %v4179_v1, 5  ;;  %v1705_v47 = vrot.slane %v4184_v5, 5  ;;  %v566_v53 = vld [vmem:[#allocation2 + $0x30] sm:$0xf] }
  0xc2   : > { %3258 = vmatprep.subr.bf16.mxu0 %v3538_v15  ;;  %v491_v37 = vor.u32 %v489_v17, %v488_v29  ;;  %v492_v38 = vrot.slane %v488_v29, 4  ;;  %v496_v3 = vrot.slane %v494_v34, 7  ;;  %v569_v56 = vld [vmem:[#allocation2 + $0x34] sm:$0x1]  ;;  %v1050_v63 = vrot.slane %v4194_v25, 5  ;;  %v3547_v29 = vld [vmem:[#allocation9 + $0x30] sm:$0xff]  }
  0xc3   : > { %v419_v46 = vmax.f32 %v411_v36, 0.0  ;;  %v412_v26 = vadd.f32 %v4105_v27, %v397_v43  ;;  %v1054_v4 = vrot.slane %v4199_v39, 5  ;;  %v682_v0 = vor.u32 %v681_v42, %v678_v33  ;;  %v572_v22 = vld [vmem:[#allocation2 + $0x38] sm:$0xf]  ;;  %v575_v23 = vld [vmem:[#allocation2 + $0x3c] sm:$0x1] }
  0xc4   : > { %3165 = vmatpush3.bf16.msra.mxu1 %v3539_v48  ;;  %v561_v50 = vsel %vm4137_vm8, %v491_v37, %v560_v2  ;;  %v564_v52 = vsel %vm4084_vm3, %v492_v38, %v563_v32  ;;  %v685_v48 = vshll.u32 %v4252_v41, 16  ;;  %v499_v57 = vor.u32 %v497_v35, %v496_v3  ;;  %v3546_v34 = vld [vmem:[#allocation9 + $0x168] sm:$0xff]   ;;  %v3557_v25 = vld [vmem:[#allocation9 + $0x90] sm:$0xff]  }
  0xc5   : > { %3166 = vmatprep.subr.bf16.mxu1 %v3541_v28  ;;  %3259 = vmatpush3.bf16.msra.mxu0 %v3538_v15  ;;  %562 = vst [vmem:[#allocation2 + $0x28] sm:$0xf] %v561_v50  ;;  %565 = vst [vmem:[#allocation2 + $0x2c] sm:$0x1] %v564_v52  ;;  %v500_v60 = vrot.slane %v496_v3, 4  ;;  %v2975_v61 = vpack.c.bf16 %v419_v46, %v419_v46  ;;  %v420_v7 = vmax.f32 %v412_v26, 0.0 }
  0xc6   : > { %3260 = vmatprep.subr.bf16.mxu0 %v3540_v31  ;;  %v567_v27 = vsel %vm4137_vm8, %v499_v57, %v566_v53  ;;  %v4272_v18 = vrot.slane %v685_v48, 5  ;;  %v3549_v53 = vld [vmem:[#allocation9 + $0x38] sm:$0xff]  }
  0xc7   : > { %v570_v13 = vsel %vm4084_vm3, %v500_v60, %v569_v56  ;;  %v502_v14 = vshrl.u32 %v2975_v61, 16  ;;  %v505_v15 = vshll.u32 %v2975_v61, 16  ;;  %568 = vst [vmem:[#allocation2 + $0x30] sm:$0xf] %v567_v27  ;;  %v4270_v17 = vpack.c.bf16 %v420_v7, %v420_v7 }
  0xc8   : > { %3167 = vmatpush3.bf16.msra.mxu1 %v3541_v28  ;;  %571 = vst [vmem:[#allocation2 + $0x34] sm:$0x1] %v570_v13  ;;  %v4274_v28 = vrot.slane %v682_v0, 4  ;;  %v3548_v13 = vld [vmem:[#allocation9 + $0x170] sm:$0xff]  }
  0xc9   : > { %3168 = vmatprep.subr.bf16.mxu1 %v3543_v49  ;;  %3261 = vmatpush3.bf16.msra.mxu0 %v3540_v31  ;;  %v504_v21 = vrot.slane %v502_v14, 7  ;;  %v510_v2 = vshrl.u32 %v4270_v17, 16  ;;  %v513_v33 = vshll.u32 %v4270_v17, 16 }
  0xca   : > { %3262 = vmatprep.subr.bf16.mxu0 %v3542_v6 }
  0xcb   : > { %v507_v30 = vor.u32 %v505_v15, %v504_v21  ;;  %v508_v32 = vrot.slane %v504_v21, 4 }
  0xcc   : > { %3169 = vmatpush3.bf16.msra.mxu1 %v3543_v49  ;;  %v4278_v35 = vld [vmem:[#allocation2 + $0x28] sm:$0xf]  ;;  %v4280_v31 = vld [vmem:[#allocation2 + $0x2c] sm:$0x1] }
  0xcd   : > { %3170 = vmatprep.subr.bf16.mxu1 %v3545_v11  ;;  %v1402_v36 = vld [vmem:[#allocation2 + $0x28] sm:$0xf]  ;;  %3263 = vmatpush3.bf16.msra.mxu0 %v3542_v6  ;;  %v690_v37 = vshrl.u32 %v4278_v35, 16  ;;  %v693_v38 = vshll.u32 %v4278_v35, 16  ;;  %v699_v42 = vshll.u32 %v4280_v31, 16  ;;  %v573_v50 = vsel %vm4137_vm8, %v507_v30, %v572_v22 }
  0xce   : > { %v4285_v43 = vld [vmem:[#allocation2 + $0x2c] sm:$0x1]  ;;  %v1467_v3 = vshrl.u32 %v1402_v36, 16  ;;  %3264 = vmatprep.subr.bf16.mxu0 %v3544_v16  ;;  %v1470_v46 = vshll.u32 %v1402_v36, 16  ;;  %v576_v52 = vsel %vm4084_vm3, %v508_v32, %v575_v23  ;;  %v1404_v57 = vld [vmem:[#allocation2 + $0x30] sm:$0xf] }
  0xcf   : > { %v1476_v49 = vshll.u32 %v4285_v43, 16  ;;  %v692_v56 = vrot.slane %v690_v37, 4  ;;  %v695_v26 = vrot.slane %v693_v38, 5  ;;  %v701_v48 = vrot.slane %v699_v42, 5  ;;  %574 = vst [vmem:[#allocation2 + $0x38] sm:$0xf] %v573_v50 }
  0xd0   : > { %3171 = vmatpush3.bf16.msra.mxu1 %v3545_v11  ;;  %v1469_v60 = vrot.slane %v1467_v3, 4  ;;  %577 = vst [vmem:[#allocation2 + $0x3c] sm:$0x1] %v576_v52  ;;  %v4292_v61 = vld [vmem:[#allocation2 + $0x34] sm:$0x1]  ;;  %v1472_v6 = vrot.slane %v1470_v46, 5  ;;  %v688_v11 = vsel %vm4164_vm9, %v4274_v28, %v4272_v18 }
  0xd1   : > { %3172 = vmatprep.subr.bf16.mxu1 %v3547_v29  ;;  %v1478_v0 = vrot.slane %v1476_v49, 5  ;;  %v1481_v7 = vshrl.u32 %v1404_v57, 16  ;;  %v1484_v27 = vshll.u32 %v1404_v57, 16  ;;  %3265 = vmatpush3.bf16.msra.mxu0 %v3544_v16  ;;  %v696_v14 = vor.u32 %v695_v26, %v692_v56  ;;  %v4299_v17 = vld [vmem:[#allocation2 + $0x30] sm:$0xf]  ;;  %v4304_v37 = vld [vmem:[#allocation9 + $0x80] sm:$0xff]  }
  0xd2   : > { %v1490_v15 = vshll.u32 %v4292_v61, 16  ;;  %v4301_v21 = vld [vmem:[#allocation2 + $0x34] sm:$0x1]  ;;  %v512_v22 = vrot.slane %v510_v2, 7  ;;  %v578_v23 = vld [vmem:[#allocation2 + $0x40] sm:$0xf]  ;;  %3266 = vmatprep.subr.bf16.mxu0 %v3546_v34  ;;  %v1473_v30 = vor.u32 %v1472_v6, %v1469_v60 }
  0xd3   : > { %v1483_v32 = vrot.slane %v1481_v7, 4  ;;  %v1486_v36 = vrot.slane %v1484_v27, 5  ;;  %v704_v16 = vshrl.u32 %v4299_v17, 16  ;;  %v697_v38 = vrot.slane %v696_v14, 4  ;;  %v581_v3 = vld [vmem:[#allocation2 + $0x44] sm:$0x1] }
  0xd4   : > { %v1492_v42 = vrot.slane %v1490_v15, 5  ;;  %v707_v18 = vshll.u32 %v4299_v17, 16  ;;  %v713_v28 = vshll.u32 %v4301_v21, 16  ;;  %3173 = vmatpush3.bf16.msra.mxu1 %v3547_v29  ;;  %v1474_v46 = vrot.slane %v1473_v30, 4  ;;  %v3574_v10 = vld [vmem:[#allocation2 + $0x20] ss:$8 sps:$4 sm:$0xff]  }
  0xd5   : > { %v1487_v49 = vor.u32 %v1486_v36, %v1483_v32  ;;  %v706_v2 = vrot.slane %v704_v16, 4  ;;  %v515_v50 = vor.u32 %v513_v33, %v512_v22  ;;  %3174 = vmatprep.subr.bf16.mxu1 %v3549_v53  ;;  %3267 = vmatpush3.bf16.msra.mxu0 %v3546_v34  ;;  %v702_v52 = vsel %vm4164_vm9, %v697_v38, %v701_v48  ;;  %v3550_v34 = vld [vmem:[#allocation9 + $0x178] sm:$0xff]   ;;  %v1675_v32 = vld [vmem:[#allocation2 + $0x8] sm:$0xe] }
  0xd6   : > { %v709_v56 = vrot.slane %v707_v18, 5  ;;  %v715_v26 = vrot.slane %v713_v28, 5  ;;  %v516_v57 = vrot.slane %v512_v22, 4  ;;  %v2823_v60 = vcombine.low %v688_v11, %v702_v52  ;;  %3268 = vmatprep.subr.bf16.mxu0 %v3548_v13  ;;  %v4312_v7 = vld [vmem:[#allocation2 + $0x38] sm:$0xf] }
  0xd7   : > { %v1479_v6 = vsel %vm4164_vm9, %v1474_v46, %v1478_v0  ;;  %v1488_v29 = vrot.slane %v1487_v49, 4  ;;  %v4314_v27 = vld [vmem:[#allocation2 + $0x3c] sm:$0x1]  ;;  %v579_v33 = vsel %vm4137_vm8, %v515_v50, %v578_v23  ;;  %v718_v14 = vshrl.u32 %v4312_v7, 16  ;;  %v1406_v22 = vld [vmem:[#allocation2 + $0x38] sm:$0xf] }
  0xd8   : > { %v710_v48 = vor.u32 %v709_v56, %v706_v2  ;;  %v721_v15 = vshll.u32 %v4312_v7, 16  ;;  %v727_v11 = vshll.u32 %v4314_v27, 16  ;;  %580 = vst [vmem:[#allocation2 + $0x40] sm:$0xf] %v579_v33  ;;  %3175 = vmatpush3.bf16.msra.mxu1 %v3549_v53  ;;  %3156 = vmatprep.mubr.bf16.mxu1 %v2823_v60  ;;  %v582_v30 = vsel %vm4084_vm3, %v516_v57, %v581_v3  ;;  %v4326_v28 = vld [vmem:[#allocation2 + $0x3c] sm:$0x1] }
  0xd9   : > { %v1493_v0 = vsel %vm4164_vm9, %v1488_v29, %v1492_v42  ;;  %v1495_v8 = vshrl.u32 %v1406_v22, 16  ;;  %v1498_v23 = vshll.u32 %v1406_v22, 16  ;;  %3184 = vmatprep.subr.bf16.mxu1 %v4304_v37  ;;  %v720_v38 = vrot.slane %v718_v14, 4  ;;  %583 = vst [vmem:[#allocation2 + $0x44] sm:$0x1] %v582_v30  ;;  %3269 = vmatpush3.bf16.msra.mxu0 %v3548_v13  ;;  %v4328_v53 = vld [vmem:[#allocation9 + $0x180] sm:$0xff]  }
  0xda   : > { %v2879_v36 = vcombine.low %v1479_v6, %v1493_v0  ;;  %v711_v16 = vrot.slane %v710_v48, 4  ;;  %v723_v18 = vrot.slane %v721_v15, 5  ;;  %3270 = vmatprep.subr.bf16.mxu0 %v3550_v34  ;;  %v1676_v49 = vld [vmem:[#allocation2 + $0x10] sm:$0xe]  ;;  %v1709_v3 = vrot.slane %v4208_v51, 5 }
  0xdb   : > { %v1497_v46 = vrot.slane %v1495_v8, 4  ;;  %v1500_v42 = vrot.slane %v1498_v23, 5  ;;  %v729_v50 = vrot.slane %v727_v11, 5  ;;  %v4331_v52 = vld [vmem:[#allocation2 + $0x18] sm:$0xe]  ;;  %v1713_v56 = vrot.slane %v4213_v62, 5 }
  0xdc   : > { %3252 = vmatprep.mubr.bf16.mxu0 %v2879_v36  ;;  %v724_v2 = vor.u32 %v723_v18, %v720_v38  ;;  %v1504_v57 = vshll.u32 %v4326_v28, 16  ;;  %v4335_v60 = vld [vmem:[#allocation2 + $0x20] sm:$0xe]  ;;  %v716_v13 = vsel %vm4164_vm9, %v711_v16, %v715_v26  ;;  %v2889_v33 = vrot.slane %v1675_v32, 9  ;;  %v1679_v11 = vld [vmem:[#allocation2 + $0x28] sm:$0xe] }
  0xdd   : > { %v1501_v29 = vor.u32 %v1500_v42, %v1497_v46  ;;  %3271 = vmatpush3.bf16.msra.mxu0 %v3550_v34  ;;  %v2890_v14 = vrot.slane %v1676_v49, 9  ;;  %v2891_v15 = vrot.slane %v4331_v52, 9  ;;  %v2833_v8 = vcombine.low %v4125_v54, %v4172_v58  ;;  %v1013_v26 = vld [vmem:[#allocation2] sm:$0xe]  ;;  %v1014_v38 = vld [vmem:[#allocation2 + $0x8] sm:$0xe] }
  0xde   : > { %v725_v6 = vrot.slane %v724_v2, 4  ;;  %3280 = vmatprep.subr.bf16.mxu0 %v4328_v53  ;;  %v1506_v34 = vrot.slane %v1504_v57, 5  ;;  %v2892_v16 = vrot.slane %v4335_v60, 9  ;;  %v2845_v54 = vrot.slane %v1013_v26, 9  ;;  %v1680_v57 = vld [vmem:[#allocation2 + $0x30] sm:$0xe] }
  0xdf   : > { %v1408_v48 = vld [vmem:[#allocation2 + $0x40] sm:$0xf]  ;;  %v1502_v18 = vrot.slane %v1501_v29, 4  ;;  %v2846_v58 = vrot.slane %v1014_v38, 9  ;;  %v1702_v52 = vsel %vm4349_vm12, %v2889_v33, %v1701_v45  ;;  %v1706_v60 = vsel %vm4349_vm12, %v2890_v14, %v1705_v47  ;;  %v1015_v45 = vld [vmem:[#allocation2 + $0x10] sm:$0xe] }
  0xe0   : > { %v730_v22 = vsel %vm4164_vm9, %v725_v6, %v729_v50  ;;  %v1509_v0 = vshrl.u32 %v1408_v48, 16  ;;  %v1512_v30 = vshll.u32 %v1408_v48, 16  ;;  %v4345_v36 = vld [vmem:[#allocation2 + $0x44] sm:$0x1]  ;;  %v2834_v6 = vcombine.low %v4189_v20, %v4192_v24  ;;  %v1016_v47 = vld [vmem:[#allocation2 + $0x18] sm:$0xe] }
  0xe1   : > { %v2824_v23 = vcombine.low %v716_v13, %v730_v22  ;;  %v1518_v49 = vshll.u32 %v4345_v36, 16  ;;  %v2893_v13 = vrot.slane %v1679_v11, 9  ;;  %v1043_v29 = vsel %vm4349_vm12, %v2845_v54, %v1042_v19  ;;  %v3555_v11 = vld [vmem:[#allocation9 + $0x88] sm:$0xff]   ;;  %v332_v38 = vld [vmem:[#allocation2 + $0x48] sm:$0x1] }
  0xe2   : > { %v1511_v46 = vrot.slane %v1509_v0, 4  ;;  %v1514_v42 = vrot.slane %v1512_v30, 5  ;;  %v1047_v1 = vsel %vm4349_vm12, %v2846_v58, %v1046_v44  ;;  %v1507_v5 = vsel %vm4164_vm9, %v1502_v18, %v1506_v34  ;;  %v3566_v54 = vld [vmem:[#allocation9 + $0xb0] sm:$0xff]  }
  0xe3   : > { %3157 = vmatmul.mubr.bf16.gmra.mrb[4].mxu1 %v2824_v23  ;;  %v1520_v50 = vrot.slane %v1518_v49, 5  ;;  %v2853_v48 = vcombine.low %v1043_v29, %v1047_v1  ;;  %v2847_v14 = vrot.slane %v1015_v45, 9  ;;  %v1717_v20 = vrot.slane %v4285_v43, 5  ;;  %v3559_v23 = vld [vmem:[#allocation9 + $0x98] sm:$0xff]   ;;  %v3562_v49 = vld [vmem:[#allocation9 + $0x1a0] sm:$0xff]  }
  0xe4   : > { %v1515_v2 = vor.u32 %v1514_v42, %v1511_v46  ;;  %3176 = vmatprep.mubr.bf16.mxu1 %v2833_v8  ;;  %v2894_v12 = vrot.slane %v1680_v57, 9  ;;  %v1721_v24 = vrot.slane %v4292_v61, 5  ;;  %v2848_v19 = vrot.slane %v1016_v47, 9  ;;  %v3563_v46 = vld [vmem:[#allocation9 + $0xa8] sm:$0xff]   ;;  %v3572_v42 = vld [vmem:[#allocation2 + $0x10] ss:$8 sps:$4 sm:$0xff]  }
  0xe5   : > { %v2897_v22 = vcombine.low %v1702_v52, %v1706_v60  ;;  %v4383_v44 = vsel %vm4349_vm12, %v2847_v14, %v1050_v63  ;;  %v2835_v30 = vcombine.low %v4225_v40, %v4278_v35  ;;  %v1710_v40 = vsel %vm4349_vm12, %v2891_v15, %v1709_v3  ;;  %v1681_v63 = vld [vmem:[#allocation2 + $0x38] sm:$0xe]  ;;  %v3556_v3 = vld [vmem:[#allocation9 + $0x188] sm:$0xff]   ;;  %v1018_v58 = vld [vmem:[#allocation2 + $0x28] sm:$0xe] }
  0xe6   : > { %v1516_v33 = vrot.slane %v1515_v2, 4  ;;  %v4391_v43 = vsel %vm4349_vm12, %v2848_v19, %v1054_v4  ;;  %v1714_v39 = vsel %vm4349_vm12, %v2892_v16, %v1713_v56  ;;  %v1682_v4 = vld [vmem:[#allocation2 + $0x40] sm:$0xe]  ;;  %v1718_v8 = vsel %vm4349_vm12, %v2893_v13, %v1717_v20  ;;  %v3558_v16 = vld [vmem:[#allocation9 + $0x190] sm:$0xff]   ;;  %v2054_v29 = vld [vmem:[#allocation2 + $0x10] sm:$0xf] }
  0xe7   : > { %v2854_v61 = vcombine.low %v4383_v44, %v4391_v43  ;;  %v2898_v35 = vcombine.low %v1710_v40, %v1714_v39  ;;  %v2836_v51 = vcombine.low %v4299_v17, %v4312_v7  ;;  %v2895_v62 = vrot.slane %v1681_v63, 9  ;;  %v3564_v2 = vld [vmem:[#allocation9 + $0x1a8] sm:$0xff]   ;;  %v2056_v1 = vld [vmem:[#allocation2 + $0x18] sm:$0xf] }
  0xe8   : > { %v1521_v59 = vsel %vm4164_vm9, %v1516_v33, %v1520_v50  ;;  %v1725_v15 = vrot.slane %v4326_v28, 5  ;;  %v2896_v56 = vrot.slane %v1682_v4, 9  ;;  %v1729_v26 = vrot.slane %v4345_v36, 5  ;;  %v3561_v28 = vld [vmem:[#allocation9 + $0xa0] sm:$0xff]   ;;  %v3569_v50 = vld [vmem:[#allocation9 + $0xb8] sm:$0xff]  }
  0xe9   : > { %v2880_v0 = vcombine.low %v1507_v5, %v1521_v59  ;;  %v333_v36 = vsel %vm4084_vm3, 0, %v332_v38  ;;  %v2849_v52 = vrot.slane %v1017_v9, 9  ;;  %v1058_v57 = vrot.slane %v4252_v41, 5  ;;  %v3571_v45 = vld [vmem:[#allocation9 + $0xc0] sm:$0xff]   ;;  %v1019_v5 = vld [vmem:[#allocation2 + $0x30] sm:$0xe] }
  0xea   : > { %v1726_v17 = vsel %vm4349_vm12, %v2895_v62, %v1725_v15  ;;  %v1730_v7 = vsel %vm4349_vm12, %v2896_v56, %v1729_v26  ;;  %334 = vst [vmem:[#allocation2 + $0x48] sm:$0x1] %v333_v36  ;;  %v2850_v13 = vrot.slane %v1018_v58, 9  ;;  %v1062_v60 = vrot.slane %v4280_v31, 5  ;;  %v1020_v33 = vld [vmem:[#allocation2 + $0x38] sm:$0xe] }
  0xeb   : > { %3253 = vmatmul.mubr.bf16.gmra.mrb[4].mxu0 %v2880_v0  ;;  %3177 = vmatmul.mubr.bf16.vlgmr.msra.gmra.mrb[0].mxu1 %v2834_v6  ;;  %v2900_v18 = vcombine.low %v1726_v17, %v1730_v7  ;;  %v3567_v6 = vld [vmem:[#allocation9 + $0x1b0] sm:$0xff]   ;;  %v2071_v41 = vshrl.u32 %v2054_v29, 16  ;;  %v2074_v14 = vshll.u32 %v2054_v29, 16  ;;  %v2088_v31 = vshll.u32 %v2056_v1, 16  ;;  %v3570_v59 = vld [vmem:[#allocation9 + $0x1b8] sm:$0xff]   ;;  %v3576_v15 = vld [vmem:[#allocation9 + $0x1c8] sm:$0xff]  }
  0xec   : > { %3272 = vmatprep.mubr.bf16.mxu0 %v2897_v22  ;;  %3185 = vmatpush3.bf16.msra.mxu1 %v4304_v37  ;;  %v1722_v37 = vsel %vm4349_vm12, %v2894_v12, %v1721_v24  ;;  %v1063_v47 = vsel %vm4349_vm12, %v2850_v13, %v1062_v60  ;;  %v2851_v20 = vrot.slane %v1019_v5, 9  ;;  %v1066_v12 = vrot.slane %v4301_v21, 5  ;;  %v3575_v22 = vld [vmem:[#allocation9 + $0xc8] sm:$0xff]   ;;  %v364_v0 = vld [vmem:[#allocation2 + $0x4c] sm:$0x1]  ;;  %v3578_v38 = vld [vmem:[#allocation9 + $0x1d0] sm:$0xff]  }
  0xed   : > { %3186 = vmatprep.subr.bf16.mxu1 %v3555_v11  ;;  %3180 = vmatprep.mubr.bf16.mxu1 %v2835_v30  ;;  %v2899_v34 = vcombine.low %v1718_v8, %v1722_v37  ;;  %v2852_v24 = vrot.slane %v1020_v33, 9  ;;  %v1070_v19 = vrot.slane %v4314_v27, 5  ;;  %v4429_v40 = vld [vmem:[#allocation2 + $0x1c] sm:$0x1]  ;;  %v365_v39 = vsel %vm4090_vm4, 0, %v364_v0  ;;  %v3579_v56 = vld [vmem:[#allocation9 + $0xd8] sm:$0xff]  }
  0xee   : > { %v2073_v21 = vrot.slane %v2071_v41, 4  ;;  %v2076_v63 = vrot.slane %v2074_v14, 5  ;;  %v2090_v4 = vrot.slane %v2088_v31, 5  ;;  %366 = vst [vmem:[#allocation2 + $0x4c] sm:$0x1] %v365_v39  ;;  %v1067_v8 = vsel %vm4349_vm12, %v2851_v20, %v1066_v12  ;;  %v3582_v60 = vld [vmem:[#allocation9 + $0x1e0] sm:$0xff]  }
  0xef   : > { %v1071_v37 = vsel %vm4349_vm12, %v2852_v24, %v1070_v19  ;;  %v2094_v43 = vshll.u32 %v4429_v40, 16  ;;  %v3585_v26 = vld [vmem:[#allocation2 + $0x30] ss:$8 sps:$4 sm:$0xff]   ;;  %v4448_v41 = vld [vmem:[#allocation2 + $0x2c] sm:$0x1]  ;;  %v3584_v31 = vld [vmem:[#allocation9 + $0x1e8] sm:$0xff]  }
  0xf0   : > { %3187 = vmatpush3.bf16.msra.mxu1 %v3555_v11  ;;  %v2085_v11 = vshrl.u32 %v2056_v1, 16  ;;  %v3589_v20 = vld [vmem:[#allocation9 + $0xf8] sm:$0xff]   ;;  %v2066_v12 = vld [vmem:[#allocation2 + $0x40] sm:$0xf] }
  0xf1   : > { %3188 = vmatprep.subr.bf16.mxu1 %v3557_v25  ;;  %v2096_v7 = vrot.slane %v2094_v43, 5  ;;  %v3587_v36 = vld [vmem:[#allocation2 + $0x40] ss:$8 sps:$4 sm:$0xff]  }
  0xf2   : > { %v2087_v27 = vrot.slane %v2085_v11, 4  ;;  %v2068_v0 = vld [vmem:[#allocation2 + $0x48] sm:$0xf] }
  0xf3   : > { %3273 = vmatmul.mubr.bf16.vlgmr.msra.gmra.mrb[0].mxu0 %v2898_v35  ;;  %3181 = vmatmul.mubr.bf16.gmra.mrb[4].mxu1 %v2836_v51  ;;  %v3573_v35 = vld [vmem:[#allocation9 + $0x1c0] sm:$0xff]   ;;  %v3577_v51 = vld [vmem:[#allocation9 + $0xd0] sm:$0xff]  }
  0xf4   : > { %3281 = vmatpush3.bf16.msra.mxu0 %v4328_v53  ;;  %3189 = vmatpush3.bf16.msra.mxu1 %v3557_v25  ;;  %v3560_v53 = vld [vmem:[#allocation9 + $0x198] sm:$0xff]   ;;  %v4427_v25 = vld [vmem:[#allocation2 + $0x14] sm:$0x1]  ;;  %v2091_v62 = vor.u32 %v2090_v4, %v2087_v27  ;;  %v4454_v27 = vld [vmem:[#allocation2 + $0x3c] sm:$0x1] }
  0xf5   : > { %3282 = vmatprep.subr.bf16.mxu0 %v3556_v3  ;;  %3190 = vmatprep.subr.bf16.mxu1 %v3559_v23  ;;  %v2080_v44 = vshll.u32 %v4427_v25, 16 }
  0xf6   : > { %3276 = vmatprep.mubr.bf16.mxu0 %v2899_v34  ;;  %3200 = vmatprep.mubr.bf16.mxu1 %v2853_v48  ;;  %v1059_v48 = vsel %vm4349_vm12, %v2849_v52, %v1058_v57  ;;  %v2092_v17 = vrot.slane %v2091_v62, 4  ;;  %v2064_v52 = vld [vmem:[#allocation2 + $0x38] sm:$0xf]  ;;  %v2150_v62 = vshll.u32 %v4454_v27, 16 }
  0xf7   : > { %v2855_v30 = vcombine.low %v1059_v48, %v1063_v47  ;;  %v2144_v5 = vshll.u32 %v2064_v52, 16  ;;  %v4446_v47 = vld [vmem:[#allocation2 + $0x24] sm:$0x1] }
  0xf8   : > { %3283 = vmatpush3.bf16.msra.mxu0 %v3556_v3  ;;  %3191 = vmatpush3.bf16.msra.mxu1 %v3559_v23  ;;  %v2077_v3 = vor.u32 %v2076_v63, %v2073_v21  ;;  %v3591_v23 = vld [vmem:[#allocation2 + $0x8] ss:$8 sps:$4 sm:$0xff]   ;;  %v2108_v39 = vshll.u32 %v4446_v47, 16  ;;  %v2122_v21 = vshll.u32 %v4448_v41, 16  ;;  %v4452_v63 = vld [vmem:[#allocation2 + $0x34] sm:$0x1] }
  0xf9   : > { %3284 = vmatprep.subr.bf16.mxu0 %v3558_v16  ;;  %3192 = vmatprep.subr.bf16.mxu1 %v3561_v28 }
  0xfa   : > { %v2078_v34 = vrot.slane %v2077_v3, 4 }
  0xfb   : > { %3277 = vmatmul.mubr.bf16.gmra.mrb[4].mxu0 %v2900_v18 }
  0xfc   : > { %3285 = vmatpush3.bf16.msra.mxu0 %v3558_v16  ;;  %3193 = vmatpush3.bf16.msra.mxu1 %v3561_v28  ;;  %v2082_v16 = vrot.slane %v2080_v44, 5  ;;  %v3581_v28 = vld [vmem:[#allocation9 + $0xe0] sm:$0xff]  }
  0xfd   : > { %3286 = vmatprep.subr.bf16.mxu0 %v3560_v53  ;;  %3194 = vmatprep.subr.bf16.mxu1 %v3563_v46  ;;  %v4456_v44 = vld [vmem:[#allocation9 + $0x200] sm:$0xff]  }
  0xfe   : > { %3296 = vmatprep.mubr.bf16.mxu0 %v3572_v42  ;;  %v2083_v18 = vsel %vm4164_vm9, %v2078_v34, %v2082_v16  ;;  %v2060_v42 = vld [vmem:[#allocation2 + $0x28] sm:$0xf]  ;;  %v3590_v34 = vld [vmem:[#allocation9 + $0x1f8] sm:$0xff]  }
  0xff   : > { %v2113_v57 = vshrl.u32 %v2060_v42, 16  ;;  %v2116_v13 = vshll.u32 %v2060_v42, 16 }
 0x100   : > { %3287 = vmatpush3.bf16.msra.mxu0 %v3560_v53  ;;  %3195 = vmatpush3.bf16.msra.mxu1 %v3563_v46  ;;  %v2097_v53 = vsel %vm4164_vm9, %v2092_v17, %v2096_v7  ;;  %v2058_v46 = vld [vmem:[#allocation2 + $0x20] sm:$0xf]  ;;  %v4462_v7 = vld [vmem:[#allocation2 + $0x44] sm:$0x1] }
 0x101   : > { %3288 = vmatprep.subr.bf16.mxu0 %v3562_v49  ;;  %3196 = vmatprep.subr.bf16.mxu1 %v3566_v54  ;;  %v2921_v9 = vcombine.low %v2083_v18, %v2097_v53  ;;  %v2099_v58 = vshrl.u32 %v2058_v46, 16  ;;  %v2115_v14 = vrot.slane %v2113_v57, 4  ;;  %v2118_v11 = vrot.slane %v2116_v13, 5  ;;  %v4460_v17 = vld [vmem:[#allocation9 + $0x208] sm:$0xff]   ;;  %v2339_v53 = vld [vmem:[#allocation2 + $0x30] sm:$0xe] }
 0x102   : > { %v2937_v57 = vrot.slane %v2339_v53, 9  ;;  %v2377_v13 = vrot.slane %v4452_v63, 5  ;;  %v2373_v53 = vrot.slane %v4448_v41, 5 }
 0x103   : > { %v2101_v33 = vrot.slane %v2099_v58, 4  ;;  %v2119_v4 = vor.u32 %v2118_v11, %v2115_v14  ;;  %v4465_v58 = vld [vmem:[#allocation2 + $0x4c] sm:$0x1]  ;;  %v3597_v14 = vld [vmem:[#allocation9 + $0x210] sm:$0xff]   ;;  %v2335_v11 = vld [vmem:[#allocation2 + $0x10] sm:$0xe] }
 0x104   : > { %3289 = vmatpush3.bf16.msra.mxu0 %v3562_v49  ;;  %3197 = vmatpush3.bf16.msra.mxu1 %v3566_v54  ;;  %v3580_v49 = vld [vmem:[#allocation9 + $0x1d8] sm:$0xff]   ;;  %v3583_v54 = vld [vmem:[#allocation9 + $0xe8] sm:$0xff]  }
 0x105   : > { %3290 = vmatprep.subr.bf16.mxu0 %v3564_v2  ;;  %3198 = vmatprep.subr.bf16.mxu1 %v3569_v50  ;;  %v2120_v16 = vrot.slane %v2119_v4, 4  ;;  %v2365_v4 = vrot.slane %v4429_v40, 5 }
 0x108   : > { %3291 = vmatpush3.bf16.msra.mxu0 %v3564_v2  ;;  %3199 = vmatpush3.bf16.msra.mxu1 %v3569_v50  ;;  %v2102_v2 = vshll.u32 %v2058_v46, 16  ;;  %v2062_v50 = vld [vmem:[#allocation2 + $0x30] sm:$0xf]  ;;  %v2340_v46 = vld [vmem:[#allocation2 + $0x38] sm:$0xe] }
 0x109   : > { %3292 = vmatprep.subr.bf16.mxu0 %v3567_v6  ;;  %3208 = vmatprep.subr.bf16.mxu1 %v3571_v45  ;;  %v2127_v29 = vshrl.u32 %v2062_v50, 16  ;;  %v2130_v1 = vshll.u32 %v2062_v50, 16  ;;  %v3595_v50 = vld [vmem:[#allocation2 + $0x28] ss:$8 sps:$4 sm:$0xff]  }
 0x10a   : > { %v2104_v48 = vrot.slane %v2102_v2, 5 }
 0x10b   : > { %3201 = vmatmul.mubr.bf16.vlgmr.msra.gmra.mrb[0].mxu1 %v2854_v61  ;;  %v2856_v61 = vcombine.low %v1067_v8, %v1071_v37  ;;  %v2129_v24 = vrot.slane %v2127_v29, 4  ;;  %v2132_v19 = vrot.slane %v2130_v1, 5  ;;  %v2158_v8 = vshll.u32 %v2066_v12, 16 }
 0x10c   : > { %3293 = vmatpush3.bf16.msra.mxu0 %v3567_v6  ;;  %3209 = vmatpush3.bf16.msra.mxu1 %v3571_v45  ;;  %v3586_v6 = vld [vmem:[#allocation9 + $0xf0] sm:$0xff]   ;;  %v2141_v45 = vshrl.u32 %v2064_v52, 16  ;;  %v2169_v37 = vshrl.u32 %v2068_v0, 16  ;;  %v2164_v52 = vshll.u32 %v4462_v7, 16 }
 0x10d   : > { %3294 = vmatprep.subr.bf16.mxu0 %v3570_v59  ;;  %3210 = vmatprep.subr.bf16.mxu1 %v3575_v22  ;;  %v2133_v43 = vor.u32 %v2132_v19, %v2129_v24  ;;  %v2378_v19 = vsel %vm4349_vm12, %v2937_v57, %v2377_v13 }
 0x10e   : > { %3204 = vmatprep.mubr.bf16.mxu1 %v2855_v30  ;;  %v2105_v30 = vor.u32 %v2104_v48, %v2101_v33  ;;  %v2166_v24 = vrot.slane %v2164_v52, 5 }
 0x10f   : > { %v2134_v42 = vrot.slane %v2133_v43, 4 }
 0x110   : > { %3295 = vmatpush3.bf16.msra.mxu0 %v3570_v59  ;;  %3211 = vmatpush3.bf16.msra.mxu1 %v3575_v22  ;;  %v2143_v59 = vrot.slane %v2141_v45, 4  ;;  %v2146_v22 = vrot.slane %v2144_v5, 5  ;;  %v2178_v5 = vshll.u32 %v4465_v58, 16 }
 0x111   : > { %3304 = vmatprep.subr.bf16.mxu0 %v3573_v35  ;;  %3212 = vmatprep.subr.bf16.mxu1 %v3577_v51 }
 0x112   : > { %v2147_v3 = vor.u32 %v2146_v22, %v2143_v59 }
 0x113   : > { %3297 = vmatmul.mubr.bf16.vlgmr.msra.gmra.mrb[0].mxu0 %v3574_v10  ;;  %3205 = vmatmul.mubr.bf16.gmra.mrb[4].mxu1 %v2856_v61  ;;  %v2172_v10 = vshll.u32 %v2068_v0, 16  ;;  %v2136_v61 = vshll.u32 %v4452_v63, 16  ;;  %v2361_v63 = vrot.slane %v4427_v25, 5 }
 0x114   : > { %3305 = vmatpush3.bf16.msra.mxu0 %v3573_v35  ;;  %3213 = vmatpush3.bf16.msra.mxu1 %v3577_v51  ;;  %v2155_v35 = vshrl.u32 %v2066_v12, 16  ;;  %v3588_v51 = vld [vmem:[#allocation9 + $0x1f0] sm:$0xff]   ;;  %v3596_v12 = vld [vmem:[#allocation2 + $0x38] ss:$8 sps:$4 sm:$0xff]  }
 0x115   : > { %3306 = vmatprep.subr.bf16.mxu0 %v3576_v15  ;;  %3214 = vmatprep.subr.bf16.mxu1 %v3579_v56  ;;  %v2174_v18 = vrot.slane %v2172_v10, 5 }
 0x116   : > { %3300 = vmatprep.mubr.bf16.mxu0 %v3585_v26  ;;  %3224 = vmatprep.mubr.bf16.mxu1 %v3591_v23  ;;  %v2110_v26 = vrot.slane %v2108_v39, 5  ;;  %v2124_v23 = vrot.slane %v2122_v21, 5  ;;  %v2180_v39 = vrot.slane %v2178_v5, 5  ;;  %v2933_v21 = vrot.slane %v2335_v11, 9 }
 0x118   : > { %3307 = vmatpush3.bf16.msra.mxu0 %v3576_v15  ;;  %3215 = vmatpush3.bf16.msra.mxu1 %v3579_v56  ;;  %v3592_v15 = vld [vmem:[#allocation2 + $0x18] ss:$8 sps:$4 sm:$0xff]   ;;  %v2106_v56 = vrot.slane %v2105_v30, 4  ;;  %v2125_v29 = vsel %vm4164_vm9, %v2120_v16, %v2124_v23  ;;  %v2362_v25 = vsel %vm4349_vm12, %v2933_v21, %v2361_v63 }
 0x119   : > { %3308 = vmatprep.subr.bf16.mxu0 %v3578_v38  ;;  %3216 = vmatprep.subr.bf16.mxu1 %v3581_v28  ;;  %v2337_v16 = vld [vmem:[#allocation2 + $0x20] sm:$0xe] }
 0x11a   : > { %v2111_v2 = vsel %vm4164_vm9, %v2106_v56, %v2110_v26  ;;  %v2389_v56 = vrot.slane %v4465_v58, 5 }
 0x11b   : > { %3301 = vmatmul.mubr.bf16.gmra.mrb[4].mxu0 %v3587_v36  ;;  %v2171_v36 = vrot.slane %v2169_v37, 4 }
 0x11c   : > { %3309 = vmatpush3.bf16.msra.mxu0 %v3578_v38  ;;  %3217 = vmatpush3.bf16.msra.mxu1 %v3581_v28  ;;  %v2157_v38 = vrot.slane %v2155_v35, 4  ;;  %v2160_v28 = vrot.slane %v2158_v8, 5  ;;  %v3598_v35 = vld [vmem:[#allocation9 + $0x218] sm:$0xff]  }
 0x11d   : > { %3310 = vmatprep.subr.bf16.mxu0 %v3580_v49  ;;  %3218 = vmatprep.subr.bf16.mxu1 %v3583_v54  ;;  %v2175_v45 = vor.u32 %v2174_v18, %v2171_v36  ;;  %v2369_v36 = vrot.slane %v4446_v47, 5 }
 0x11e   : > { %3320 = vmatprep.mubr.bf16.mxu0 %v2921_v9  ;;  %v2152_v9 = vrot.slane %v2150_v62, 5  ;;  %v2161_v1 = vor.u32 %v2160_v28, %v2157_v38  ;;  %v2342_v62 = vld [vmem:[#allocation2 + $0x48] sm:$0xe] }
 0x11f   : > { %v2176_v30 = vrot.slane %v2175_v45, 4  ;;  %v2940_v23 = vrot.slane %v2342_v62, 9 }
 0x120   : > { %3311 = vmatpush3.bf16.msra.mxu0 %v3580_v49  ;;  %3219 = vmatpush3.bf16.msra.mxu1 %v3583_v54  ;;  %v2138_v49 = vrot.slane %v2136_v61, 5  ;;  %v2148_v54 = vrot.slane %v2147_v3, 4  ;;  %v2162_v0 = vrot.slane %v2161_v1, 4  ;;  %v3601_v61 = vld [vmem:[#allocation9 + $0x230] sm:$0xff]   ;;  %v2341_v3 = vld [vmem:[#allocation2 + $0x40] sm:$0xe] }
 0x121   : > { %3312 = vmatprep.subr.bf16.mxu0 %v3582_v60  ;;  %3220 = vmatprep.subr.bf16.mxu1 %v3586_v6  ;;  %v2181_v10 = vsel %vm4164_vm9, %v2176_v30, %v2180_v39  ;;  %v2939_v26 = vrot.slane %v2341_v3, 9  ;;  %v2390_v28 = vsel %vm4349_vm12, %v2940_v23, %v2389_v56 }
 0x122   : > { %v2139_v33 = vsel %vm4164_vm9, %v2134_v42, %v2138_v49  ;;  %v2153_v48 = vsel %vm4164_vm9, %v2148_v54, %v2152_v9  ;;  %v2167_v37 = vsel %vm4164_vm9, %v2162_v0, %v2166_v24 }
 0x123   : > { %v2923_v22 = vcombine.low %v2139_v33, %v2153_v48 }
 0x124   : > { %3313 = vmatpush3.bf16.msra.mxu0 %v3582_v60  ;;  %3221 = vmatpush3.bf16.msra.mxu1 %v3586_v6  ;;  %v2938_v60 = vrot.slane %v2340_v46, 9  ;;  %v2381_v6 = vrot.slane %v4454_v27, 5 }
 0x125   : > { %3314 = vmatprep.subr.bf16.mxu0 %v3584_v31  ;;  %3222 = vmatprep.subr.bf16.mxu1 %v3589_v20 }
 0x126   : > { %v2382_v59 = vsel %vm4349_vm12, %v2938_v60, %v2381_v6 }
 0x127   : > { %v2943_v8 = vcombine.low %v2378_v19, %v2382_v59 }
 0x128   : > { %3315 = vmatpush3.bf16.msra.mxu0 %v3584_v31  ;;  %3223 = vmatpush3.bf16.msra.mxu1 %v3589_v20  ;;  %v2336_v31 = vld [vmem:[#allocation2 + $0x18] sm:$0xe]  ;;  %v2922_v20 = vcombine.low %v2111_v2, %v2125_v29 }
 0x129   : > { %3316 = vmatprep.subr.bf16.mxu0 %v3588_v51  ;;  %3352 = vmatprep.subr.bf16.mxu1 %v4456_v44  ;;  %v2934_v27 = vrot.slane %v2336_v31, 9 }
 0x12b   : > { %3225 = vmatmul.mubr.bf16.vlgmr.msra.gmra.mrb[0].mxu1 %v3592_v15  ;;  %v2366_v40 = vsel %vm4349_vm12, %v2934_v27, %v2365_v4  ;;  %v2385_v15 = vrot.slane %v4462_v7, 5  ;;  %v2935_v7 = vrot.slane %v2337_v16, 9 }
 0x12c   : > { %3317 = vmatpush3.bf16.msra.mxu0 %v3588_v51  ;;  %3360 = vmatpush3.bf16.msra.mxu1 %v4456_v44  ;;  %v3599_v51 = vld [vmem:[#allocation9 + $0x220] sm:$0xff]   ;;  %v2941_v43 = vcombine.low %v2362_v25, %v2366_v40 }
 0x12d   : > { %3318 = vmatprep.subr.bf16.mxu0 %v3590_v34  ;;  %3353 = vmatprep.subr.bf16.mxu1 %v4460_v17  ;;  %v2386_v38 = vsel %vm4349_vm12, %v2939_v26, %v2385_v15  ;;  %v2370_v42 = vsel %vm4349_vm12, %v2935_v7, %v2369_v36 }
 0x12e   : > { %3228 = vmatprep.mubr.bf16.mxu1 %v3595_v50  ;;  %v2944_v46 = vcombine.low %v2386_v38, %v2390_v28 }
 0x130   : > { %3319 = vmatpush3.bf16.msra.mxu0 %v3590_v34  ;;  %3361 = vmatpush3.bf16.msra.mxu1 %v4460_v17  ;;  %v3602_v34 = vld [vmem:[#allocation9 + $0x238] sm:$0xff]  }
 0x131   : > { %3328 = vmatprep.subr.bf16.mxu0 %v4456_v44  ;;  %3354 = vmatprep.subr.bf16.mxu1 %v3597_v14 }
 0x133   : > { %3321 = vmatmul.mubr.bf16.vlgmr.msra.gmra.mrb[0].mxu0 %v2922_v20  ;;  %3229 = vmatmul.mubr.bf16.gmra.mrb[4].mxu1 %v3596_v12 }
 0x134   : > { %3329 = vmatpush3.bf16.msra.mxu0 %v4456_v44  ;;  %3324 = vmatprep.mubr.bf16.mxu0 %v2923_v22  ;;  %v2924_v44 = vcombine.low %v2167_v37, %v2181_v10 }
 0x135   : > { %3330 = vmatprep.subr.bf16.mxu0 %v4460_v17  ;;  %3362 = vmatpush3.bf16.msra.mxu1 %v3597_v14 }
 0x136   : > { %3355 = vmatprep.subr.bf16.mxu1 %v3598_v35  ;;  %3348 = vmatprep.mubr.bf16.mxu1 %v2943_v8 }
 0x138   : > { %3331 = vmatpush3.bf16.msra.mxu0 %v4460_v17  ;;  %v2338_v17 = vld [vmem:[#allocation2 + $0x28] sm:$0xe] }
 0x139   : > { %3332 = vmatprep.subr.bf16.mxu0 %v3597_v14  ;;  %3363 = vmatpush3.bf16.msra.mxu1 %v3598_v35  ;;  %v2936_v18 = vrot.slane %v2338_v17, 9 }
 0x13a   : > { %3356 = vmatprep.subr.bf16.mxu1 %v3599_v51 }
 0x13b   : > { %3325 = vmatmul.mubr.bf16.gmra.mrb[4].mxu0 %v2924_v44  ;;  %v2374_v49 = vsel %vm4349_vm12, %v2936_v18, %v2373_v53 }
 0x13c   : > { %3333 = vmatpush3.bf16.msra.mxu0 %v3597_v14  ;;  %3344 = vmatprep.mubr.bf16.mxu0 %v2941_v43  ;;  %v2942_v54 = vcombine.low %v2370_v42, %v2374_v49 }
 0x13d   : > { %3334 = vmatprep.subr.bf16.mxu0 %v3598_v35  ;;  %3364 = vmatpush3.bf16.msra.mxu1 %v3599_v51 }
 0x13e   : > { %3357 = vmatprep.subr.bf16.mxu1 %v3600_v55 }
 0x140   : > { %3335 = vmatpush3.bf16.msra.mxu0 %v3598_v35 }
 0x141   : > { %3336 = vmatprep.subr.bf16.mxu0 %v3599_v51  ;;  %3365 = vmatpush3.bf16.msra.mxu1 %v3600_v55 }
 0x142   : > { %3358 = vmatprep.subr.bf16.mxu1 %v3601_v61 }
 0x144   : > { %3337 = vmatpush3.bf16.msra.mxu0 %v3599_v51 }
 0x145   : > { %3338 = vmatprep.subr.bf16.mxu0 %v3600_v55  ;;  %3366 = vmatpush3.bf16.msra.mxu1 %v3601_v61 }
 0x146   : > { %3359 = vmatprep.subr.bf16.mxu1 %v3602_v34 }
 0x148   : > { %3339 = vmatpush3.bf16.msra.mxu0 %v3600_v55 }
 0x149   : > { %3340 = vmatprep.subr.bf16.mxu0 %v3601_v61  ;;  %3367 = vmatpush3.bf16.msra.mxu1 %v3602_v34 }
 0x14c   : > { %3341 = vmatpush3.bf16.msra.mxu0 %v3601_v61  ;;  %3349 = vmatmul.mubr.bf16.vlgmr.msra.gmra.mrb[8].mxu1 %v2944_v46 }
 0x14d   : > { %3342 = vmatprep.subr.bf16.mxu0 %v3602_v34 }
 0x150   : > { %3343 = vmatpush3.bf16.msra.mxu0 %v3602_v34 }
 0x153   : > { %3345 = vmatmul.mubr.bf16.vlgmr.msra.gmra.mrb[0].mxu0 %v2942_v54 }
 0x1fe   : > { %v3226_v9 = vpop.f32.mrb[0].mxu1 }
 0x1ff   : > { %v1355_v47 = vpop.f32.mrb[1].mxu1 }
 0x200   : > { %v3227_v58 = vpop.f32.mrb[2].mxu1 }
 0x201   : > { %v1358_v2 = vpop.f32.mrb[3].mxu1 }
 0x206   : > { %v3230_v41 = vpop.f32.mrb[4].mxu1 }
 0x207   : > { %v1371_v50 = vpop.f32.mrb[5].mxu1 }
 0x208   : > { %v3231_v52 = vpop.f32.mrb[6].mxu1 }
 0x209   : > { %v1374_v57 = vpop.f32.mrb[7].mxu1 }
 0x20e   : > { %v3326_v13 = vpop.f32.mrb[4].mxu0 }
 0x20f   : > { %v3372_v60 = vadd.f32 %v3326_v13, %v3230_v41  ;;  %v2312_v6 = vpop.f32.mrb[5].mxu0 }
 0x210   : > { %v3374_v29 = vadd.f32 %v2312_v6, %v1371_v50  ;;  %v3327_v32 = vpop.f32.mrb[6].mxu0 }
 0x211   : > { %v3376_v1 = vadd.f32 %v3327_v32, %v3231_v52  ;;  %v2315_v45 = vpop.f32.mrb[7].mxu0 }
 0x212   : > { %v3378_v5 = vadd.f32 %v2315_v45, %v1374_v57 }
 0x21f   : > { %v3350_v33 = vpop.f32.mrb[8].mxu1 }
 0x220   : > { %v3373_v48 = vadd.f32 %v3372_v60, %v3350_v33  ;;  %v2521_v14 = vpop.f32.mrb[9].mxu1 }
 0x221   : > { %v3375_v11 = vadd.f32 %v3374_v29, %v2521_v14  ;;  %v3351_v31 = vpop.f32.mrb[10].mxu1 }
 0x222   : > { %v3377_v20 = vadd.f32 %v3376_v1, %v3351_v31  ;;  %v2524_v12 = vpop.f32.mrb[11].mxu1 }
 0x223   : > { %v3379_v24 = vadd.f32 %v3378_v5, %v2524_v12 }
 0x224   : > { %v4512_v19 = vpack.c.bf16 %v3377_v20, %v3373_v48 }
 0x225   : > { %v2546_v59 = vpack.c.bf16 %v3379_v24, %v3375_v11 }
 0x226   : > { %v3346_v22 = vpop.f32.mrb[0].mxu0  ;;  %3027 = vst [vmem:[%s286_s24 + $0x18] sm:$0xff] %v4512_v19  }
 0x227   : > { %v3368_v0 = vadd.f32 %v3346_v22, %v3226_v9  ;;  %v2505_v30 = vpop.f32.mrb[1].mxu0  ;;  %3026 = vst [vmem:[%s286_s24 + $0x10] sm:$0xff] %v2546_v59  }
 0x228   : > { %v3369_v39 = vadd.f32 %v2505_v30, %v1355_v47  ;;  %v3347_v21 = vpop.f32.mrb[2].mxu0 }
 0x229   : > { %v3370_v63 = vadd.f32 %v3347_v21, %v3227_v58  ;;  %v2508_v27 = vpop.f32.mrb[3].mxu0 }
 0x22a   : > { %v3371_v4 = vadd.f32 %v2508_v27, %v1358_v2 }
 0x22b   : > { %v2545_v35 = vpack.c.bf16 %v3370_v63, %v3368_v0 }
 0x22c   : > { %v2544_v8 = vpack.c.bf16 %v3371_v4, %v3369_v39 }
 0x22d   : > { %3025 = vst [vmem:[%s286_s24 + $0x8] sm:$0xff] %v2545_v35   ;;  %v2586_v37 = vunpack.c.l.bf16 %v2545_v35 }
 0x22e   : > { %3006 = vst [vmem:[%s286_s24] sm:$0xff] %v2544_v8   ;;  %v2584_v10 = vunpack.c.l.bf16 %v2544_v8  ;;  %v2585_v25 = vunpack.c.h.bf16 %v2544_v8 }
 0x22f   : > { %3730 = shalt.err (!%p3727_p13)
}
 0x230   : > { %s3731_s7 = scalar_lea.hbm %s4523_s30, 512  ;;  %s3735_s15 = scalar_lea.hbm %s4605_s4, 2048 }
 0x231   : > { %p3732_p0 = scmp.ne.s32.totalorder %s4523_s30, %s3731_s7  ;;  %p3736_p9 = scmp.lt.u32.totalorder %s4523_s30, %s4605_s4 }
 0x232   : > { %p3737_p12 = scmp.lt.u32.totalorder %s3735_s15, %s3731_s7  ;;  %p3739_p1 = scmp.lt.u32.totalorder %s3731_s7, %s4523_s30 }
 0x233   : > { %p3733_p5 = pnand %p3732_p0, %p4012_p6 }
 0x234   : > { %p3738_p2 = por %p3737_p12, %p3736_p9 }
 0x235   : > { %p3734_p11 = pneg %p3733_p5 }
 0x236   : > { %p3740_p4 = por %p3739_p1, %p3738_p2 }
 0x238   : > { %p3741_p8 = pnand %p3740_p4, %p3734_p11 }
 0x23a   : > { %3744 = shalt.err (!%p3741_p8)
}
 0x23b   : > { %s3833_s14 = smov 64   ;;  %s3834_s11 = smov 4   ;;  %v2587_v40 = vunpack.c.h.bf16 %v2545_v35  ;;  %v2592_v51 = vadd.f32 %v2585_v25, %v2584_v10  ;;  %v2605_v44 = vmul.f32 %v2584_v10, %v2584_v10  ;;  %v2606_v43 = vmul.f32 %v2585_v25, %v2585_v25 }
 0x23c   : > { %3446 = dma.vmem_to_hbm [thread:$0]  (%p4012_p6), %s4518_s26, 512, %s4523_s30, %s2630_s28, %s3833_s14, %s3833_s14, %s3834_s11   ;;  %v2607_v55 = vmul.f32 %v2586_v37, %v2586_v37  ;;  %v2588_v62 = vunpack.c.l.bf16 %v2546_v59  ;;  %v2589_v26 = vunpack.c.h.bf16 %v2546_v59  ;;  %v2590_v34 = vunpack.c.l.bf16 %v4512_v19 }
 0x23d   : > { %v2593_v61 = vadd.f32 %v2592_v51, %v2586_v37  ;;  %v2613_v3 = vadd.f32 %v2606_v43, %v2605_v44  ;;  %v2608_v15 = vmul.f32 %v2587_v40, %v2587_v40  ;;  %v2591_v28 = vunpack.c.h.bf16 %v4512_v19  ;;  %s2810_s26 = sshll.u32 %s4063_s17, 1  ;;  %s2965_s30 = sshll.u32 %s3887_s22, 5 }
 0x23e   : > { %v2609_v17 = vmul.f32 %v2588_v62, %v2588_v62  ;;  %v2610_v36 = vmul.f32 %v2589_v26, %v2589_v26  ;;  %v2611_v53 = vmul.f32 %v2590_v34, %v2590_v34  ;;  %s293_s28 = scalar_lea.vmem [#allocation12], %s2810_s26  ;;  %s4556_s23 = scalar_lea.hbm %s4606_s5, %s2965_s30 }
 0x23f   : > { %v2614_v56 = vadd.f32 %v2613_v3, %v2607_v55  ;;  %v2594_v23 = vadd.f32 %v2593_v61, %v2587_v40  ;;  %v2612_v49 = vmul.f32 %v2591_v28, %v2591_v28  ;;  %s2664_s10 = sshll.u32 %s293_s28, 4  ;;  %s2635_s7 = scalar_lea.sflag [#allocation13], %s4063_s17  ;;  %s4558_s10 = int_to_ptr.vmem [resolvable:$true] %s2664_s10 }
 0x240   : > { %s3745_s8 = scalar_lea.vmem %s4558_s10, 32  ;;  %s3835_s22 = smov [#allocation12]  }
 0x241   : > { %v2595_v16 = vadd.f32 %v2594_v23, %v2588_v62  ;;  %v2615_v38 = vadd.f32 %v2614_v56, %v2608_v15  ;;  %p3746_p3 = scmp.ne.s32.totalorder %s4558_s10, %s3745_s8  ;;  %s3749_s9 = sshll.u32 %s3835_s22, 4  ;;  %s3750_s9 = int_to_ptr.vmem [resolvable:$false] %s3749_s9 }
 0x242   : > { %s3751_s15 = scalar_lea.vmem %s3750_s9, 64  ;;  %p3752_p13 = scmp.lt.s32.totalorder %s4558_s10, %s3750_s9 }
 0x243   : > { %v2596_v7 = vadd.f32 %v2595_v16, %v2589_v26  ;;  %v2616_v18 = vadd.f32 %v2615_v38, %v2609_v17  ;;  %p3747_p7 = pnand %p3746_p3, %p4012_p6  ;;  %p3753_p0 = scmp.lt.s32.totalorder %s3751_s15, %s3745_s8 }
 0x245   : > { %v2597_v46 = vadd.f32 %v2596_v7, %v2590_v34  ;;  %v2617_v42 = vadd.f32 %v2616_v18, %v2610_v36  ;;  %p3748_p10 = pneg %p3747_p7  ;;  %p3754_p5 = por %p3753_p0, %p3752_p13 }
 0x247   : > { %v2598_v54 = vadd.f32 %v2597_v46, %v2591_v28  ;;  %v2618_v9 = vadd.f32 %v2617_v42, %v2611_v53  ;;  %p3755_p11 = pnand %p3754_p5, %p3748_p10 }
 0x249   : > { %v2599_v47 = vrot.slane %v2598_v54, 4  ;;  %v2619_v58 = vadd.f32 %v2618_v9, %v2612_v49 }
 0x24b   : > { %v2600_v2 = vadd.f32 %v2599_v47, %v2598_v54  ;;  %v2620_v41 = vrot.slane %v2619_v58, 4 }
 0x24d   : > { %v2601_v50 = vrot.slane %v2600_v2, 2  ;;  %v2621_v52 = vadd.f32 %v2620_v41, %v2619_v58 }
 0x24f   : > { %v2602_v57 = vadd.f32 %v2601_v50, %v2600_v2  ;;  %v2622_v13 = vrot.slane %v2621_v52, 2 }
 0x251   : > { %v2603_v60 = vrot.slane %v2602_v57, 1  ;;  %v2623_v6 = vadd.f32 %v2622_v13, %v2621_v52 }
 0x253   : > { %v2624_v29 = vrot.slane %v2623_v6, 1  ;;  %v2604_v32 = vadd.f32 %v2603_v60, %v2602_v57 }
 0x255   : > { %v2625_v1 = vadd.f32 %v2624_v29, %v2623_v6 }
 0x257   : > { %v2627_v45 = vsel %vm302_vm0, %v2604_v32, %v2625_v1 }
 0x258   : > { %2628 = vst [vmem:[%s293_s28] sm:$0x3] %v2627_v45 }
 0x259   : > { %3758 = shalt.err (!%p3755_p11)
}
 0x25a   : > { %s3759_s17 = scalar_lea.hbm %s4556_s23, 32  ;;  %s3763_s14 = scalar_lea.hbm %s4606_s5, 64 }
 0x25b   : > { %p3760_p9 = scmp.ne.s32.totalorder %s4556_s23, %s3759_s17  ;;  %p3764_p1 = scmp.lt.u32.totalorder %s4556_s23, %s4606_s5 }
 0x25c   : > { %p3765_p4 = scmp.lt.u32.totalorder %s3763_s14, %s3759_s17  ;;  %p3767_p3 = scmp.lt.u32.totalorder %s3759_s17, %s4556_s23 }
 0x25d   : > { %p3761_p12 = pnand %p3760_p9, %p4012_p6 }
 0x25e   : > { %p3766_p8 = por %p3765_p4, %p3764_p1 }
 0x25f   : > { %p3762_p2 = pneg %p3761_p12 }
 0x260   : > { %p3768_p7 = por %p3767_p3, %p3766_p8 }
 0x262   : > { %p3769_p10 = pnand %p3768_p7, %p3762_p2 }
 0x264   : > { %3772 = shalt.err (!%p3769_p10)
}
 0x265   : > { %3447 = dma.vmem_to_hbm [thread:$0]  (%p4012_p6), %s4558_s10, 32, %s4556_s23, %s2635_s7  }
 0x266 PF: > { %s2676_s30 = sand.u32 1, %s3811_s18   ;;  %p4634_p13 = scmp.ne.s32.totalorder %s4611_s25, 0 }
 0x267   : > { %p4635_p0 = scmp.ge.s32.totalorder %s3823_s21, 2  ;;  %s2677_s28 = scalar_lea.sflag [#allocation5], %s2676_s30 }
 0x269   : > { %p3465_p5 = pnand %p4635_p0, %p4634_p13 }
 0x26b   : > { %3802 = dma.done.wait (!%p3465_p5), %s2677_s28, 512  }
 0x26c   : > { %3804 = vsyncadd (!%p3465_p5), %s2677_s28, 4294966784  ;;  %s2686_s29 = scalar_lea.sflag [#allocation13], %s2676_s30 }
 0x26d   : > { %3806 = dma.done.wait (!%p3465_p5), %s2686_s29, 32  }
 0x26e   : > { %3808 = vsyncadd (!%p3465_p5), %s2686_s29, 4294967264  ;;  %p24_p6 = scmp.ge.s32.totalorder %s3998_s16, 4   ;;  %s4636_s18 = smov %s3815_s19 }
 0x26f   : > { %s4637_s19 = smov %s3819_s20  ;;  %s4638_s20 = smov %s4008_s27 }
 0x270   : > { %s4639_s21 = smov %s3998_s16  ;;  %26 = sbr.rel (!%p24_p6) target bundleno = 9 (0x9), region = 113 }
 0x277   :  { %2691 = vsyncpa [#allocation4], 1 }
 0x278   :  { %2693 = vsyncpa [#allocation4 + $0x1], 1 }
 0x279   :  { %2694 = vsyncpa [#allocation7], 1 }
 0x27a   :  { %2695 = vsyncpa [#allocation10], 1 }
 0x27b   :  { %2696 = vsyncpa [#allocation5], 1 }
 0x27c   :  { %2698 = vsyncpa [#allocation5 + $0x1], 1 }
 0x27d   :  { %2699 = vsyncpa [#allocation13], 1 }
 0x27e   :  { %2701 = vsyncpa [#allocation13 + $0x1], 1 }

</bundles_post_ra>
